<compile_context>
chip_gen: v7x
topology: tpu7x:2x2x1
jax: 0.10.0
libtpu: 0.0.40
codegen_flags: <defaults>
</compile_context>

<pallas_src>
import math

import jax
import jax.numpy as jnp
from jax.experimental import pallas as pl
from jax.experimental.pallas import tpu as pltpu

# ----------------------------- config ---------------------------------------
B, L = 2, 8                   # batch, sequence length
V, H = 64, 128                # vocab size, hidden size
N_LAYERS, N_HEADS = 2, 2
D_HEAD = H // N_HEADS         # 64
FFN = 4 * H
MAX_POS = 16
MAX_WORD_LEN = 4              # W: bpes per word (needs 1 + W <= L)
NUM_WORDS = 256               # N: reverse-dictionary size (lane dense, 2x128)
PAD_ID = 0
LN_EPS = 1e-12
PREC = jax.lax.Precision.HIGHEST

HBL = N_HEADS * B * L         # head-stacked row count (32)
LOG_BL = (B * L).bit_length() - 1
LOG_L = L.bit_length() - 1
assert (1 << LOG_BL) == B * L and (1 << LOG_L) == L
assert 1 + MAX_WORD_LEN <= L


# --------------------------- BlockSpec helpers --------------------------------
def _inv(shape):
    """Layer-invariant input: full block, constant block index (loaded once)."""
    return pl.BlockSpec(shape, lambda l, n=len(shape): (0,) * n)


def _lyr(tail):
    """Per-layer input stacked on axis 0: leading dim squeezed, indexed by layer."""
    return pl.BlockSpec((None,) + tuple(tail),
                        lambda l, n=len(tail): (l,) + (0,) * n)


# --------------------------- fused Pallas kernel ------------------------------
def _fused_bert_kernel(ids_col_ref, ids_row_ref, wemb_ref, pemb_ref, temb_ref,
                       sufft_ref, eg_ref, eb_ref,
                       qkvw_ref, qkvb_ref, aow_ref, aob_ref, ag_ref, ab_ref,
                       f1w_ref, f1b_ref, f2w_ref, f2b_ref, og_ref, ob_ref,
                       rowsel_ref, gsel_ref,
                       out_ref, x_ref):
    f32, bf16 = jnp.float32, jnp.bfloat16
    layer = pl.program_id(0)

    def ln(v, g, b):
        mu = jnp.mean(v, axis=-1, keepdims=True)
        var = jnp.mean((v - mu) * (v - mu), axis=-1, keepdims=True)
        return (v - mu) * jax.lax.rsqrt(var + LN_EPS) * g + b

    def gelu(y):
        # TODO(synk): HF BertModel defaults to erf-GELU; tanh approximation kept
        # for robust Mosaic lowering (the pure-JAX reference uses the same).
        return 0.5 * y * (1.0 + jnp.tanh(0.7978845608028654
                                         * (y + 0.044715 * y * y * y)))

    ids_row = ids_row_ref[...]                                    # [1, B*L] int32
    mask_lane = ids_row != PAD_ID                                 # [1, B*L] bool

    # -------- grid step 0: embeddings (one-hot gather) + embedding LayerNorm ----
    @pl.when(layer == 0)
    def _():
        ids = ids_col_ref[...]                                    # [B*L, 1] int32
        onehot = (ids == jax.lax.broadcasted_iota(jnp.int32, (B * L, V), 1)
                  ).astype(f32)                                   # [B*L, V]
        emb = jnp.dot(onehot, wemb_ref[...], preferred_element_type=f32)
        emb = emb + pemb_ref[...]
        # token-type ids: 1 where the whole suffix (within the batch row) is pad
        n_follow = jnp.sum(sufft_ref[...] * mask_lane.astype(f32),
                           axis=-1, keepdims=True)                # [B*L, 1]
        is_type1 = (n_follow == 0.0).astype(f32)
        te = temb_ref[...]                                        # [2, H]
        emb = emb + te[0:1, :] + is_type1 * (te[1:2, :] - te[0:1, :])
        x_ref[...] = ln(emb, eg_ref[...], eb_ref[...])

    # -------- additive attention bias in the head-stacked [HBL, HBL] layout ----
    r = jax.lax.broadcasted_iota(jnp.int32, (HBL, HBL), 0)
    c = jax.lax.broadcasted_iota(jnp.int32, (HBL, HBL), 1)
    same_head = (r >> LOG_BL) == (c >> LOG_BL)
    same_batch = ((r & (B * L - 1)) >> LOG_L) == ((c & (B * L - 1)) >> LOG_L)
    ids_tiled = jnp.concatenate([ids_row] * N_HEADS, axis=1)      # [1, HBL]
    key_ok = ids_tiled != PAD_ID
    bias = jnp.where(same_head & same_batch & key_ok, 0.0, -10000.0).astype(f32)

    # -------- one encoder layer per grid step (weights double-buffered) --------
    x = x_ref[...]                                                # [B*L, H] f32
    qkv = (jnp.dot(x.astype(bf16), qkvw_ref[...], preferred_element_type=f32)
           + qkvb_ref[...])                                       # [B*L, 3H]

    def stack_heads(base):
        return jnp.concatenate(
            [qkv[:, base + h0 * D_HEAD: base + (h0 + 1) * D_HEAD]
             for h0 in range(N_HEADS)], axis=0).astype(bf16)      # [HBL, D_HEAD]

    q_st, k_st, v_st = stack_heads(0), stack_heads(H), stack_heads(2 * H)

    s = jax.lax.dot_general(q_st, k_st, (((1,), (1,)), ((), ())),
                            preferred_element_type=f32) * (1.0 / math.sqrt(D_HEAD))
    s = s + bias
    # No row-max subtraction: scores are tiny with 0.02-scale weights and masked
    # entries are a finite -1e4 whose exp underflows to exactly 0 in f32.
    e = jnp.exp(s)
    p = e * pl.reciprocal(jnp.sum(e, axis=-1, keepdims=True), approx=True)
    ctx_st = jnp.dot(p.astype(bf16), v_st, preferred_element_type=f32)    # [HBL, dH]
    ctx = jnp.concatenate([ctx_st[h0 * B * L:(h0 + 1) * B * L, :]
                           for h0 in range(N_HEADS)], axis=1)             # [B*L, H]
    attn = (jnp.dot(ctx.astype(bf16), aow_ref[...], preferred_element_type=f32)
            + aob_ref[...])
    x = ln(x + attn, ag_ref[...], ab_ref[...])

    f = gelu(jnp.dot(x.astype(bf16), f1w_ref[...], preferred_element_type=f32)
             + f1b_ref[...])
    f = jnp.dot(f.astype(bf16), f2w_ref[...], preferred_element_type=f32) + f2b_ref[...]
    x = ln(x + f, og_ref[...], ob_ref[...])
    x_ref[...] = x

    # -------- last grid step: fused reverse-dictionary head --------------------
    @pl.when(layer == N_LAYERS - 1)
    def _():
        # one stacked row-selection matmul, lane-concat the per-bpe rows,
        # then a single K = W*H matmul against the pre-gathered table.
        bpe_all = jnp.dot(rowsel_ref[...], x, preferred_element_type=f32)  # [W*B, H]
        bpe_cat = jnp.concatenate([bpe_all[w * B:(w + 1) * B, :]
                                   for w in range(MAX_WORD_LEN)], axis=1)  # [B, W*H]
        out_ref[...] = jnp.dot(bpe_cat.astype(bf16), gsel_ref[...],
                               preferred_element_type=f32).astype(out_ref.dtype)


# ------------------------------ wrapper ---------------------------------------
def precompute_static(params, word2bpes_wn):
    """Model-constant tensors derived ONCE (kept out of the per-call path)."""
    bf16 = jnp.bfloat16
    r = jnp.arange(B * L)
    # suff_t[q, k] = 1 if same batch and k >= q  (suffix-pad test for type ids)
    suff_t = (((r[None, :] // L) == (r[:, None] // L))
              & (r[None, :] >= r[:, None])).astype(jnp.float32)            # [BL, BL]

    # rowsel row (w*B + b) selects hidden row (b*L + 1 + w)
    rows = (jnp.arange(B)[None, :] * L + 1
            + jnp.arange(MAX_WORD_LEN)[:, None]).reshape(-1)
    rowsel = jax.nn.one_hot(rows, B * L, dtype=jnp.float32)                # [W*B, BL]

    # pre-gathered, pre-flattened table: gsel[w*H + h, n] = word_emb[word2bpes[w,n], h]
    g = params["word_emb"][word2bpes_wn]                                   # [W, N, H]
    gsel = jnp.transpose(g, (0, 2, 1)).reshape(MAX_WORD_LEN * H,
                                               NUM_WORDS).astype(bf16)     # [W*H, N]

    return {
        "word_emb": params["word_emb"],
        "pos_bl": jnp.tile(params["pos_emb"][:L], (B, 1)),                 # [BL, H]
        "type_emb": params["type_emb"],
        "suff_t": suff_t,
        "emb_ln_g": params["emb_ln_g"], "emb_ln_b": params["emb_ln_b"],
        "qkv_w": params["qkv_w"].astype(bf16), "qkv_b": params["qkv_b"],
        "ao_w": params["ao_w"].astype(bf16), "ao_b": params["ao_b"],
        "attn_ln_g": params["attn_ln_g"], "attn_ln_b": params["attn_ln_b"],
        "f1_w": params["f1_w"].astype(bf16), "f1_b": params["f1_b"],
        "f2_w": params["f2_w"].astype(bf16), "f2_b": params["f2_b"],
        "out_ln_g": params["out_ln_g"], "out_ln_b": params["out_ln_b"],
        "rowsel": rowsel,
        "gsel": gsel,
    }


@jax.jit
def forward_pallas(static, input_ids):
    ids_col = input_ids.reshape(B * L, 1).astype(jnp.int32)
    ids_row = input_ids.reshape(1, B * L).astype(jnp.int32)

    args = (ids_col, ids_row,
            static["word_emb"], static["pos_bl"], static["type_emb"],
            static["suff_t"], static["emb_ln_g"], static["emb_ln_b"],
            static["qkv_w"], static["qkv_b"], static["ao_w"], static["ao_b"],
            static["attn_ln_g"], static["attn_ln_b"],
            static["f1_w"], static["f1_b"], static["f2_w"], static["f2_b"],
            static["out_ln_g"], static["out_ln_b"],
            static["rowsel"], static["gsel"])

    in_specs = [
        _inv((B * L, 1)), _inv((1, B * L)),
        _inv((V, H)), _inv((B * L, H)), _inv((2, H)), _inv((B * L, B * L)),
        _inv((1, H)), _inv((1, H)),
        _lyr((H, 3 * H)), _lyr((1, 3 * H)),
        _lyr((H, H)), _lyr((1, H)), _lyr((1, H)), _lyr((1, H)),
        _lyr((H, FFN)), _lyr((1, FFN)), _lyr((FFN, H)), _lyr((1, H)),
        _lyr((1, H)), _lyr((1, H)),
        _inv((MAX_WORD_LEN * B, B * L)), _inv((MAX_WORD_LEN * H, NUM_WORDS)),
    ]

    word_scores = pl.pallas_call(
        _fused_bert_kernel,
        out_shape=jax.ShapeDtypeStruct((B, NUM_WORDS), jnp.float32),
        grid_spec=pltpu.PrefetchScalarGridSpec(
            num_scalar_prefetch=0,
            grid=(N_LAYERS,),
            in_specs=in_specs,
            out_specs=pl.BlockSpec((B, NUM_WORDS), lambda l: (0, 0)),
            scratch_shapes=[pltpu.VMEM((B * L, H), jnp.float32)]),
        compiler_params=pltpu.CompilerParams(
            dimension_semantics=("arbitrary",)),
    )(*args)
    return {"pred": word_scores}


# ------------------------- pure-JAX reference ----------------------------------
def forward_ref(params, word2bpes_wn, input_ids):
    type_ids = (jnp.flip(jnp.cumsum(jnp.flip(input_ids, axis=1), axis=-1), axis=1)
                == 0).astype(jnp.int32)
    attn_mask = (input_ids != PAD_ID).astype(jnp.float32)

    def ln(x, g, b):
        mu = x.mean(-1, keepdims=True)
        var = ((x - mu) ** 2).mean(-1, keepdims=True)
        return (x - mu) * jax.lax.rsqrt(var + LN_EPS) * g + b

    def gelu(y):
        return 0.5 * y * (1.0 + jnp.tanh(0.7978845608028654
                                         * (y + 0.044715 * y * y * y)))

    h = (params["word_emb"][input_ids]
         + params["pos_emb"][jnp.arange(L)][None, :, :]
         + params["type_emb"][type_ids])                                   # [B,L,H]
    x = ln(h, params["emb_ln_g"][0], params["emb_ln_b"][0])
    ext_bias = (1.0 - attn_mask)[:, None, None, :] * -10000.0              # [B,1,1,L]
    scale = 1.0 / math.sqrt(D_HEAD)

    for l in range(N_LAYERS):
        qkv = (jnp.einsum("blh,hf->blf", x, params["qkv_w"][l], precision=PREC)
               + params["qkv_b"][l, 0])
        q, k, v = jnp.split(qkv, 3, axis=-1)

        def heads(t):
            return t.reshape(B, L, N_HEADS, D_HEAD).transpose(0, 2, 1, 3)

        q, k, v = heads(q), heads(k), heads(v)
        s = jnp.einsum("bhqd,bhkd->bhqk", q, k, precision=PREC) * scale + ext_bias
        p = jax.nn.softmax(s, axis=-1)
        ctx = jnp.einsum("bhqk,bhkd->bhqd", p, v, precision=PREC)
        ctx = ctx.transpose(0, 2, 1, 3).reshape(B, L, H)
        ao = (jnp.einsum("blh,hf->blf", ctx, params["ao_w"][l], precision=PREC)
              + params["ao_b"][l, 0])
        x = ln(x + ao, params["attn_ln_g"][l, 0], params["attn_ln_b"][l, 0])
        f = gelu(jnp.einsum("blh,hf->blf", x, params["f1_w"][l], precision=PREC)
                 + params["f1_b"][l, 0])
        f = (jnp.einsum("blf,fh->blh", f, params["f2_w"][l], precision=PREC)
             + params["f2_b"][l, 0])
        x = ln(x + f, params["out_ln_g"][l, 0], params["out_ln_b"][l, 0])

    bpe = x[:, 1:MAX_WORD_LEN + 1]                                         # [B,W,H]
    logits = jnp.einsum("bwh,vh->bwv", bpe, params["word_emb"], precision=PREC)
    idx = jnp.broadcast_to(word2bpes_wn[None], (B,) + word2bpes_wn.shape)
    return jnp.take_along_axis(logits, idx, axis=-1).sum(axis=1)


# ------------------------------ params ----------------------------------------
def init_params(key):
    keys = iter(jax.random.split(key, 64))

    def w(shape, scale=0.02):
        return (scale * jax.random.normal(next(keys), shape)).astype(jnp.float32)

    return {
        "word_emb": w((V, H)),
        "pos_emb": w((MAX_POS, H)),
        "type_emb": w((2, H)),
        "emb_ln_g": 1.0 + w((1, H), 0.01),
        "emb_ln_b": w((1, H), 0.01),
        "qkv_w": w((N_LAYERS, H, 3 * H)),
        "qkv_b": w((N_LAYERS, 1, 3 * H), 0.01),
        "ao_w": w((N_LAYERS, H, H)),
        "ao_b": w((N_LAYERS, 1, H), 0.01),
        "attn_ln_g": 1.0 + w((N_LAYERS, 1, H), 0.01),
        "attn_ln_b": w((N_LAYERS, 1, H), 0.01),
        "f1_w": w((N_LAYERS, H, FFN)),
        "f1_b": w((N_LAYERS, 1, FFN), 0.01),
        "f2_w": w((N_LAYERS, FFN, H)),
        "f2_b": w((N_LAYERS, 1, H), 0.01),
        "out_ln_g": 1.0 + w((N_LAYERS, 1, H), 0.01),
        "out_ln_b": w((N_LAYERS, 1, H), 0.01),
    }


# -------------------------------- main -----------------------------------------
if __name__ == "__main__":
    key = jax.random.PRNGKey(0)
    k_par, k_in, k_w2b = jax.random.split(key, 3)

    params = init_params(k_par)

    # word2bpes is [NUM_WORDS, MAX_WORD_LEN] in the PyTorch ctor; the registered
    # buffer is its transpose [1, W, N] -> keep the squeezed [W, N] layout.
    word2bpes_nw = jax.random.randint(k_w2b, (NUM_WORDS, MAX_WORD_LEN), 0, V,
                                      dtype=jnp.int32)
    word2bpes_wn = word2bpes_nw.T                                          # [W, N]

    input_ids = jax.random.randint(k_in, (B, L), 1, V, dtype=jnp.int32)
    lengths = jnp.array([5, 7])
    input_ids = jnp.where(jnp.arange(L)[None, :] < lengths[:, None],
                          input_ids, PAD_ID)        # trailing pads -> type_ids=1

    # model-constant tensors: computed once, NOT per forward call
    static = jax.block_until_ready(precompute_static(params, word2bpes_wn))

    pred = jax.block_until_ready(forward_pallas(static, input_ids)["pred"])
    assert pred.shape == (B, NUM_WORDS)

    ref = forward_ref(params, word2bpes_wn, input_ids)
    max_err = float(jnp.max(jnp.abs(pred - ref)))
    # bf16 MXU operands (f32 accumulation) vs the f32-HIGHEST reference.
    if not max_err < 2e-2:
        raise AssertionError(f"Pallas output mismatch vs reference: {max_err}")

    print("KERNEL_OK")
</pallas_src>

<mosaic_0001>
module attributes {stable_mosaic.version = 11 : i64} {
  func.func @_fused_bert_kernel(%arg0: i32, %arg1: memref<16x1xi32, #tpu.memory_space<vmem>>, %arg2: memref<1x16xi32, #tpu.memory_space<vmem>>, %arg3: memref<64x128xf32, #tpu.memory_space<vmem>>, %arg4: memref<16x128xf32, #tpu.memory_space<vmem>>, %arg5: memref<2x128xf32, #tpu.memory_space<vmem>>, %arg6: memref<16x16xf32, #tpu.memory_space<vmem>>, %arg7: memref<1x128xf32, #tpu.memory_space<vmem>>, %arg8: memref<1x128xf32, #tpu.memory_space<vmem>>, %arg9: memref<1x128x384xbf16, #tpu.memory_space<vmem>>, %arg10: memref<1x1x384xf32, #tpu.memory_space<vmem>>, %arg11: memref<1x128x128xbf16, #tpu.memory_space<vmem>>, %arg12: memref<1x1x128xf32, #tpu.memory_space<vmem>>, %arg13: memref<1x1x128xf32, #tpu.memory_space<vmem>>, %arg14: memref<1x1x128xf32, #tpu.memory_space<vmem>>, %arg15: memref<1x128x512xbf16, #tpu.memory_space<vmem>>, %arg16: memref<1x1x512xf32, #tpu.memory_space<vmem>>, %arg17: memref<1x512x128xbf16, #tpu.memory_space<vmem>>, %arg18: memref<1x1x128xf32, #tpu.memory_space<vmem>>, %arg19: memref<1x1x128xf32, #tpu.memory_space<vmem>>, %arg20: memref<1x1x128xf32, #tpu.memory_space<vmem>>, %arg21: memref<8x16xf32, #tpu.memory_space<vmem>>, %arg22: memref<512x256xbf16, #tpu.memory_space<vmem>>, %arg23: memref<2x256xf32, #tpu.memory_space<vmem>>, %arg24: memref<16x128xf32, #tpu.memory_space<vmem>>) attributes {dimension_semantics = [#tpu.dimension_semantics<arbitrary>], iteration_bounds = array<i64: 2>, scalar_prefetch = 0 : i64, scratch_operands = 1 : i64, tpu.core_type = #tpu.core_type<tc>, window_params = [{pipeline_mode = #tpu.pipeline_mode<synchronous>, transform_indices = @transform_0, window_bounds = array<i64: 16, 1>}, {pipeline_mode = #tpu.pipeline_mode<synchronous>, transform_indices = @transform_1, window_bounds = array<i64: 1, 16>}, {pipeline_mode = #tpu.pipeline_mode<synchronous>, transform_indices = @transform_2, window_bounds = array<i64: 64, 128>}, {pipeline_mode = #tpu.pipeline_mode<synchronous>, transform_indices = @transform_3, window_bounds = array<i64: 16, 128>}, {pipeline_mode = #tpu.pipeline_mode<synchronous>, transform_indices = @transform_4, window_bounds = array<i64: 2, 128>}, {pipeline_mode = #tpu.pipeline_mode<synchronous>, transform_indices = @transform_5, window_bounds = array<i64: 16, 16>}, {pipeline_mode = #tpu.pipeline_mode<synchronous>, transform_indices = @transform_6, window_bounds = array<i64: 1, 128>}, {pipeline_mode = #tpu.pipeline_mode<synchronous>, transform_indices = @transform_7, window_bounds = array<i64: 1, 128>}, {transform_indices = @transform_8, window_bounds = array<i64: 1, 128, 384>}, {transform_indices = @transform_9, window_bounds = array<i64: 1, 1, 384>}, {transform_indices = @transform_10, window_bounds = array<i64: 1, 128, 128>}, {transform_indices = @transform_11, window_bounds = array<i64: 1, 1, 128>}, {transform_indices = @transform_12, window_bounds = array<i64: 1, 1, 128>}, {transform_indices = @transform_13, window_bounds = array<i64: 1, 1, 128>}, {transform_indices = @transform_14, window_bounds = array<i64: 1, 128, 512>}, {transform_indices = @transform_15, window_bounds = array<i64: 1, 1, 512>}, {transform_indices = @transform_16, window_bounds = array<i64: 1, 512, 128>}, {transform_indices = @transform_17, window_bounds = array<i64: 1, 1, 128>}, {transform_indices = @transform_18, window_bounds = array<i64: 1, 1, 128>}, {transform_indices = @transform_19, window_bounds = array<i64: 1, 1, 128>}, {pipeline_mode = #tpu.pipeline_mode<synchronous>, transform_indices = @transform_20, window_bounds = array<i64: 8, 16>}, {pipeline_mode = #tpu.pipeline_mode<synchronous>, transform_indices = @transform_21, window_bounds = array<i64: 512, 256>}, {pipeline_mode = #tpu.pipeline_mode<synchronous>, transform_indices = @transform_22, window_bounds = array<i64: 2, 256>}]} {
    %c0 = arith.constant 0 : index
    %c0_0 = arith.constant 0 : index
    %0 = vector.load %arg2[%c0, %c0_0] : memref<1x16xi32, #tpu.memory_space<vmem>>, vector<1x16xi32>
    %c0_i32 = arith.constant 0 : i32
    %1 = vector.broadcast %c0_i32 : i32 to vector<1x16xi32>
    %2 = arith.cmpi ne, %0, %1 : vector<1x16xi32>
    %c0_i32_1 = arith.constant 0 : i32
    %3 = arith.cmpi eq, %arg0, %c0_i32_1 : i32
    %4 = arith.extui %3 : i1 to i32
    %c0_i32_2 = arith.constant 0 : i32
    %5 = arith.cmpi ne, %4, %c0_i32_2 : i32
    scf.if %5 {
      %c0_71 = arith.constant 0 : index
      %c0_72 = arith.constant 0 : index
      %166 = vector.load %arg1[%c0_71, %c0_72] : memref<16x1xi32, #tpu.memory_space<vmem>>, vector<16x1xi32>
      %167 = tpu.iota {dimensions = array<i32: 1>} : vector<16x64xi32>
      %168 = vector.broadcast %166 : vector<16x1xi32> to vector<16x64xi32>
      %169 = arith.cmpi eq, %168, %167 : vector<16x64xi32>
      %170 = arith.extui %169 : vector<16x64xi1> to vector<16x64xi32>
      %171 = arith.sitofp %170 : vector<16x64xi32> to vector<16x64xf32>
      %c0_73 = arith.constant 0 : index
      %c0_74 = arith.constant 0 : index
      %172 = vector.load %arg3[%c0_73, %c0_74] : memref<64x128xf32, #tpu.memory_space<vmem>>, vector<64x128xf32>
      %cst_75 = arith.constant dense<0.000000e+00> : vector<16x128xf32>
      %173 = tpu.matmul %171, %172, %cst_75 {dimension_numbers = #tpu.dot_dimension_numbers<[1], [0], [0], [1], [0, 0, 1, 1], [], []>} : vector<16x64xf32>, vector<64x128xf32>, vector<16x128xf32> -> vector<16x128xf32>
      %c0_76 = arith.constant 0 : index
      %c0_77 = arith.constant 0 : index
      %174 = vector.load %arg4[%c0_76, %c0_77] : memref<16x128xf32, #tpu.memory_space<vmem>>, vector<16x128xf32>
      %175 = arith.addf %173, %174 : vector<16x128xf32>
      %c0_78 = arith.constant 0 : index
      %c0_79 = arith.constant 0 : index
      %176 = vector.load %arg6[%c0_78, %c0_79] : memref<16x16xf32, #tpu.memory_space<vmem>>, vector<16x16xf32>
      %177 = arith.extui %2 : vector<1x16xi1> to vector<1x16xi32>
      %178 = arith.sitofp %177 : vector<1x16xi32> to vector<1x16xf32>
      %179 = vector.broadcast %178 : vector<1x16xf32> to vector<16x16xf32>
      %180 = arith.mulf %176, %179 : vector<16x16xf32>
      %cst_80 = arith.constant dense<0.000000e+00> : vector<16xf32>
      %181 = vector.multi_reduction <add>, %180, %cst_80 [1] : vector<16x16xf32> to vector<16xf32>
      %182 = vector.shape_cast %181 : vector<16xf32> to vector<16x1xf32>
      %cst_81 = arith.constant 0.000000e+00 : f32
      %183 = vector.broadcast %cst_81 : f32 to vector<16x1xf32>
      %184 = arith.cmpf oeq, %182, %183 : vector<16x1xf32>
      %185 = arith.extui %184 : vector<16x1xi1> to vector<16x1xi32>
      %186 = arith.sitofp %185 : vector<16x1xi32> to vector<16x1xf32>
      %c0_82 = arith.constant 0 : index
      %c0_83 = arith.constant 0 : index
      %187 = vector.load %arg5[%c0_82, %c0_83] : memref<2x128xf32, #tpu.memory_space<vmem>>, vector<2x128xf32>
      %188 = vector.extract_strided_slice %187 {offsets = [0, 0], sizes = [1, 128], strides = [1, 1]} : vector<2x128xf32> to vector<1x128xf32>
      %189 = vector.broadcast %188 : vector<1x128xf32> to vector<16x128xf32>
      %190 = arith.addf %175, %189 : vector<16x128xf32>
      %191 = vector.extract_strided_slice %187 {offsets = [1, 0], sizes = [1, 128], strides = [1, 1]} : vector<2x128xf32> to vector<1x128xf32>
      %192 = vector.extract_strided_slice %187 {offsets = [0, 0], sizes = [1, 128], strides = [1, 1]} : vector<2x128xf32> to vector<1x128xf32>
      %193 = arith.subf %191, %192 : vector<1x128xf32>
      %194 = vector.broadcast %186 : vector<16x1xf32> to vector<16x128xf32>
      %195 = vector.broadcast %193 : vector<1x128xf32> to vector<16x128xf32>
      %196 = arith.mulf %194, %195 : vector<16x128xf32>
      %197 = arith.addf %190, %196 : vector<16x128xf32>
      %c0_84 = arith.constant 0 : index
      %c0_85 = arith.constant 0 : index
      %198 = vector.load %arg7[%c0_84, %c0_85] : memref<1x128xf32, #tpu.memory_space<vmem>>, vector<1x128xf32>
      %c0_86 = arith.constant 0 : index
      %c0_87 = arith.constant 0 : index
      %199 = vector.load %arg8[%c0_86, %c0_87] : memref<1x128xf32, #tpu.memory_space<vmem>>, vector<1x128xf32>
      %cst_88 = arith.constant dense<0.000000e+00> : vector<16xf32>
      %200 = vector.multi_reduction <add>, %197, %cst_88 [1] : vector<16x128xf32> to vector<16xf32>
      %201 = vector.shape_cast %200 : vector<16xf32> to vector<16x1xf32>
      %cst_89 = arith.constant 1.280000e+02 : f32
      %202 = vector.broadcast %cst_89 : f32 to vector<16x1xf32>
      %203 = arith.divf %201, %202 : vector<16x1xf32>
      %204 = vector.broadcast %203 : vector<16x1xf32> to vector<16x128xf32>
      %205 = arith.subf %197, %204 : vector<16x128xf32>
      %206 = vector.broadcast %203 : vector<16x1xf32> to vector<16x128xf32>
      %207 = arith.subf %197, %206 : vector<16x128xf32>
      %208 = arith.mulf %205, %207 : vector<16x128xf32>
      %cst_90 = arith.constant dense<0.000000e+00> : vector<16xf32>
      %209 = vector.multi_reduction <add>, %208, %cst_90 [1] : vector<16x128xf32> to vector<16xf32>
      %210 = vector.shape_cast %209 : vector<16xf32> to vector<16x1xf32>
      %cst_91 = arith.constant 1.280000e+02 : f32
      %211 = vector.broadcast %cst_91 : f32 to vector<16x1xf32>
      %212 = arith.divf %210, %211 : vector<16x1xf32>
      %213 = vector.broadcast %203 : vector<16x1xf32> to vector<16x128xf32>
      %214 = arith.subf %197, %213 : vector<16x128xf32>
      %cst_92 = arith.constant 9.99999996E-13 : f32
      %215 = vector.broadcast %cst_92 : f32 to vector<16x1xf32>
      %216 = arith.addf %212, %215 : vector<16x1xf32>
      %217 = math.rsqrt %216 : vector<16x1xf32>
      %218 = vector.broadcast %217 : vector<16x1xf32> to vector<16x128xf32>
      %219 = arith.mulf %214, %218 : vector<16x128xf32>
      %220 = vector.broadcast %198 : vector<1x128xf32> to vector<16x128xf32>
      %221 = arith.mulf %219, %220 : vector<16x128xf32>
      %222 = vector.broadcast %199 : vector<1x128xf32> to vector<16x128xf32>
      %223 = arith.addf %221, %222 : vector<16x128xf32>
      %c0_93 = arith.constant 0 : index
      %c0_94 = arith.constant 0 : index
      %224 = vector.load %arg24[%c0_93, %c0_94] : memref<16x128xf32, #tpu.memory_space<vmem>>, vector<16x128xf32>
      tpu.vector_store %arg24[%c0_93, %c0_94], %223 {strides = array<i32>} : memref<16x128xf32, #tpu.memory_space<vmem>>, vector<16x128xf32>,
    } else {
    }
    %6 = tpu.iota {dimensions = array<i32: 0>} : vector<32x32xi32>
    %7 = tpu.iota {dimensions = array<i32: 1>} : vector<32x32xi32>
    %c4_i32 = arith.constant 4 : i32
    %8 = vector.broadcast %c4_i32 : i32 to vector<32x32xi32>
    %9 = arith.shrsi %6, %8 : vector<32x32xi32>
    %c4_i32_3 = arith.constant 4 : i32
    %10 = vector.broadcast %c4_i32_3 : i32 to vector<32x32xi32>
    %11 = arith.shrsi %7, %10 : vector<32x32xi32>
    %12 = arith.cmpi eq, %9, %11 : vector<32x32xi32>
    %c15_i32 = arith.constant 15 : i32
    %13 = vector.broadcast %c15_i32 : i32 to vector<32x32xi32>
    %14 = arith.andi %6, %13 : vector<32x32xi32>
    %c3_i32 = arith.constant 3 : i32
    %15 = vector.broadcast %c3_i32 : i32 to vector<32x32xi32>
    %16 = arith.shrsi %14, %15 : vector<32x32xi32>
    %c15_i32_4 = arith.constant 15 : i32
    %17 = vector.broadcast %c15_i32_4 : i32 to vector<32x32xi32>
    %18 = arith.andi %7, %17 : vector<32x32xi32>
    %c3_i32_5 = arith.constant 3 : i32
    %19 = vector.broadcast %c3_i32_5 : i32 to vector<32x32xi32>
    %20 = arith.shrsi %18, %19 : vector<32x32xi32>
    %21 = arith.cmpi eq, %16, %20 : vector<32x32xi32>
    %22 = tpu.concatenate %0, %0 in 1 : vector<1x16xi32>, vector<1x16xi32> -> vector<1x32xi32>
    %c0_i32_6 = arith.constant 0 : i32
    %23 = vector.broadcast %c0_i32_6 : i32 to vector<1x32xi32>
    %24 = arith.cmpi ne, %22, %23 : vector<1x32xi32>
    %25 = arith.andi %12, %21 : vector<32x32xi1>
    %26 = vector.broadcast %24 : vector<1x32xi1> to vector<32x32xi1>
    %27 = arith.andi %25, %26 : vector<32x32xi1>
    %cst = arith.constant 0.000000e+00 : f32
    %cst_7 = arith.constant -1.000000e+04 : f32
    %28 = vector.broadcast %cst : f32 to vector<32x32xf32>
    %29 = vector.broadcast %cst_7 : f32 to vector<32x32xf32>
    %30 = arith.select %27, %28, %29 : vector<32x32xi1>, vector<32x32xf32>
    %c0_8 = arith.constant 0 : index
    %c0_9 = arith.constant 0 : index
    %31 = vector.load %arg24[%c0_8, %c0_9] : memref<16x128xf32, #tpu.memory_space<vmem>>, vector<16x128xf32>
    %32 = arith.truncf %31 : vector<16x128xf32> to vector<16x128xbf16>
    %c0_10 = arith.constant 0 : index
    %c0_11 = arith.constant 0 : index
    %c0_12 = arith.constant 0 : index
    %33 = vector.load %arg9[%c0_10, %c0_11, %c0_12] : memref<1x128x384xbf16, #tpu.memory_space<vmem>>, vector<1x128x384xbf16>
    %34 = vector.shape_cast %33 : vector<1x128x384xbf16> to vector<128x384xbf16>
    %cst_13 = arith.constant dense<0.000000e+00> : vector<16x384xf32>
    %35 = tpu.matmul %32, %34, %cst_13 {dimension_numbers = #tpu.dot_dimension_numbers<[1], [0], [0], [1], [0, 0, 1, 1], [], []>} : vector<16x128xbf16>, vector<128x384xbf16>, vector<16x384xf32> -> vector<16x384xf32>
    %c0_14 = arith.constant 0 : index
    %c0_15 = arith.constant 0 : index
    %c0_16 = arith.constant 0 : index
    %36 = vector.load %arg10[%c0_14, %c0_15, %c0_16] : memref<1x1x384xf32, #tpu.memory_space<vmem>>, vector<1x1x384xf32>
    %37 = vector.shape_cast %36 : vector<1x1x384xf32> to vector<1x384xf32>
    %38 = vector.broadcast %37 : vector<1x384xf32> to vector<16x384xf32>
    %39 = arith.addf %35, %38 : vector<16x384xf32>
    %40 = vector.extract_strided_slice %39 {offsets = [0, 0], sizes = [16, 64], strides = [1, 1]} : vector<16x384xf32> to vector<16x64xf32>
    %41 = vector.extract_strided_slice %39 {offsets = [0, 64], sizes = [16, 64], strides = [1, 1]} : vector<16x384xf32> to vector<16x64xf32>
    %42 = tpu.concatenate %40, %41 in 0 : vector<16x64xf32>, vector<16x64xf32> -> vector<32x64xf32>
    %43 = arith.truncf %42 : vector<32x64xf32> to vector<32x64xbf16>
    %44 = vector.extract_strided_slice %39 {offsets = [0, 128], sizes = [16, 64], strides = [1, 1]} : vector<16x384xf32> to vector<16x64xf32>
    %45 = vector.extract_strided_slice %39 {offsets = [0, 192], sizes = [16, 64], strides = [1, 1]} : vector<16x384xf32> to vector<16x64xf32>
    %46 = tpu.concatenate %44, %45 in 0 : vector<16x64xf32>, vector<16x64xf32> -> vector<32x64xf32>
    %47 = arith.truncf %46 : vector<32x64xf32> to vector<32x64xbf16>
    %48 = vector.extract_strided_slice %39 {offsets = [0, 256], sizes = [16, 64], strides = [1, 1]} : vector<16x384xf32> to vector<16x64xf32>
    %49 = vector.extract_strided_slice %39 {offsets = [0, 320], sizes = [16, 64], strides = [1, 1]} : vector<16x384xf32> to vector<16x64xf32>
    %50 = tpu.concatenate %48, %49 in 0 : vector<16x64xf32>, vector<16x64xf32> -> vector<32x64xf32>
    %51 = arith.truncf %50 : vector<32x64xf32> to vector<32x64xbf16>
    %cst_17 = arith.constant dense<0.000000e+00> : vector<32x32xf32>
    %52 = tpu.matmul %43, %47, %cst_17 {dimension_numbers = #tpu.dot_dimension_numbers<[1], [1], [0], [0], [0, 0, 1, 0], [], []>} : vector<32x64xbf16>, vector<32x64xbf16>, vector<32x32xf32> -> vector<32x32xf32>
    %cst_18 = arith.constant 1.250000e-01 : f32
    %53 = vector.broadcast %cst_18 : f32 to vector<32x32xf32>
    %54 = arith.mulf %52, %53 : vector<32x32xf32>
    %55 = arith.addf %54, %30 : vector<32x32xf32>
    %56 = math.exp %55 : vector<32x32xf32>
    %cst_19 = arith.constant dense<0.000000e+00> : vector<32xf32>
    %57 = vector.multi_reduction <add>, %56, %cst_19 [1] : vector<32x32xf32> to vector<32xf32>
    %58 = vector.shape_cast %57 : vector<32xf32> to vector<32x1xf32>
    %59 = tpu.reciprocal %58 {approx = true} : vector<32x1xf32> -> vector<32x1xf32>
    %60 = vector.broadcast %59 : vector<32x1xf32> to vector<32x32xf32>
    %61 = arith.mulf %56, %60 : vector<32x32xf32>
    %62 = arith.truncf %61 : vector<32x32xf32> to vector<32x32xbf16>
    %cst_20 = arith.constant dense<0.000000e+00> : vector<32x64xf32>
    %63 = tpu.matmul %62, %51, %cst_20 {dimension_numbers = #tpu.dot_dimension_numbers<[1], [0], [0], [1], [0, 0, 1, 1], [], []>} : vector<32x32xbf16>, vector<32x64xbf16>, vector<32x64xf32> -> vector<32x64xf32>
    %64 = vector.extract_strided_slice %63 {offsets = [0, 0], sizes = [16, 64], strides = [1, 1]} : vector<32x64xf32> to vector<16x64xf32>
    %65 = vector.extract_strided_slice %63 {offsets = [16, 0], sizes = [16, 64], strides = [1, 1]} : vector<32x64xf32> to vector<16x64xf32>
    %66 = tpu.concatenate %64, %65 in 1 : vector<16x64xf32>, vector<16x64xf32> -> vector<16x128xf32>
    %67 = arith.truncf %66 : vector<16x128xf32> to vector<16x128xbf16>
    %c0_21 = arith.constant 0 : index
    %c0_22 = arith.constant 0 : index
    %c0_23 = arith.constant 0 : index
    %68 = vector.load %arg11[%c0_21, %c0_22, %c0_23] : memref<1x128x128xbf16, #tpu.memory_space<vmem>>, vector<1x128x128xbf16>
    %69 = vector.shape_cast %68 : vector<1x128x128xbf16> to vector<128x128xbf16>
    %cst_24 = arith.constant dense<0.000000e+00> : vector<16x128xf32>
    %70 = tpu.matmul %67, %69, %cst_24 {dimension_numbers = #tpu.dot_dimension_numbers<[1], [0], [0], [1], [0, 0, 1, 1], [], []>} : vector<16x128xbf16>, vector<128x128xbf16>, vector<16x128xf32> -> vector<16x128xf32>
    %c0_25 = arith.constant 0 : index
    %c0_26 = arith.constant 0 : index
    %c0_27 = arith.constant 0 : index
    %71 = vector.load %arg12[%c0_25, %c0_26, %c0_27] : memref<1x1x128xf32, #tpu.memory_space<vmem>>, vector<1x1x128xf32>
    %72 = vector.shape_cast %71 : vector<1x1x128xf32> to vector<1x128xf32>
    %73 = vector.broadcast %72 : vector<1x128xf32> to vector<16x128xf32>
    %74 = arith.addf %70, %73 : vector<16x128xf32>
    %75 = arith.addf %31, %74 : vector<16x128xf32>
    %c0_28 = arith.constant 0 : index
    %c0_29 = arith.constant 0 : index
    %c0_30 = arith.constant 0 : index
    %76 = vector.load %arg13[%c0_28, %c0_29, %c0_30] : memref<1x1x128xf32, #tpu.memory_space<vmem>>, vector<1x1x128xf32>
    %77 = vector.shape_cast %76 : vector<1x1x128xf32> to vector<1x128xf32>
    %c0_31 = arith.constant 0 : index
    %c0_32 = arith.constant 0 : index
    %c0_33 = arith.constant 0 : index
    %78 = vector.load %arg14[%c0_31, %c0_32, %c0_33] : memref<1x1x128xf32, #tpu.memory_space<vmem>>, vector<1x1x128xf32>
    %79 = vector.shape_cast %78 : vector<1x1x128xf32> to vector<1x128xf32>
    %cst_34 = arith.constant dense<0.000000e+00> : vector<16xf32>
    %80 = vector.multi_reduction <add>, %75, %cst_34 [1] : vector<16x128xf32> to vector<16xf32>
    %81 = vector.shape_cast %80 : vector<16xf32> to vector<16x1xf32>
    %cst_35 = arith.constant 1.280000e+02 : f32
    %82 = vector.broadcast %cst_35 : f32 to vector<16x1xf32>
    %83 = arith.divf %81, %82 : vector<16x1xf32>
    %84 = vector.broadcast %83 : vector<16x1xf32> to vector<16x128xf32>
    %85 = arith.subf %75, %84 : vector<16x128xf32>
    %86 = vector.broadcast %83 : vector<16x1xf32> to vector<16x128xf32>
    %87 = arith.subf %75, %86 : vector<16x128xf32>
    %88 = arith.mulf %85, %87 : vector<16x128xf32>
    %cst_36 = arith.constant dense<0.000000e+00> : vector<16xf32>
    %89 = vector.multi_reduction <add>, %88, %cst_36 [1] : vector<16x128xf32> to vector<16xf32>
    %90 = vector.shape_cast %89 : vector<16xf32> to vector<16x1xf32>
    %cst_37 = arith.constant 1.280000e+02 : f32
    %91 = vector.broadcast %cst_37 : f32 to vector<16x1xf32>
    %92 = arith.divf %90, %91 : vector<16x1xf32>
    %93 = vector.broadcast %83 : vector<16x1xf32> to vector<16x128xf32>
    %94 = arith.subf %75, %93 : vector<16x128xf32>
    %cst_38 = arith.constant 9.99999996E-13 : f32
    %95 = vector.broadcast %cst_38 : f32 to vector<16x1xf32>
    %96 = arith.addf %92, %95 : vector<16x1xf32>
    %97 = math.rsqrt %96 : vector<16x1xf32>
    %98 = vector.broadcast %97 : vector<16x1xf32> to vector<16x128xf32>
    %99 = arith.mulf %94, %98 : vector<16x128xf32>
    %100 = vector.broadcast %77 : vector<1x128xf32> to vector<16x128xf32>
    %101 = arith.mulf %99, %100 : vector<16x128xf32>
    %102 = vector.broadcast %79 : vector<1x128xf32> to vector<16x128xf32>
    %103 = arith.addf %101, %102 : vector<16x128xf32>
    %104 = arith.truncf %103 : vector<16x128xf32> to vector<16x128xbf16>
    %c0_39 = arith.constant 0 : index
    %c0_40 = arith.constant 0 : index
    %c0_41 = arith.constant 0 : index
    %105 = vector.load %arg15[%c0_39, %c0_40, %c0_41] : memref<1x128x512xbf16, #tpu.memory_space<vmem>>, vector<1x128x512xbf16>
    %106 = vector.shape_cast %105 : vector<1x128x512xbf16> to vector<128x512xbf16>
    %cst_42 = arith.constant dense<0.000000e+00> : vector<16x512xf32>
    %107 = tpu.matmul %104, %106, %cst_42 {dimension_numbers = #tpu.dot_dimension_numbers<[1], [0], [0], [1], [0, 0, 1, 1], [], []>} : vector<16x128xbf16>, vector<128x512xbf16>, vector<16x512xf32> -> vector<16x512xf32>
    %c0_43 = arith.constant 0 : index
    %c0_44 = arith.constant 0 : index
    %c0_45 = arith.constant 0 : index
    %108 = vector.load %arg16[%c0_43, %c0_44, %c0_45] : memref<1x1x512xf32, #tpu.memory_space<vmem>>, vector<1x1x512xf32>
    %109 = vector.shape_cast %108 : vector<1x1x512xf32> to vector<1x512xf32>
    %110 = vector.broadcast %109 : vector<1x512xf32> to vector<16x512xf32>
    %111 = arith.addf %107, %110 : vector<16x512xf32>
    %cst_46 = arith.constant 5.000000e-01 : f32
    %112 = vector.broadcast %cst_46 : f32 to vector<16x512xf32>
    %113 = arith.mulf %112, %111 : vector<16x512xf32>
    %cst_47 = arith.constant 4.471500e-02 : f32
    %114 = vector.broadcast %cst_47 : f32 to vector<16x512xf32>
    %115 = arith.mulf %114, %111 : vector<16x512xf32>
    %116 = arith.mulf %115, %111 : vector<16x512xf32>
    %117 = arith.mulf %116, %111 : vector<16x512xf32>
    %118 = arith.addf %111, %117 : vector<16x512xf32>
    %cst_48 = arith.constant 0.797884583 : f32
    %119 = vector.broadcast %cst_48 : f32 to vector<16x512xf32>
    %120 = arith.mulf %119, %118 : vector<16x512xf32>
    %121 = math.tanh %120 : vector<16x512xf32>
    %cst_49 = arith.constant 1.000000e+00 : f32
    %122 = vector.broadcast %cst_49 : f32 to vector<16x512xf32>
    %123 = arith.addf %122, %121 : vector<16x512xf32>
    %124 = arith.mulf %113, %123 : vector<16x512xf32>
    %125 = arith.truncf %124 : vector<16x512xf32> to vector<16x512xbf16>
    %c0_50 = arith.constant 0 : index
    %c0_51 = arith.constant 0 : index
    %c0_52 = arith.constant 0 : index
    %126 = vector.load %arg17[%c0_50, %c0_51, %c0_52] : memref<1x512x128xbf16, #tpu.memory_space<vmem>>, vector<1x512x128xbf16>
    %127 = vector.shape_cast %126 : vector<1x512x128xbf16> to vector<512x128xbf16>
    %cst_53 = arith.constant dense<0.000000e+00> : vector<16x128xf32>
    %128 = tpu.matmul %125, %127, %cst_53 {dimension_numbers = #tpu.dot_dimension_numbers<[1], [0], [0], [1], [0, 0, 1, 1], [], []>} : vector<16x512xbf16>, vector<512x128xbf16>, vector<16x128xf32> -> vector<16x128xf32>
    %c0_54 = arith.constant 0 : index
    %c0_55 = arith.constant 0 : index
    %c0_56 = arith.constant 0 : index
    %129 = vector.load %arg18[%c0_54, %c0_55, %c0_56] : memref<1x1x128xf32, #tpu.memory_space<vmem>>, vector<1x1x128xf32>
    %130 = vector.shape_cast %129 : vector<1x1x128xf32> to vector<1x128xf32>
    %131 = vector.broadcast %130 : vector<1x128xf32> to vector<16x128xf32>
    %132 = arith.addf %128, %131 : vector<16x128xf32>
    %133 = arith.addf %103, %132 : vector<16x128xf32>
    %c0_57 = arith.constant 0 : index
    %c0_58 = arith.constant 0 : index
    %c0_59 = arith.constant 0 : index
    %134 = vector.load %arg19[%c0_57, %c0_58, %c0_59] : memref<1x1x128xf32, #tpu.memory_space<vmem>>, vector<1x1x128xf32>
    %135 = vector.shape_cast %134 : vector<1x1x128xf32> to vector<1x128xf32>
    %c0_60 = arith.constant 0 : index
    %c0_61 = arith.constant 0 : index
    %c0_62 = arith.constant 0 : index
    %136 = vector.load %arg20[%c0_60, %c0_61, %c0_62] : memref<1x1x128xf32, #tpu.memory_space<vmem>>, vector<1x1x128xf32>
    %137 = vector.shape_cast %136 : vector<1x1x128xf32> to vector<1x128xf32>
    %cst_63 = arith.constant dense<0.000000e+00> : vector<16xf32>
    %138 = vector.multi_reduction <add>, %133, %cst_63 [1] : vector<16x128xf32> to vector<16xf32>
    %139 = vector.shape_cast %138 : vector<16xf32> to vector<16x1xf32>
    %cst_64 = arith.constant 1.280000e+02 : f32
    %140 = vector.broadcast %cst_64 : f32 to vector<16x1xf32>
    %141 = arith.divf %139, %140 : vector<16x1xf32>
    %142 = vector.broadcast %141 : vector<16x1xf32> to vector<16x128xf32>
    %143 = arith.subf %133, %142 : vector<16x128xf32>
    %144 = vector.broadcast %141 : vector<16x1xf32> to vector<16x128xf32>
    %145 = arith.subf %133, %144 : vector<16x128xf32>
    %146 = arith.mulf %143, %145 : vector<16x128xf32>
    %cst_65 = arith.constant dense<0.000000e+00> : vector<16xf32>
    %147 = vector.multi_reduction <add>, %146, %cst_65 [1] : vector<16x128xf32> to vector<16xf32>
    %148 = vector.shape_cast %147 : vector<16xf32> to vector<16x1xf32>
    %cst_66 = arith.constant 1.280000e+02 : f32
    %149 = vector.broadcast %cst_66 : f32 to vector<16x1xf32>
    %150 = arith.divf %148, %149 : vector<16x1xf32>
    %151 = vector.broadcast %141 : vector<16x1xf32> to vector<16x128xf32>
    %152 = arith.subf %133, %151 : vector<16x128xf32>
    %cst_67 = arith.constant 9.99999996E-13 : f32
    %153 = vector.broadcast %cst_67 : f32 to vector<16x1xf32>
    %154 = arith.addf %150, %153 : vector<16x1xf32>
    %155 = math.rsqrt %154 : vector<16x1xf32>
    %156 = vector.broadcast %155 : vector<16x1xf32> to vector<16x128xf32>
    %157 = arith.mulf %152, %156 : vector<16x128xf32>
    %158 = vector.broadcast %135 : vector<1x128xf32> to vector<16x128xf32>
    %159 = arith.mulf %157, %158 : vector<16x128xf32>
    %160 = vector.broadcast %137 : vector<1x128xf32> to vector<16x128xf32>
    %161 = arith.addf %159, %160 : vector<16x128xf32>
    %c0_68 = arith.constant 0 : index
    %c0_69 = arith.constant 0 : index
    %162 = vector.load %arg24[%c0_68, %c0_69] : memref<16x128xf32, #tpu.memory_space<vmem>>, vector<16x128xf32>
    tpu.vector_store %arg24[%c0_68, %c0_69], %161 {strides = array<i32>} : memref<16x128xf32, #tpu.memory_space<vmem>>, vector<16x128xf32>,
    %c1_i32 = arith.constant 1 : i32
    %163 = arith.cmpi eq, %arg0, %c1_i32 : i32
    %164 = arith.extui %163 : i1 to i32
    %c0_i32_70 = arith.constant 0 : i32
    %165 = arith.cmpi ne, %164, %c0_i32_70 : i32
    scf.if %165 {
      %c0_71 = arith.constant 0 : index
      %c0_72 = arith.constant 0 : index
      %166 = vector.load %arg21[%c0_71, %c0_72] : memref<8x16xf32, #tpu.memory_space<vmem>>, vector<8x16xf32>
      %cst_73 = arith.constant dense<0.000000e+00> : vector<8x128xf32>
      %167 = tpu.matmul %166, %161, %cst_73 {dimension_numbers = #tpu.dot_dimension_numbers<[1], [0], [0], [1], [0, 0, 1, 1], [], []>} : vector<8x16xf32>, vector<16x128xf32>, vector<8x128xf32> -> vector<8x128xf32>
      %168 = vector.extract_strided_slice %167 {offsets = [0, 0], sizes = [2, 128], strides = [1, 1]} : vector<8x128xf32> to vector<2x128xf32>
      %169 = vector.extract_strided_slice %167 {offsets = [2, 0], sizes = [2, 128], strides = [1, 1]} : vector<8x128xf32> to vector<2x128xf32>
      %170 = vector.extract_strided_slice %167 {offsets = [4, 0], sizes = [2, 128], strides = [1, 1]} : vector<8x128xf32> to vector<2x128xf32>
      %171 = vector.extract_strided_slice %167 {offsets = [6, 0], sizes = [2, 128], strides = [1, 1]} : vector<8x128xf32> to vector<2x128xf32>
      %172 = tpu.concatenate %168, %169, %170, %171 in 1 : vector<2x128xf32>, vector<2x128xf32>, vector<2x128xf32>, vector<2x128xf32> -> vector<2x512xf32>
      %173 = arith.truncf %172 : vector<2x512xf32> to vector<2x512xbf16>
      %c0_74 = arith.constant 0 : index
      %c0_75 = arith.constant 0 : index
      %174 = vector.load %arg22[%c0_74, %c0_75] : memref<512x256xbf16, #tpu.memory_space<vmem>>, vector<512x256xbf16>
      %cst_76 = arith.constant dense<0.000000e+00> : vector<2x256xf32>
      %175 = tpu.matmul %173, %174, %cst_76 {dimension_numbers = #tpu.dot_dimension_numbers<[1], [0], [0], [1], [0, 0, 1, 1], [], []>} : vector<2x512xbf16>, vector<512x256xbf16>, vector<2x256xf32> -> vector<2x256xf32>
      %c0_77 = arith.constant 0 : index
      %c0_78 = arith.constant 0 : index
      %176 = vector.load %arg23[%c0_77, %c0_78] : memref<2x256xf32, #tpu.memory_space<vmem>>, vector<2x256xf32>
      tpu.vector_store %arg23[%c0_77, %c0_78], %175 {strides = array<i32>} : memref<2x256xf32, #tpu.memory_space<vmem>>, vector<2x256xf32>,
    } else {
    }
    return
  }
  func.func @transform_0(%arg0: i32) -> (i32, i32) {
    %c0_i32 = arith.constant 0 : i32
    %c0_i32_0 = arith.constant 0 : i32
    %c0_i32_1 = arith.constant 0 : i32
    return %c0_i32, %c0_i32_0 : i32, i32
  }
  func.func @transform_1(%arg0: i32) -> (i32, i32) {
    %c0_i32 = arith.constant 0 : i32
    %c0_i32_0 = arith.constant 0 : i32
    %c0_i32_1 = arith.constant 0 : i32
    return %c0_i32, %c0_i32_0 : i32, i32
  }
  func.func @transform_2(%arg0: i32) -> (i32, i32) {
    %c0_i32 = arith.constant 0 : i32
    %c0_i32_0 = arith.constant 0 : i32
    %c0_i32_1 = arith.constant 0 : i32
    return %c0_i32, %c0_i32_0 : i32, i32
  }
  func.func @transform_3(%arg0: i32) -> (i32, i32) {
    %c0_i32 = arith.constant 0 : i32
    %c0_i32_0 = arith.constant 0 : i32
    %c0_i32_1 = arith.constant 0 : i32
    return %c0_i32, %c0_i32_0 : i32, i32
  }
  func.func @transform_4(%arg0: i32) -> (i32, i32) {
    %c0_i32 = arith.constant 0 : i32
    %c0_i32_0 = arith.constant 0 : i32
    %c0_i32_1 = arith.constant 0 : i32
    return %c0_i32, %c0_i32_0 : i32, i32
  }
  func.func @transform_5(%arg0: i32) -> (i32, i32) {
    %c0_i32 = arith.constant 0 : i32
    %c0_i32_0 = arith.constant 0 : i32
    %c0_i32_1 = arith.constant 0 : i32
    return %c0_i32, %c0_i32_0 : i32, i32
  }
  func.func @transform_6(%arg0: i32) -> (i32, i32) {
    %c0_i32 = arith.constant 0 : i32
    %c0_i32_0 = arith.constant 0 : i32
    %c0_i32_1 = arith.constant 0 : i32
    return %c0_i32, %c0_i32_0 : i32, i32
  }
  func.func @transform_7(%arg0: i32) -> (i32, i32) {
    %c0_i32 = arith.constant 0 : i32
    %c0_i32_0 = arith.constant 0 : i32
    %c0_i32_1 = arith.constant 0 : i32
    return %c0_i32, %c0_i32_0 : i32, i32
  }
  func.func @transform_8(%arg0: i32) -> (i32, i32, i32) {
    %c0_i32 = arith.constant 0 : i32
    %c0_i32_0 = arith.constant 0 : i32
    %c0_i32_1 = arith.constant 0 : i32
    return %arg0, %c0_i32, %c0_i32_0 : i32, i32, i32
  }
  func.func @transform_9(%arg0: i32) -> (i32, i32, i32) {
    %c0_i32 = arith.constant 0 : i32
    %c0_i32_0 = arith.constant 0 : i32
    %c0_i32_1 = arith.constant 0 : i32
    return %arg0, %c0_i32, %c0_i32_0 : i32, i32, i32
  }
  func.func @transform_10(%arg0: i32) -> (i32, i32, i32) {
    %c0_i32 = arith.constant 0 : i32
    %c0_i32_0 = arith.constant 0 : i32
    %c0_i32_1 = arith.constant 0 : i32
    return %arg0, %c0_i32, %c0_i32_0 : i32, i32, i32
  }
  func.func @transform_11(%arg0: i32) -> (i32, i32, i32) {
    %c0_i32 = arith.constant 0 : i32
    %c0_i32_0 = arith.constant 0 : i32
    %c0_i32_1 = arith.constant 0 : i32
    return %arg0, %c0_i32, %c0_i32_0 : i32, i32, i32
  }
  func.func @transform_12(%arg0: i32) -> (i32, i32, i32) {
    %c0_i32 = arith.constant 0 : i32
    %c0_i32_0 = arith.constant 0 : i32
    %c0_i32_1 = arith.constant 0 : i32
    return %arg0, %c0_i32, %c0_i32_0 : i32, i32, i32
  }
  func.func @transform_13(%arg0: i32) -> (i32, i32, i32) {
    %c0_i32 = arith.constant 0 : i32
    %c0_i32_0 = arith.constant 0 : i32
    %c0_i32_1 = arith.constant 0 : i32
    return %arg0, %c0_i32, %c0_i32_0 : i32, i32, i32
  }
  func.func @transform_14(%arg0: i32) -> (i32, i32, i32) {
    %c0_i32 = arith.constant 0 : i32
    %c0_i32_0 = arith.constant 0 : i32
    %c0_i32_1 = arith.constant 0 : i32
    return %arg0, %c0_i32, %c0_i32_0 : i32, i32, i32
  }
  func.func @transform_15(%arg0: i32) -> (i32, i32, i32) {
    %c0_i32 = arith.constant 0 : i32
    %c0_i32_0 = arith.constant 0 : i32
    %c0_i32_1 = arith.constant 0 : i32
    return %arg0, %c0_i32, %c0_i32_0 : i32, i32, i32
  }
  func.func @transform_16(%arg0: i32) -> (i32, i32, i32) {
    %c0_i32 = arith.constant 0 : i32
    %c0_i32_0 = arith.constant 0 : i32
    %c0_i32_1 = arith.constant 0 : i32
    return %arg0, %c0_i32, %c0_i32_0 : i32, i32, i32
  }
  func.func @transform_17(%arg0: i32) -> (i32, i32, i32) {
    %c0_i32 = arith.constant 0 : i32
    %c0_i32_0 = arith.constant 0 : i32
    %c0_i32_1 = arith.constant 0 : i32
    return %arg0, %c0_i32, %c0_i32_0 : i32, i32, i32
  }
  func.func @transform_18(%arg0: i32) -> (i32, i32, i32) {
    %c0_i32 = arith.constant 0 : i32
    %c0_i32_0 = arith.constant 0 : i32
    %c0_i32_1 = arith.constant 0 : i32
    return %arg0, %c0_i32, %c0_i32_0 : i32, i32, i32
  }
  func.func @transform_19(%arg0: i32) -> (i32, i32, i32) {
    %c0_i32 = arith.constant 0 : i32
    %c0_i32_0 = arith.constant 0 : i32
    %c0_i32_1 = arith.constant 0 : i32
    return %arg0, %c0_i32, %c0_i32_0 : i32, i32, i32
  }
  func.func @transform_20(%arg0: i32) -> (i32, i32) {
    %c0_i32 = arith.constant 0 : i32
    %c0_i32_0 = arith.constant 0 : i32
    %c0_i32_1 = arith.constant 0 : i32
    return %c0_i32, %c0_i32_0 : i32, i32
  }
  func.func @transform_21(%arg0: i32) -> (i32, i32) {
    %c0_i32 = arith.constant 0 : i32
    %c0_i32_0 = arith.constant 0 : i32
    %c0_i32_1 = arith.constant 0 : i32
    return %c0_i32, %c0_i32_0 : i32, i32
  }
  func.func @transform_22(%arg0: i32) -> (i32, i32) {
    %c0_i32 = arith.constant 0 : i32
    %c0_i32_0 = arith.constant 0 : i32
    %c0_i32_1 = arith.constant 0 : i32
    return %c0_i32, %c0_i32_0 : i32, i32
  }
}

</mosaic_0001>

<bundles_post_ra>
// kernel: forward_pallas.1
= control target key start
LH: loop header
LB: loop body
LE: loop exit
PB: predicated region body
PF: predicated region fallthrough
CT: control target
= control target key end

     0   :  { %s5957_s0 = inlined_call_operand.vmem [shape: s32[16,1], index: 0, kind: input, shape index: {}]   ;;  %s5958_s1 = inlined_call_operand.vmem [shape: s32[1,16], index: 1, kind: input, shape index: {}]   ;;  %s5959_s2 = inlined_call_operand.vmem [shape: f32[64,128], index: 2, kind: input, shape index: {}]   ;;  %s5960_s3 = inlined_call_operand.vmem [shape: f32[16,128], index: 3, kind: input, shape index: {}]   ;;  %s5961_s4 = inlined_call_operand.vmem [shape: f32[2,128], index: 4, kind: input, shape index: {}]   ;;  %s5962_s5 = inlined_call_operand.hbm [shape: f32[16,16], index: 5, kind: input, shape index: {}]   ;;  %s5963_s6 = inlined_call_operand.vmem [shape: f32[1,128], index: 6, kind: input, shape index: {}]   ;;  %s5964_s7 = inlined_call_operand.hbm [shape: f32[1,128], index: 7, kind: input, shape index: {}]   ;;  %s5965_s8 = inlined_call_operand.hbm [shape: bf16[2,128,384], index: 8, kind: input, shape index: {}]   ;;  %s5966_s9 = inlined_call_operand.hbm [shape: f32[2,1,384], index: 9, kind: input, shape index: {}]   ;;  %s5967_s10 = inlined_call_operand.hbm [shape: bf16[2,128,128], index: 10, kind: input, shape index: {}]   ;;  %s5968_s11 = inlined_call_operand.vmem [shape: f32[2,1,128], index: 11, kind: input, shape index: {}]   ;;  %s5969_s12 = inlined_call_operand.hbm [shape: f32[2,1,128], index: 12, kind: input, shape index: {}]   ;;  %s5970_s13 = inlined_call_operand.hbm [shape: f32[2,1,128], index: 13, kind: input, shape index: {}]   ;;  %s5971_s14 = inlined_call_operand.hbm [shape: bf16[2,128,512], index: 14, kind: input, shape index: {}]   ;;  %s5972_s15 = inlined_call_operand.vmem [shape: f32[2,1,512], index: 15, kind: input, shape index: {}]   ;;  %s5973_s16 = inlined_call_operand.hbm [shape: bf16[2,512,128], index: 16, kind: input, shape index: {}]   ;;  %s5974_s17 = inlined_call_operand.hbm [shape: f32[2,1,128], index: 17, kind: input, shape index: {}]   ;;  %s5975_s18 = inlined_call_operand.hbm [shape: f32[2,1,128], index: 18, kind: input, shape index: {}]   ;;  %s5976_s19 = inlined_call_operand.hbm [shape: f32[2,1,128], index: 19, kind: input, shape index: {}]   ;;  %s5977_s20 = inlined_call_operand.hbm [shape: f32[8,16], index: 20, kind: input, shape index: {}]   ;;  %s5978_s21 = inlined_call_operand.hbm [shape: bf16[512,256], index: 21, kind: input, shape index: {}]   ;;  %s5979_s22 = inlined_call_operand.hbm [shape: f32[2,256], index: 22, kind: output, shape index: {}]  }
   0x1   :  { %6015 = sst [smem:[#allocation35_spill]] %s5957_s0 }
   0x2   :  { %6016 = sst [smem:[#allocation36_spill]] %s5958_s1 }
   0x3   :  { %6017 = sst [smem:[#allocation37_spill]] %s5959_s2 }
   0x4   :  { %6018 = sst [smem:[#allocation38_spill]] %s5960_s3 }
   0x5   :  { %6019 = sst [smem:[#allocation39_spill]] %s5961_s4 }
   0x6   :  { %6020 = sst [smem:[#allocation40_spill]] %s5962_s5 }
   0x7   :  { %6021 = sst [smem:[#allocation41_spill]] %s5963_s6 }
   0x8   :  { %6022 = sst [smem:[#allocation42_spill]] %s5964_s7 }
   0x9   :  { %6023 = sst [smem:[#allocation43_spill]] %s5965_s8 }
   0xa   :  { %6024 = sst [smem:[#allocation44_spill]] %s5966_s9 }
   0xb   :  { %6025 = sst [smem:[#allocation45_spill]] %s5968_s11 }
   0xc   :  { %6026 = sst [smem:[#allocation46_spill]] %s5972_s15 }
   0xd   :  { %6027 = sst [smem:[#allocation47_spill]] %s5976_s19 }
   0xe   :  { %6028 = sst [smem:[#allocation48_spill]] %s5977_s20 }
   0xf   :  { %6029 = sst [smem:[#allocation49_spill]] %s5978_s21 }
  0x10   :  { %6030 = sst [smem:[#allocation50_spill]] %s5979_s22 }
  0x11   :  { %27 = vsyncpa [#allocation4], 0 }
  0x12   :  { %28 = vsyncpa [#allocation7], 0 }
  0x13   :  { %29 = vsyncpa [#allocation20], 0 }
  0x14   :  { %30 = vsyncpa [#allocation5], 0  ;;  %s5054_s3 = smov 0   ;;  %s5056_s28 = smov 0  }
  0x15   :  { %s5058_s29 = smov 0   ;;  %s5060_s30 = smov 0  }
  0x16 LB: > { %6031 = sst [smem:[#allocation28_spill]] %s4895_s28  ;;  %s5073_s4 = sadd.s32 4294967295, %s4903_s30   ;;  %s4903_s30 = sphi %s5060_s30, %s6107_s30   ;;  %s4899_s29 = sphi %s5058_s29, %s6110_s29   ;;  %s4895_s28 = sphi %s5056_s28, %s6109_s28   ;;  %s4891_s3 = sphi %s5054_s3, %s6108_s3  }
  0x17   : > { %6032 = sst [smem:[#allocation29_spill]] %s4899_s29  ;;  %s5076_s0 = sadd.s32 1, %s4903_s30  }
  0x18   : > { %6033 = sst [smem:[#allocation30_spill]] %s5073_s4  ;;  %s208_s23 = ssub.s32 %s4903_s30, %s5076_s0 }
  0x19   : > { %6034 = sst [smem:[#allocation31_spill]] %s5076_s0  ;;  %s211_s1 = sadd.s32 1, %s4899_s29 }
  0x1a   : > { %p209_p0 = scmp.eq.s32.totalorder %s208_s23, 0  ;;  %p218_p1 = scmp.ne.s32.totalorder %s4899_s29, %s4895_s28 }
  0x1b   : > { %p219_p2 = scmp.eq.s32.totalorder %s4903_s30, 0  ;;  %p224_p3 = scmp.ne.s32.totalorder %s4895_s28, %s4891_s3 }
  0x1c   : > { %s5086_s5 = scalar_select %p209_p0, %s4899_s29, %s211_s1  }
  0x1d   : > { %p5088_p4 = por %p219_p2, %p218_p1  ;;  %p5990_p5 = scmp.eq.s32.totalorder %s5073_s4, 0 }
  0x1e   : > { %6035 = sst [smem:[#allocation32_spill]] %s5086_s5  ;;  %p3564_p6 = scmp.ge.s32.totalorder %s4903_s30, 1 }
  0x1f   : > { %p584_p7 = scmp.lt.s32.totalorder %s4903_s30, 3  ;;  %p5097_p8 = por %p5990_p5, %p224_p3 }
  0x20   : > { %s4905_s26 = smov [#allocation3]   ;;  %p4067_p13 = scmp.lt.s32.totalorder %s4903_s30, 2 }
  0x21   : > { %s6037_s6 = scalar_select %p5097_p8, 1, 0 }
  0x22   : > { %p5102_p10 = pnand %p3564_p6, %p584_p7  ;;  %s611_s2 = sshll.u32 %s4905_s26, 4  ;;  %s612_s2 = int_to_ptr.vmem [resolvable:$true] %s611_s2 }
  0x23   : > { %6038 = sst [smem:[#allocation33_spill]] %s6037_s6  ;;  %s5116_s3 = sand.u32 1, %s4899_s29  }
  0x24   : > { %s6039_s25 = scalar_select %p5102_p10, 1, 0 }
  0x25   : > { %p4019_p11 = pneg %p5102_p10  ;;  %s663_s23 = sand.u32 1, %s4903_s30  }
  0x26   : > { %6040 = sst [smem:[#allocation34_spill]] %s6039_s25  ;;  %p5121_p0 = pnand %p4067_p13, %p5088_p4 }
  0x27   : > { %p5110_p12 = pnand %p4019_p11, %p5990_p5  ;;  %s6043_s0 = sld [smem:[#allocation40_spill]] }
  0x28   : > { %s6042_s1 = scalar_select %p5121_p0, 1, 0 }
  0x29   : > { %s6041_s27 = scalar_select %p5110_p12, 1, 0 }
  0x2a   : > { %p5133_p2 = pneg %p5110_p12 }
  0x2c   : > { %s6044_s6 = scalar_select %p5133_p2, 1, 0 }
  0x2d   : > { %s4411_s22 = scalar_lea.hbm %s6043_s0, 256 }
  0x2e   : > { %p4412_p1 = scmp.ne.s32.totalorder %s6043_s0, %s4411_s22  ;;  %p4418_p6 = scmp.lt.u32.totalorder %s4411_s22, %s6043_s0 }
  0x30   : > { %p4414_p3 = pnand %p5133_p2, %p4412_p1 }
  0x32   : > { %p4415_p4 = pneg %p4414_p3 }
  0x34   : > { %p4420_p7 = pnand %p4418_p6, %p4415_p4 }
  0x36   : > { %4423 = shalt.err (!%p4420_p7)
}
  0x37   : > { %s4424_s5 = scalar_lea.vmem %s612_s2, 256  ;;  %p4432_p5 = scmp.lt.s32.totalorder %s612_s2, %s612_s2 }
  0x38   : > { %p4425_p11 = scmp.ne.s32.totalorder %s612_s2, %s4424_s5  ;;  %p4433_p8 = scmp.lt.s32.totalorder %s4424_s5, %s4424_s5 }
  0x3a   : > { %p4427_p13 = pnand %p4425_p11, %p5133_p2  ;;  %p4434_p10 = por %p4433_p8, %p4432_p5 }
  0x3c   : > { %p4428_p9 = pneg %p4427_p13 }
  0x3e   : > { %p4435_p0 = pnand %p4434_p10, %p4428_p9 }
  0x40   : > { %4438 = shalt.err (!%p4435_p0)
}
  0x41   : > { %s6006_s11 = smov 128   ;;  %s6007_s15 = smov 8  }
  0x42   : > { %4022 = dma.hbm_to_vmem [thread:$0]  (!%p5110_p12), %s6043_s0, 256, %s612_s2, [#allocation4], %s6006_s11, %s6006_s11, %s6007_s15  }
  0x43   : > { %s3973_s26 = smul.u32 192, %s5116_s3  ;;  %s6045_s8 = sld [smem:[#allocation43_spill]] }
  0x44   : > { %s3974_s24 = smul.u32 3072, %s4903_s30  ;;  %s5162_s20 = scalar_lea.sflag [#allocation4], %s663_s23 }
  0x45   : > { %s3975_s5 = smul.u32 3, %s5116_s3  ;;  %s667_s21 = scalar_lea.vmem [#allocation8], %s3973_s26 }
  0x46   : > { %s674_s19 = sshll.u32 %s667_s21, 4  ;;  %p6046_p8 = scmp.ne.s32.totalorder %s6042_s1, 0  ;;  %s5160_s19 = int_to_ptr.vmem [resolvable:$true] %s674_s19 }
  0x48   : > { %p5168_p9 = pneg %p6046_p8 }
  0x49   : > { %s5158_s25 = scalar_lea.hbm %s6045_s8, %s3974_s24  ;;  %s4444_s29 = scalar_lea.hbm %s6045_s8, 6144 }
  0x4a   : > { %s4439_s22 = scalar_lea.hbm %s5158_s25, 3072  ;;  %p4445_p1 = scmp.lt.u32.totalorder %s5158_s25, %s6045_s8 }
  0x4b   : > { %p4440_p5 = scmp.ne.s32.totalorder %s5158_s25, %s4439_s22  ;;  %p4446_p3 = scmp.lt.u32.totalorder %s4444_s29, %s4439_s22 }
  0x4c   : > { %s6047_s2 = scalar_select %p5168_p9, 1, 0 }
  0x4d   : > { %p4442_p10 = pnand %p5168_p9, %p4440_p5  ;;  %p4447_p4 = por %p4446_p3, %p4445_p1 }
  0x4e   : > { %p4448_p6 = scmp.lt.u32.totalorder %s4439_s22, %s5158_s25 }
  0x4f   : > { %p4443_p0 = pneg %p4442_p10 }
  0x50   : > { %p4449_p7 = por %p4448_p6, %p4447_p4 }
  0x52   : > { %p4450_p11 = pnand %p4449_p7, %p4443_p0 }
  0x54   : > { %4453 = shalt.err (!%p4450_p11)
}
  0x55   : > { %s4454_s23 = scalar_lea.vmem %s5160_s19, 3072  ;;  %s4908_s24 = smov [#allocation8]  }
  0x56   : > { %p4455_p13 = scmp.ne.s32.totalorder %s5160_s19, %s4454_s23  ;;  %s4459_s28 = sshll.u32 %s4908_s24, 4  ;;  %s4460_s28 = int_to_ptr.vmem [resolvable:$false] %s4459_s28 }
  0x57   : > { %s4461_s4 = scalar_lea.vmem %s4460_s28, 6144  ;;  %p4462_p12 = scmp.lt.s32.totalorder %s5160_s19, %s4460_s28 }
  0x58   : > { %p4457_p5 = pnand %p4455_p13, %p5168_p9  ;;  %p4463_p2 = scmp.lt.s32.totalorder %s4461_s4, %s4454_s23 }
  0x5a   : > { %p4458_p10 = pneg %p4457_p5  ;;  %p4464_p1 = por %p4463_p2, %p4462_p12 }
  0x5c   : > { %p4465_p3 = pnand %p4464_p1, %p4458_p10 }
  0x5e   : > { %4468 = shalt.err (!%p4465_p3)
}
  0x5f   : > { %s4909_s22 = smov 192   ;;  %s4910_s29 = smov 12  }
  0x60   : > { %4035 = dma.hbm_to_vmem [thread:$0]  (!%p6046_p8), %s5158_s25, 3072, %s5160_s19, %s5162_s20, %s4909_s22, %s4909_s22, %s4910_s29  }
  0x61   : > { %s3976_s21 = smul.u32 48, %s4903_s30  ;;  %s688_s26 = scalar_lea.vmem [#allocation9], %s3975_s5 }
  0x62   : > { %s696_s24 = sshll.u32 %s688_s26, 4  ;;  %s3572_s23 = sshll.u32 %s5116_s3, 6  ;;  %s5195_s24 = int_to_ptr.vmem [resolvable:$true] %s696_s24 }
  0x63   : > { %s6048_s9 = sld [smem:[#allocation44_spill]] }
  0x69   : > { %s694_s11 = scalar_lea.hbm %s6048_s9, %s3976_s21  ;;  %s4474_s19 = scalar_lea.hbm %s6048_s9, 96 }
  0x6a   : > { %s4469_s15 = scalar_lea.hbm %s694_s11, 48  ;;  %p4475_p4 = scmp.lt.u32.totalorder %s694_s11, %s6048_s9 }
  0x6b   : > { %p4470_p12 = scmp.ne.s32.totalorder %s694_s11, %s4469_s15  ;;  %p4476_p6 = scmp.lt.u32.totalorder %s4474_s19, %s4469_s15 }
  0x6c   : > { %p4478_p11 = scmp.lt.u32.totalorder %s4469_s15, %s694_s11 }
  0x6d   : > { %p4472_p2 = pnand %p4470_p12, %p5168_p9  ;;  %p4477_p7 = por %p4476_p6, %p4475_p4 }
  0x6f   : > { %p4473_p0 = pneg %p4472_p2  ;;  %p4479_p13 = por %p4478_p11, %p4477_p7 }
  0x71   : > { %p4480_p5 = pnand %p4479_p13, %p4473_p0 }
  0x73   : > { %4483 = shalt.err (!%p4480_p5)
}
  0x74   : > { %s4484_s5 = scalar_lea.vmem %s5195_s24, 48  ;;  %s4911_s8 = smov [#allocation9]  }
  0x75   : > { %p4485_p10 = scmp.ne.s32.totalorder %s5195_s24, %s4484_s5  ;;  %s4489_s0 = sshll.u32 %s4911_s8, 4  ;;  %s4490_s0 = int_to_ptr.vmem [resolvable:$false] %s4489_s0 }
  0x76   : > { %s4491_s29 = scalar_lea.vmem %s4490_s0, 96  ;;  %p4492_p12 = scmp.lt.s32.totalorder %s5195_s24, %s4490_s0 }
  0x77   : > { %p4487_p1 = pnand %p4485_p10, %p5168_p9  ;;  %p4493_p2 = scmp.lt.s32.totalorder %s4491_s29, %s4484_s5 }
  0x79   : > { %p4488_p3 = pneg %p4487_p1  ;;  %p4494_p4 = por %p4493_p2, %p4492_p12 }
  0x7b   : > { %p4495_p6 = pnand %p4494_p4, %p4488_p3 }
  0x7d   : > { %4498 = shalt.err (!%p4495_p6)
}
  0x7e   : > { %4038 = dma.hbm_to_vmem [thread:$0]  (!%p6046_p8), %s694_s11, 48, %s5195_s24, %s5162_s20  }
  0x7f   : > { %s3782_s15 = sshll.u32 %s4903_s30, 10  ;;  %s707_s21 = scalar_lea.vmem [#allocation10], %s3572_s23 }
  0x80   : > { %s714_s26 = sshll.u32 %s707_s21, 4  ;;  %s5224_s19 = scalar_lea.hbm %s5967_s10, %s3782_s15  ;;  %s5226_s26 = int_to_ptr.vmem [resolvable:$true] %s714_s26 }
  0x81   : > { %s4499_s25 = scalar_lea.hbm %s5224_s19, 1024  ;;  %s4504_s23 = scalar_lea.hbm %s5967_s10, 2048 }
  0x82   : > { %p4500_p0 = scmp.ne.s32.totalorder %s5224_s19, %s4499_s25  ;;  %p4505_p13 = scmp.lt.u32.totalorder %s5224_s19, %s5967_s10 }
  0x83   : > { %p4506_p5 = scmp.lt.u32.totalorder %s4504_s23, %s4499_s25  ;;  %p4508_p1 = scmp.lt.u32.totalorder %s4499_s25, %s5224_s19 }
  0x84   : > { %p4502_p7 = pnand %p4500_p0, %p5168_p9 }
  0x85   : > { %p4507_p10 = por %p4506_p5, %p4505_p13 }
  0x86   : > { %p4503_p11 = pneg %p4502_p7 }
  0x87   : > { %p4509_p3 = por %p4508_p1, %p4507_p10 }
  0x89   : > { %p4510_p12 = pnand %p4509_p3, %p4503_p11 }
  0x8b   : > { %4513 = shalt.err (!%p4510_p12)
}
  0x8c   : > { %s4514_s8 = scalar_lea.vmem %s5226_s26, 1024  ;;  %s4912_s0 = smov [#allocation10]  }
  0x8d   : > { %p4515_p2 = scmp.ne.s32.totalorder %s5226_s26, %s4514_s8  ;;  %s4519_s29 = sshll.u32 %s4912_s0, 4  ;;  %s4520_s29 = int_to_ptr.vmem [resolvable:$false] %s4519_s29 }
  0x8e   : > { %s4521_s15 = scalar_lea.vmem %s4520_s29, 2048  ;;  %p4522_p0 = scmp.lt.s32.totalorder %s5226_s26, %s4520_s29 }
  0x8f   : > { %p4517_p4 = pnand %p4515_p2, %p5168_p9  ;;  %p4523_p7 = scmp.lt.s32.totalorder %s4521_s15, %s4514_s8 }
  0x91   : > { %p4518_p6 = pneg %p4517_p4  ;;  %p4524_p13 = por %p4523_p7, %p4522_p0 }
  0x93   : > { %p4525_p5 = pnand %p4524_p13, %p4518_p6 }
  0x95   : > { %4528 = shalt.err (!%p4525_p5)
}
  0x96   : > { %s4913_s21 = smov 64   ;;  %s4914_s28 = smov 4  }
  0x97   : > { %4041 = dma.hbm_to_vmem [thread:$0]  (!%p6046_p8), %s5224_s19, 1024, %s5226_s26, %s5162_s20, %s4913_s21, %s4913_s21, %s4914_s28  }
  0x98   : > { %s5254_s4 = sshll.u32 %s4903_s30, 4  ;;  %s733_s23 = scalar_lea.vmem [#allocation11], %s5116_s3 }
  0x99   : > { %s5260_s24 = scalar_lea.hbm %s5969_s12, %s5254_s4  ;;  %s740_s22 = sshll.u32 %s733_s23, 4  ;;  %s741_s22 = int_to_ptr.vmem [resolvable:$true] %s740_s22 }
  0x9a   : > { %s4529_s5 = scalar_lea.hbm %s5260_s24, 16  ;;  %s4534_s8 = scalar_lea.hbm %s5969_s12, 32 }
  0x9b   : > { %p4530_p11 = scmp.ne.s32.totalorder %s5260_s24, %s4529_s5  ;;  %p4535_p3 = scmp.lt.u32.totalorder %s5260_s24, %s5969_s12 }
  0x9c   : > { %p4536_p12 = scmp.lt.u32.totalorder %s4534_s8, %s4529_s5  ;;  %p4538_p4 = scmp.lt.u32.totalorder %s4529_s5, %s5260_s24 }
  0x9d   : > { %p4532_p10 = pnand %p4530_p11, %p5168_p9 }
  0x9e   : > { %p4537_p2 = por %p4536_p12, %p4535_p3 }
  0x9f   : > { %p4533_p1 = pneg %p4532_p10 }
  0xa0   : > { %p4539_p6 = por %p4538_p4, %p4537_p2 }
  0xa2   : > { %p4540_p0 = pnand %p4539_p6, %p4533_p1 }
  0xa4   : > { %4543 = shalt.err (!%p4540_p0)
}
  0xa5   : > { %s4544_s15 = scalar_lea.vmem %s741_s22, 16  ;;  %s4915_s25 = smov [#allocation11]  }
  0xa6   : > { %p4545_p7 = scmp.ne.s32.totalorder %s741_s22, %s4544_s15  ;;  %s4549_s11 = sshll.u32 %s4915_s25, 4  ;;  %s4550_s11 = int_to_ptr.vmem [resolvable:$false] %s4549_s11 }
  0xa7   : > { %s4551_s23 = scalar_lea.vmem %s4550_s11, 32  ;;  %p4552_p11 = scmp.lt.s32.totalorder %s741_s22, %s4550_s11 }
  0xa8   : > { %p4547_p13 = pnand %p4545_p7, %p5168_p9  ;;  %p4553_p10 = scmp.lt.s32.totalorder %s4551_s23, %s4544_s15 }
  0xaa   : > { %p4548_p5 = pneg %p4547_p13  ;;  %p4554_p8 = por %p4553_p10, %p4552_p11 }
  0xac   : > { %p4555_p3 = pnand %p4554_p8, %p4548_p5 }
  0xae   : > { %4558 = shalt.err (!%p4555_p3)
}
  0xaf   : > { %p6049_p12 = scmp.ne.s32.totalorder %s6042_s1, 0  ;;  %s5285_s19 = scalar_lea.hbm %s5970_s13, %s5254_s4 }
  0xb0   : > { %s750_s8 = scalar_lea.vmem [#allocation12], %s5116_s3  ;;  %s3577_s29 = sshll.u32 %s5116_s3, 8 }
  0xb1   : > { %4044 = dma.hbm_to_vmem [thread:$0]  (!%p6049_p12), %s5260_s24, 16, %s741_s22, %s5162_s20  }
  0xb2   : > { %s757_s0 = sshll.u32 %s750_s8, 4  ;;  %s4559_s15 = scalar_lea.hbm %s5285_s19, 16  ;;  %s758_s0 = int_to_ptr.vmem [resolvable:$true] %s757_s0 }
  0xb3   : > { %p4560_p8 = scmp.ne.s32.totalorder %s5285_s19, %s4559_s15  ;;  %s4564_s22 = scalar_lea.hbm %s5970_s13, 32 }
  0xb4   : > { %p4565_p4 = scmp.lt.u32.totalorder %s5285_s19, %s5970_s13  ;;  %p4566_p6 = scmp.lt.u32.totalorder %s4564_s22, %s4559_s15 }
  0xb5   : > { %p4562_p1 = pnand %p4560_p8, %p5168_p9  ;;  %p4568_p7 = scmp.lt.u32.totalorder %s4559_s15, %s5285_s19 }
  0xb6   : > { %p4567_p0 = por %p4566_p6, %p4565_p4 }
  0xb7   : > { %p4563_p2 = pneg %p4562_p1 }
  0xb8   : > { %p4569_p13 = por %p4568_p7, %p4567_p0 }
  0xba   : > { %p4570_p5 = pnand %p4569_p13, %p4563_p2 }
  0xbc   : > { %4573 = shalt.err (!%p4570_p5)
}
  0xbd   : > { %s4574_s5 = scalar_lea.vmem %s758_s0, 16  ;;  %s4916_s26 = smov [#allocation12]  }
  0xbe   : > { %p4575_p11 = scmp.ne.s32.totalorder %s758_s0, %s4574_s5  ;;  %s4579_s8 = sshll.u32 %s4916_s26, 4  ;;  %s4580_s8 = int_to_ptr.vmem [resolvable:$false] %s4579_s8 }
  0xbf   : > { %s4581_s25 = scalar_lea.vmem %s4580_s8, 32  ;;  %p4582_p8 = scmp.lt.s32.totalorder %s758_s0, %s4580_s8 }
  0xc0   : > { %p4577_p10 = pnand %p4575_p11, %p5168_p9  ;;  %p4583_p1 = scmp.lt.s32.totalorder %s4581_s25, %s4574_s5 }
  0xc2   : > { %p4578_p3 = pneg %p4577_p10  ;;  %p4584_p12 = por %p4583_p1, %p4582_p8 }
  0xc4   : > { %p4585_p4 = pnand %p4584_p12, %p4578_p3 }
  0xc6   : > { %4588 = shalt.err (!%p4585_p4)
}
  0xc7   : > { %p6050_p6 = scmp.ne.s32.totalorder %s6042_s1, 0  ;;  %s3783_s15 = sshll.u32 %s4903_s30, 12 }
  0xc8   : > { %s5313_s11 = scalar_lea.hbm %s5971_s14, %s3783_s15  ;;  %s768_s23 = scalar_lea.vmem [#allocation13], %s3577_s29 }
  0xc9   : > { %4047 = dma.hbm_to_vmem [thread:$0]  (!%p6050_p6), %s5285_s19, 16, %s758_s0, %s5162_s20  }
  0xca   : > { %s775_s5 = sshll.u32 %s768_s23, 4  ;;  %s4589_s26 = scalar_lea.hbm %s5313_s11, 4096  ;;  %s5317_s5 = int_to_ptr.vmem [resolvable:$true] %s775_s5 }
  0xcb   : > { %p4590_p12 = scmp.ne.s32.totalorder %s5313_s11, %s4589_s26  ;;  %s4594_s8 = scalar_lea.hbm %s5971_s14, 8192 }
  0xcc   : > { %p4595_p7 = scmp.lt.u32.totalorder %s5313_s11, %s5971_s14  ;;  %p4596_p13 = scmp.lt.u32.totalorder %s4594_s8, %s4589_s26 }
  0xcd   : > { %p4592_p2 = pnand %p4590_p12, %p5168_p9  ;;  %p4598_p11 = scmp.lt.u32.totalorder %s4589_s26, %s5313_s11 }
  0xce   : > { %p4597_p5 = por %p4596_p13, %p4595_p7 }
  0xcf   : > { %p4593_p0 = pneg %p4592_p2 }
  0xd0   : > { %p4599_p10 = por %p4598_p11, %p4597_p5 }
  0xd2   : > { %p4600_p3 = pnand %p4599_p10, %p4593_p0 }
  0xd4   : > { %4603 = shalt.err (!%p4600_p3)
}
  0xd5   : > { %s4604_s22 = scalar_lea.vmem %s5317_s5, 4096  ;;  %s4917_s23 = smov [#allocation13]  }
  0xd6   : > { %p4605_p8 = scmp.ne.s32.totalorder %s5317_s5, %s4604_s22  ;;  %s4609_s19 = sshll.u32 %s4917_s23, 4  ;;  %s4610_s19 = int_to_ptr.vmem [resolvable:$false] %s4609_s19 }
  0xd7   : > { %s4611_s0 = scalar_lea.vmem %s4610_s19, 8192  ;;  %p4612_p12 = scmp.lt.s32.totalorder %s5317_s5, %s4610_s19 }
  0xd8   : > { %p4607_p1 = pnand %p4605_p8, %p5168_p9  ;;  %p4613_p2 = scmp.lt.s32.totalorder %s4611_s0, %s4604_s22 }
  0xda   : > { %p4608_p4 = pneg %p4607_p1  ;;  %p4614_p7 = por %p4613_p2, %p4612_p12 }
  0xdc   : > { %p4615_p13 = pnand %p4614_p7, %p4608_p4 }
  0xde   : > { %4618 = shalt.err (!%p4615_p13)
}
  0xdf   : > { %s4918_s26 = smov 256   ;;  %s4919_s8 = smov 16  }
  0xe0   : > { %4050 = dma.hbm_to_vmem [thread:$0]  (!%p6050_p6), %s5313_s11, 4096, %s5317_s5, %s5162_s20, %s4918_s26, %s4918_s26, %s4919_s8  }
  0xe1   : > { %s5346_s23 = scalar_lea.hbm %s5973_s16, %s3783_s15  ;;  %s796_s22 = scalar_lea.vmem [#allocation14], %s3577_s29 }
  0xe2   : > { %s803_s19 = sshll.u32 %s796_s22, 4  ;;  %s4619_s0 = scalar_lea.hbm %s5346_s23, 4096  ;;  %s5350_s19 = int_to_ptr.vmem [resolvable:$true] %s803_s19 }
  0xe3   : > { %p4620_p0 = scmp.ne.s32.totalorder %s5346_s23, %s4619_s0  ;;  %s4624_s5 = scalar_lea.hbm %s5973_s16, 8192 }
  0xe4   : > { %p4625_p10 = scmp.lt.u32.totalorder %s5346_s23, %s5973_s16  ;;  %p4626_p3 = scmp.lt.u32.totalorder %s4624_s5, %s4619_s0 }
  0xe5   : > { %p4622_p5 = pnand %p4620_p0, %p5168_p9  ;;  %p4628_p1 = scmp.lt.u32.totalorder %s4619_s0, %s5346_s23 }
  0xe6   : > { %p4627_p8 = por %p4626_p3, %p4625_p10 }
  0xe7   : > { %p4623_p11 = pneg %p4622_p5 }
  0xe8   : > { %p4629_p4 = por %p4628_p1, %p4627_p8 }
  0xea   : > { %p4630_p12 = pnand %p4629_p4, %p4623_p11 }
  0xec   : > { %4633 = shalt.err (!%p4630_p12)
}
  0xed   : > { %s4634_s29 = scalar_lea.vmem %s5350_s19, 4096  ;;  %s4920_s8 = smov [#allocation14]  }
  0xee   : > { %p4635_p2 = scmp.ne.s32.totalorder %s5350_s19, %s4634_s29  ;;  %s4639_s25 = sshll.u32 %s4920_s8, 4  ;;  %s4640_s25 = int_to_ptr.vmem [resolvable:$false] %s4639_s25 }
  0xef   : > { %s4641_s24 = scalar_lea.vmem %s4640_s25, 8192  ;;  %p4642_p0 = scmp.lt.s32.totalorder %s5350_s19, %s4640_s25 }
  0xf0   : > { %p4637_p7 = pnand %p4635_p2, %p5168_p9  ;;  %p4643_p5 = scmp.lt.s32.totalorder %s4641_s24, %s4634_s29 }
  0xf2   : > { %p4638_p13 = pneg %p4637_p7  ;;  %p4644_p10 = por %p4643_p5, %p4642_p0 }
  0xf4   : > { %p4645_p3 = pnand %p4644_p10, %p4638_p13 }
  0xf6   : > { %4648 = shalt.err (!%p4645_p3)
}
  0xf7   : > { %4053 = dma.hbm_to_vmem [thread:$0]  (!%p6050_p6), %s5346_s23, 4096, %s5350_s19, %s5162_s20, %s4913_s21, %s4913_s21, %s4914_s28  }
  0xf8   : > { %s5381_s30 = scalar_lea.hbm %s5974_s17, %s5254_s4  ;;  %s816_s11 = scalar_lea.vmem [#allocation15], %s5116_s3 }
  0xf9   : > { %s823_s5 = sshll.u32 %s816_s11, 4  ;;  %s4649_s15 = scalar_lea.hbm %s5381_s30, 16  ;;  %s824_s5 = int_to_ptr.vmem [resolvable:$true] %s823_s5 }
  0xfa   : > { %p4650_p11 = scmp.ne.s32.totalorder %s5381_s30, %s4649_s15  ;;  %s4654_s21 = scalar_lea.hbm %s5974_s17, 32 }
  0xfb   : > { %p4655_p4 = scmp.lt.u32.totalorder %s5381_s30, %s5974_s17  ;;  %p4656_p12 = scmp.lt.u32.totalorder %s4654_s21, %s4649_s15 }
  0xfc   : > { %p4652_p8 = pnand %p4650_p11, %p5168_p9  ;;  %p4658_p7 = scmp.lt.u32.totalorder %s4649_s15, %s5381_s30 }
  0xfd   : > { %p4657_p2 = por %p4656_p12, %p4655_p4 }
  0xfe   : > { %p4653_p1 = pneg %p4652_p8 }
  0xff   : > { %p4659_p13 = por %p4658_p7, %p4657_p2 }
 0x101   : > { %p4660_p0 = pnand %p4659_p13, %p4653_p1 }
 0x103   : > { %4663 = shalt.err (!%p4660_p0)
}
 0x104   : > { %s4664_s19 = scalar_lea.vmem %s824_s5, 16  ;;  %s4921_s8 = smov [#allocation15]  }
 0x105   : > { %p4665_p5 = scmp.ne.s32.totalorder %s824_s5, %s4664_s19  ;;  %s4669_s25 = sshll.u32 %s4921_s8, 4  ;;  %s4670_s25 = int_to_ptr.vmem [resolvable:$false] %s4669_s25 }
 0x106   : > { %s4671_s24 = scalar_lea.vmem %s4670_s25, 32  ;;  %p4672_p11 = scmp.lt.s32.totalorder %s824_s5, %s4670_s25 }
 0x107   : > { %p4667_p10 = pnand %p4665_p5, %p5168_p9  ;;  %p4673_p8 = scmp.lt.s32.totalorder %s4671_s24, %s4664_s19 }
 0x109   : > { %p4668_p3 = pneg %p4667_p10  ;;  %p4674_p6 = por %p4673_p8, %p4672_p11 }
 0x10b   : > { %p4675_p4 = pnand %p4674_p6, %p4668_p3 }
 0x10d   : > { %4678 = shalt.err (!%p4675_p4)
}
 0x10e   : > { %p6051_p12 = scmp.ne.s32.totalorder %s6042_s1, 0  ;;  %s4922_s22 = smov [#allocation6]  }
 0x10f   : > { %s628_s0 = sshll.u32 %s4922_s22, 4  ;;  %s5406_s26 = scalar_lea.hbm %s5975_s18, %s5254_s4  ;;  %s629_s0 = int_to_ptr.vmem [resolvable:$true] %s628_s0 }
 0x110   : > { %4056 = dma.hbm_to_vmem [thread:$0]  (!%p6051_p12), %s5381_s30, 16, %s824_s5, %s5162_s20  }
 0x111   : > { %s6052_s7 = sld [smem:[#allocation42_spill]]  ;;  %p6053_p1 = scmp.ne.s32.totalorder %s6044_s6, 0 }
 0x117   : > { %s4679_s28 = scalar_lea.hbm %s6052_s7, 16 }
 0x118   : > { %p4680_p6 = scmp.ne.s32.totalorder %s6052_s7, %s4679_s28  ;;  %p4686_p13 = scmp.lt.u32.totalorder %s4679_s28, %s6052_s7 }
 0x11a   : > { %p4682_p2 = pnand %p4680_p6, %p6053_p1 }
 0x11c   : > { %p4683_p7 = pneg %p4682_p2 }
 0x11e   : > { %p4688_p0 = pnand %p4686_p13, %p4683_p7 }
 0x120   : > { %4691 = shalt.err (!%p4688_p0)
}
 0x121   : > { %s4692_s8 = scalar_lea.vmem %s629_s0, 16  ;;  %s4699_s25 = scalar_lea.vmem %s629_s0, 32 }
 0x122   : > { %p4693_p5 = scmp.ne.s32.totalorder %s629_s0, %s4692_s8  ;;  %p4700_p11 = scmp.lt.s32.totalorder %s629_s0, %s629_s0 }
 0x123   : > { %p4701_p8 = scmp.lt.s32.totalorder %s4699_s25, %s4692_s8 }
 0x124   : > { %p4695_p10 = pnand %p4693_p5, %p6053_p1 }
 0x125   : > { %p4702_p4 = por %p4701_p8, %p4700_p11 }
 0x126   : > { %p4696_p3 = pneg %p4695_p10 }
 0x128   : > { %p4703_p12 = pnand %p4702_p4, %p4696_p3 }
 0x12a   : > { %4706 = shalt.err (!%p4703_p12)
}
 0x12b   : > { %p6054_p6 = scmp.ne.s32.totalorder %s6041_s27, 0  ;;  %s833_s11 = scalar_lea.vmem [#allocation16], %s5116_s3 }
 0x12c   : > { %s840_s15 = sshll.u32 %s833_s11, 4  ;;  %s4923_s29 = smov [#allocation18]   ;;  %s5427_s15 = int_to_ptr.vmem [resolvable:$true] %s840_s15 }
 0x12d   : > { %4025 = dma.hbm_to_vmem [thread:$0]  (!%p6054_p6), %s6052_s7, 16, %s629_s0, [#allocation7]  }
 0x12e   : > { %s639_s21 = sshll.u32 %s4923_s29, 4  ;;  %s4707_s28 = scalar_lea.hbm %s5406_s26, 16  ;;  %s640_s21 = int_to_ptr.vmem [resolvable:$true] %s639_s21 }
 0x12f   : > { %p4708_p12 = scmp.ne.s32.totalorder %s5406_s26, %s4707_s28  ;;  %s4712_s30 = scalar_lea.hbm %s5975_s18, 32 }
 0x130   : > { %p4713_p13 = scmp.lt.u32.totalorder %s5406_s26, %s5975_s18  ;;  %p4714_p0 = scmp.lt.u32.totalorder %s4712_s30, %s4707_s28 }
 0x131   : > { %p4710_p2 = pnand %p4708_p12, %p5168_p9  ;;  %p4716_p10 = scmp.lt.u32.totalorder %s4707_s28, %s5406_s26 }
 0x132   : > { %p4715_p5 = por %p4714_p0, %p4713_p13 }
 0x133   : > { %p4711_p7 = pneg %p4710_p2 }
 0x134   : > { %p4717_p3 = por %p4716_p10, %p4715_p5 }
 0x136   : > { %p4718_p11 = pnand %p4717_p3, %p4711_p7 }
 0x138   : > { %4721 = shalt.err (!%p4718_p11)
}
 0x139   : > { %s4722_s0 = scalar_lea.vmem %s5427_s15, 16  ;;  %s4924_s25 = smov [#allocation16]  }
 0x13a   : > { %p4723_p8 = scmp.ne.s32.totalorder %s5427_s15, %s4722_s0  ;;  %s4727_s24 = sshll.u32 %s4924_s25, 4  ;;  %s4728_s24 = int_to_ptr.vmem [resolvable:$false] %s4727_s24 }
 0x13b   : > { %s4729_s22 = scalar_lea.vmem %s4728_s24, 32  ;;  %p4730_p2 = scmp.lt.s32.totalorder %s5427_s15, %s4728_s24 }
 0x13c   : > { %p4725_p4 = pnand %p4723_p8, %p5168_p9  ;;  %p4731_p6 = scmp.lt.s32.totalorder %s4729_s22, %s4722_s0 }
 0x13e   : > { %p4726_p12 = pneg %p4725_p4  ;;  %p4732_p13 = por %p4731_p6, %p4730_p2 }
 0x140   : > { %p4733_p0 = pnand %p4732_p13, %p4726_p12 }
 0x142   : > { %4736 = shalt.err (!%p4733_p0)
}
 0x143   : > { %p6055_p7 = scmp.ne.s32.totalorder %s6042_s1, 0  ;;  %s6056_s28 = sld [smem:[#allocation48_spill]] }
 0x145   : > { %4059 = dma.hbm_to_vmem [thread:$0]  (!%p6055_p7), %s5406_s26, 16, %s5427_s15, %s5162_s20  }
 0x149   : > { %s6057_s23 = smov %s6056_s28  ;;  %s4737_s19 = scalar_lea.hbm %s6056_s28, 128 }
 0x14a   : > { %p4738_p5 = scmp.ne.s32.totalorder %s6057_s23, %s4737_s19  ;;  %p4744_p3 = scmp.lt.u32.totalorder %s4737_s19, %s6057_s23 }
 0x14c   : > { %p4740_p6 = pnand %p4738_p5, %p6053_p1 }
 0x14e   : > { %p4741_p10 = pneg %p4740_p6 }
 0x150   : > { %p4746_p11 = pnand %p4744_p3, %p4741_p10 }
 0x152   : > { %4749 = shalt.err (!%p4746_p11)
}
 0x153   : > { %s4750_s25 = scalar_lea.vmem %s640_s21, 128  ;;  %p4758_p2 = scmp.lt.s32.totalorder %s640_s21, %s640_s21 }
 0x154   : > { %p4751_p8 = scmp.ne.s32.totalorder %s640_s21, %s4750_s25  ;;  %p4759_p13 = scmp.lt.s32.totalorder %s4750_s25, %s4750_s25 }
 0x156   : > { %p4753_p4 = pnand %p4751_p8, %p6053_p1  ;;  %p4760_p0 = por %p4759_p13, %p4758_p2 }
 0x158   : > { %p4754_p12 = pneg %p4753_p4 }
 0x15a   : > { %p4761_p7 = pnand %p4760_p0, %p4754_p12 }
 0x15c   : > { %4764 = shalt.err (!%p4761_p7)
}
 0x15d   : > { %p6058_p5 = scmp.ne.s32.totalorder %s6041_s27, 0  ;;  %s4925_s24 = smov [#allocation19]  }
 0x15e   : > { %s649_s22 = sshll.u32 %s4925_s24, 4  ;;  %s6059_s28 = sld [smem:[#allocation47_spill]]  ;;  %s650_s22 = int_to_ptr.vmem [resolvable:$true] %s649_s22 }
 0x15f   : > { %4028 = dma.hbm_to_vmem [thread:$0]  (!%p6058_p5), %s6057_s23, 128, %s640_s21, [#allocation7]  }
 0x160   : > { %s6061_s0 = sld [smem:[#allocation49_spill]] }
 0x164   : > { %s6060_s19 = smov %s6059_s28  ;;  %s5473_s30 = scalar_lea.hbm %s6059_s28, %s5254_s4 }
 0x166   : > { %s4765_s25 = scalar_lea.hbm %s6061_s0, 8192 }
 0x167   : > { %p4766_p7 = scmp.ne.s32.totalorder %s6061_s0, %s4765_s25  ;;  %p4772_p3 = scmp.lt.u32.totalorder %s4765_s25, %s6061_s0 }
 0x169   : > { %p4768_p6 = pnand %p4766_p7, %p6053_p1 }
 0x16b   : > { %p4769_p10 = pneg %p4768_p6 }
 0x16d   : > { %p4774_p11 = pnand %p4772_p3, %p4769_p10 }
 0x16f   : > { %4777 = shalt.err (!%p4774_p11)
}
 0x170   : > { %s4778_s15 = scalar_lea.vmem %s650_s22, 8192  ;;  %p4786_p2 = scmp.lt.s32.totalorder %s650_s22, %s650_s22 }
 0x171   : > { %p4779_p8 = scmp.ne.s32.totalorder %s650_s22, %s4778_s15  ;;  %p4787_p13 = scmp.lt.s32.totalorder %s4778_s15, %s4778_s15 }
 0x173   : > { %p4781_p4 = pnand %p4779_p8, %p6053_p1  ;;  %p4788_p0 = por %p4787_p13, %p4786_p2 }
 0x175   : > { %p4782_p12 = pneg %p4781_p4 }
 0x177   : > { %p4789_p9 = pnand %p4788_p0, %p4782_p12 }
 0x179   : > { %4792 = shalt.err (!%p4789_p9)
}
 0x17a   : > { %s6062_s7 = smov 8   ;;  %s6063_s9 = smov 128  }
 0x17b   : > { %4031 = dma.hbm_to_vmem [thread:$0]  (!%p6058_p5), %s6061_s0, 8192, %s650_s22, [#allocation20], %s6063_s9, %s6063_s9, %s6062_s7  }
 0x17c   : > { %s850_s6 = scalar_lea.vmem [#allocation17], %s5116_s3  ;;  %s4793_s29 = scalar_lea.hbm %s5473_s30, 16 }
 0x17d   : > { %s857_s11 = sshll.u32 %s850_s6, 4  ;;  %p4794_p9 = scmp.ne.s32.totalorder %s5473_s30, %s4793_s29  ;;  %s858_s11 = int_to_ptr.vmem [resolvable:$true] %s857_s11 }
 0x17e   : > { %p6064_p1 = scmp.ne.s32.totalorder %s6047_s2, 0  ;;  %s4798_s5 = scalar_lea.hbm %s6060_s19, 32 }
 0x17f   : > { %p4799_p10 = scmp.lt.u32.totalorder %s5473_s30, %s6060_s19  ;;  %p4800_p3 = scmp.lt.u32.totalorder %s4798_s5, %s4793_s29 }
 0x180   : > { %p4796_p7 = pnand %p4794_p9, %p6064_p1  ;;  %p4802_p8 = scmp.lt.u32.totalorder %s4793_s29, %s5473_s30 }
 0x181   : > { %p4801_p11 = por %p4800_p3, %p4799_p10 }
 0x182   : > { %p4797_p6 = pneg %p4796_p7 }
 0x183   : > { %p4803_p5 = por %p4802_p8, %p4801_p11 }
 0x185   : > { %p4804_p4 = pnand %p4803_p5, %p4797_p6 }
 0x187   : > { %4807 = shalt.err (!%p4804_p4)
}
 0x188   : > { %s4808_s3 = scalar_lea.vmem %s858_s11, 16  ;;  %s4926_s22 = smov [#allocation17]  }
 0x189   : > { %p4809_p12 = scmp.ne.s32.totalorder %s858_s11, %s4808_s3  ;;  %s4813_s21 = sshll.u32 %s4926_s22, 4  ;;  %s4814_s21 = int_to_ptr.vmem [resolvable:$false] %s4813_s21 }
 0x18a   : > { %s4815_s26 = scalar_lea.vmem %s4814_s21, 32  ;;  %p4816_p0 = scmp.lt.s32.totalorder %s858_s11, %s4814_s21 }
 0x18b   : > { %p4811_p2 = pnand %p4809_p12, %p6064_p1  ;;  %p4817_p9 = scmp.lt.s32.totalorder %s4815_s26, %s4808_s3 }
 0x18d   : > { %p4812_p13 = pneg %p4811_p2  ;;  %p4818_p7 = por %p4817_p9, %p4816_p0 }
 0x18f   : > { %p4819_p3 = pnand %p4818_p7, %p4812_p13 }
 0x191   : > { %4822 = shalt.err (!%p4819_p3)
}
 0x192   : > { %p6065_p10 = scmp.ne.s32.totalorder %s6042_s1, 0  ;;  %s6066_s15 = sld [smem:[#allocation34_spill]] }
 0x194   : > { %4062 = dma.hbm_to_vmem [thread:$0]  (!%p6065_p10), %s5473_s30, 16, %s858_s11, %s5162_s20  }
 0x198   : > { %p6067_p6 = scmp.ne.s32.totalorder %s6066_s15, 0 }
 0x199   : > { %s6068_s2 = sld [smem:[#allocation30_spill]] (!%p6067_p6) }
 0x19a   : > { %866 = sbr.rel (%p6067_p6) target bundleno = 4013 (0xfad), region = 108 }
 0x19f   : > { %p6069_p1 = scmp.eq.s32.totalorder (!%p6067_p6), %s6068_s2, 0 }
 0x1a1   : > { %4866 = dma.done.wait (%p6069_p1), [#allocation4], 256   ;;  %p6070_p11 = pmov %p6069_p1 }
 0x1a2   : > { %p6071_p8 = pmov %p6069_p1 }
 0x1a3   : > { %4868 = vsyncadd (%p6070_p11), [#allocation4], 4294967040 }
 0x1a4   : > { %4870 = dma.done.wait (%p6071_p8), [#allocation7], 16   ;;  %p6072_p5 = pmov %p6069_p1 }
 0x1a5   : > { %s6073_s1 = sld [smem:[#allocation28_spill]]  ;;  %s6074_s7 = sld [smem:[#allocation33_spill]] }
 0x1a6   : > { %4872 = vsyncadd (%p6072_p5), [#allocation7], 4294967280  ;;  %s876_s9 = sand.u32 1, %s6068_s2  }
 0x1a7   : > { %s877_s4 = scalar_lea.sflag [#allocation4], %s876_s9 }
 0x1ab   : > { %s5527_s20 = sand.u32 1, %s6073_s1   ;;  %p6075_p4 = scmp.ne.s32.totalorder %s6074_s7, 0 }
 0x1ac   : > { %s3977_s30 = smul.u32 192, %s5527_s20 }
 0x1ae   : > { %s5530_s24 = scalar_lea.vmem [#allocation8], %s3977_s30 }
 0x1af   : > { %4874 = dma.done.wait (%p6075_p4), %s877_s4, 12416  }
 0x1b0   : > { %4876 = vsyncadd (%p6075_p4), %s877_s4, 4294954880  ;;  %s3978_s6 = smul.u32 3, %s5527_s20  ;;  %s3589_s11 = sshll.u32 %s5527_s20, 6 }
 0x1b1   : > { %s3590_s29 = sshll.u32 %s5527_s20, 8  ;;  %s5541_s28 = scalar_lea.vmem [#allocation10], %s3589_s11 }
 0x1b2   : > { %s5539_s27 = scalar_lea.vmem [#allocation9], %s3978_s6  ;;  %s5545_s25 = scalar_lea.vmem [#allocation13], %s3590_s29 }
 0x1b3   : > { %s5547_s3 = scalar_lea.vmem [#allocation14], %s3590_s29  ;;  %p6076_p12 = pmov %p6069_p1 }
 0x1b4   : > { %p6077_p2 = pmov %p6069_p1 }
 0x1b5   : > { %4878 = dma.done.wait (%p6076_p12), [#allocation7], 128  }
 0x1b6   : > { %4880 = vsyncadd (%p6077_p2), [#allocation7], 4294967168  ;;  %p6078_p13 = pmov %p6069_p1 }
 0x1b7   : > { %p6079_p0 = pmov %p6069_p1 }
 0x1b8   : > { %4882 = dma.done.wait (%p6078_p13), [#allocation20], 8192  }
 0x1b9   : > { %4884 = vsyncadd (%p6079_p0), [#allocation20], 4294959104  ;;  %p1067_p9 = scmp.lt.s32.totalorder %s6068_s2, 1  ;;  %s6081_s29 = sld [smem:[#allocation46_spill]] }
 0x1ba   : > { %s6082_s8 = sld [smem:[#allocation36_spill]]  ;;  %p6083_p7 = scmp.ne.s32.totalorder %s6068_s2, 0 }
 0x1bb   : > { %s5562_s15 = scalar_select %p1067_p9, %s6068_s2, 1 }
 0x1bc   : > { %1080 = sbr.rel (%p6083_p7) target bundleno = 1120 (0x460), region = 168  ;;  %s6084_s7 = sld [smem:[#allocation35_spill]] (!%p6083_p7)  ;;  %v4927_v3 = vmov (!%p6083_p7), 0   ;;  %v1083_v9 = vlaneseq (!%p6083_p7)  ;;  %v4928_v17 = vmov (!%p6083_p7), 0.0   ;;  %v1189_v20 = vld [vmem:[#allocation3] sm:$0xff] (!%p6083_p7)  ;;  %v1190_v21 = vld [vmem:[#allocation3 + $0x8] sm:$0xff] (!%p6083_p7) }
 0x1bd   : > { %s3594_s4 = sshll.u32 %s5562_s15, 2  ;;  %s6085_s0 = sld [smem:[#allocation37_spill]] (!%p6083_p7)  ;;  %4130 = vset.pattern.permute.xlu0 (!%p6083_p7), %v4927_v3  ;;  %vm1201_vm1 = vcmask (!%p6083_p7), 130048   ;;  %vm1107_vm2 = vcmask (!%p6083_p7), 523264  }
 0x1be   : > { %v1195_v13 = vshrl.u32 (!%p6083_p7), %v1083_v9, 7  ;;  %v1084_v28 = vand.u32 (!%p6083_p7), 127, %v1083_v9  ;;  %s6086_s5 = sld [smem:[#allocation39_spill]] (!%p6083_p7)  ;;  %s6089_s22 = sld [smem:[#allocation41_spill]] (!%p6083_p7)  ;;  %v3604_v9 = vld [vmem:[#allocation6] ss:$0 sm:$0xff] (!%p6083_p7) }
 0x1bf   : > { %s5572_s26 = scalar_lea.vmem %s6081_s29, %s3594_s4  ;;  %s6087_s29 = sld [smem:[#allocation38_spill]] (!%p6083_p7) }
 0x1c0   : > { %v5577_v0 = vld [vmem:[%s6082_s8] sm:$0x1]  ;;  %v1196_v19 = vsub.s32 (!%p6083_p7), 0, %v1195_v13  ;;  %v1227_v38 = vsub.s32 (!%p6083_p7), 1, %v1195_v13 }
 0x1c1   : > { %vm1076_vm0 = vcmp.ne.s32.totalorder %v5577_v0, 0 }
 0x1c2   : > { %v1081_v1 = vld [vmem:[%s6084_s7] sm:$0xff] (!%p6083_p7)  ;;  %v1082_v10 = vld [vmem:[%s6084_s7 + $0x8] sm:$0xff] (!%p6083_p7)  ;;  %v3600_v18 = vsel (!%p6083_p7), %vm1076_vm0, 1.0, %v4928_v17 }
 0x1c3   : > { %v1097_v2 = vld [vmem:[%s6085_s0] sm:$0xff]  ;;  %v1098_v4 = vld [vmem:[%s6085_s0 + $0x8] sm:$0xff]  ;;  %v1099_v5 = vld [vmem:[%s6085_s0 + $0x10] sm:$0xff]  ;;  %1086 = vperm.xlu0 %4130, %v1081_v1   ;;  %v1197_v23 = vrot.slane %v3600_v18, %v1196_v19 }
 0x1c4   : > { %v1100_v6 = vld [vmem:[%s6085_s0 + $0x18] sm:$0xff]  ;;  %v3950_v7 = vpack.c.bf16 %v1098_v4, %v1097_v2  ;;  %v1101_v11 = vld [vmem:[%s6085_s0 + $0x20] sm:$0xff]  ;;  %v1102_v12 = vld [vmem:[%s6085_s0 + $0x28] sm:$0xff] }
 0x1c5   : > { %v3954_v8 = vpack.c.bf16 %v1100_v6, %v1099_v5  ;;  %v3958_v14 = vpack.c.bf16 %v1102_v12, %v1101_v11  ;;  %v1103_v15 = vld [vmem:[%s6085_s0 + $0x30] sm:$0xff]  ;;  %v1104_v16 = vld [vmem:[%s6085_s0 + $0x38] sm:$0xff]  ;;  %v1199_v24 = vmul.f32 %v1197_v23, %v1189_v20  ;;  %v1200_v25 = vmul.f32 %v1197_v23, %v1190_v21  ;;  %v1214_v33 = vld [vmem:[%s6086_s5] sm:$0x3]  ;;  %s6088_s1 = smov %s6087_s29 }
 0x1c6   : > { %3951 = vmatprep.subr.bf16.mxu0 %v3950_v7  ;;  %v3962_v22 = vpack.c.bf16 %v1104_v16, %v1103_v15  ;;  %v1222_v35 = vrot.slane %v1214_v33, 7  ;;  %v1106_v41 = vld [vmem:[%s6087_s29 + $0x8] sm:$0xff]  ;;  %v1218_v43 = vrot.slane %v1214_v33, %v1196_v19  ;;  %v1105_v44 = vld [vmem:[%s6088_s1] sm:$0xff] }
 0x1c7   : > { %3953 = vmatpush3.bf16.msra.mxu0 %v3950_v7  ;;  %1089 = vperm.xlu0 %4130, %v1082_v10   ;;  %v1202_v26 = vsel %vm1201_vm1, %v1199_v24, 0.0  ;;  %v1205_v27 = vsel %vm1201_vm1, %v1200_v25, 0.0  ;;  %v3603_v7 = vld [vmem:[%s6089_s22] ss:$0 sm:$0xff] }
 0x1c8   : > { %3955 = vmatprep.subr.bf16.mxu0 %v3954_v8  ;;  %1203 = vadd.xlane.f32.xlu1 %v1202_v26  ;;  %v1224_v37 = vsub.f32 %v1214_v33, %v1222_v35 }
 0x1ca   : > { %v1228_v39 = vrot.slane %v1224_v37, %v1227_v38 }
 0x1cb   : > { %3957 = vmatpush3.bf16.msra.mxu0 %v3954_v8 }
 0x1cc   : > { %3959 = vmatprep.subr.bf16.mxu0 %v3958_v14  ;;  %1206 = vadd.xlane.f32.xlu1 %v1205_v27 }
 0x1cf   : > { %3961 = vmatpush3.bf16.msra.mxu0 %v3958_v14 }
 0x1d0   : > { %3963 = vmatprep.subr.bf16.mxu0 %v3962_v22 }
 0x1d3   : > { %3965 = vmatpush3.bf16.msra.mxu0 %v3962_v22 }
 0x242   : > { %v1087_v29 = vpop.permute.xlu0 %1086 }
 0x243   : > { %vm1091_vm3 = vcmp.eq.s32.totalorder %v1087_v29, %v1084_v28 }
 0x244   : > { %v3596_v30 = vsel %vm1091_vm3, 1.0, %v4928_v17 }
 0x245   : > { %3884 = vmatprep.mubr.msk.f32.mxu0 %vm1107_vm2, %v3596_v30 }
 0x246   : > { %v1090_v31 = vpop.permute.xlu0 %1089 }
 0x247   : > { %vm1092_vm4 = vcmp.eq.s32.totalorder %v1090_v31, %v1084_v28 }
 0x248   : > { %v3597_v32 = vsel %vm1092_vm4, 1.0, %v4928_v17 }
 0x249   : > { %3885 = vmatmul.mubr.msk.f32.vlgmr.msra.gmra.mrb[0].mxu0 %vm1107_vm2, %v3597_v32 }
 0x255   : > { %v1204_v34 = vpop.xlane.xlu1 %1203 }
 0x256   : > { %vm1208_vm6 = vcmp.eq.f32.partialorder %v1204_v34, 0.0 }
 0x257   : > { %v3601_v42 = vsel %vm1208_vm6, 1.0, %v4928_v17 }
 0x258   : > { %v1229_v49 = vmul.f32 %v3601_v42, %v1228_v39 }
 0x259   : > { %v1207_v36 = vpop.xlane.xlu1 %1206 }
 0x25a   : > { %vm1209_vm5 = vcmp.eq.f32.partialorder %v1207_v36, 0.0 }
 0x25b   : > { %v3602_v40 = vsel %vm1209_vm5, 1.0, %v4928_v17 }
 0x25c   : > { %v1230_v46 = vmul.f32 %v3602_v40, %v1228_v39 }
 0x31c   : > { %v3886_v45 = vpop.f32.mrb[0].mxu0 }
 0x31d   : > { %v1186_v47 = vadd.f32 %v3886_v45, %v1106_v41  ;;  %v1180_v48 = vpop.f32.mrb[1].mxu0 }
 0x31e   : > { %v1181_v50 = vadd.f32 %v1180_v48, %v1105_v44 }
 0x31f   : > { %v1220_v51 = vadd.f32 %v1218_v43, %v1186_v47 }
 0x320   : > { %v1219_v52 = vadd.f32 %v1218_v43, %v1181_v50 }
 0x321   : > { %v1232_v53 = vadd.f32 %v1230_v46, %v1220_v51 }
 0x322   : > { %v1231_v54 = vadd.f32 %v1229_v49, %v1219_v52 }
 0x323   : > { %1237 = vadd.xlane.f32.xlu1 %v1232_v53 }
 0x324   : > { %1235 = vadd.xlane.f32.xlu0 %v1231_v54 }
 0x3b0   : > { %v1238_v55 = vpop.xlane.xlu1 %1237 }
 0x3b1   : > { %v1236_v56 = vpop.xlane.xlu0 %1235  ;;  %v1241_v57 = vmul.f32 0.0078125, %v1238_v55 }
 0x3b2   : > { %v1240_v58 = vmul.f32 0.0078125, %v1236_v56 }
 0x3b3   : > { %v1243_v60 = vsub.f32 %v1232_v53, %v1241_v57 }
 0x3b4   : > { %v1242_v59 = vsub.f32 %v1231_v54, %v1240_v58 }
 0x3b5   : > { %v1245_v62 = vmul.f32 %v1243_v60, %v1243_v60 }
 0x3b6   : > { %v1244_v61 = vmul.f32 %v1242_v59, %v1242_v59 }
 0x3b8   : > { %1246 = vadd.xlane.f32.xlu1 %v1244_v61 }
 0x3bc   : > { %1248 = vadd.xlane.f32.xlu1 %v1245_v62 }
 0x445   : > { %v1247_v63 = vpop.xlane.xlu1 %1246 }
 0x446   : > { %v1250_v1 = vmul.f32 0.0078125, %v1247_v63 }
 0x448   : > { %v1252_v2 = vadd.f32 1e-12, %v1250_v1 }
 0x449   : > { %v1249_v3 = vpop.xlane.xlu1 %1248 }
 0x44a   : > { %4131 = vrsqrt.f32 %v1252_v2  ;;  %v1251_v4 = vmul.f32 0.0078125, %v1249_v3 }
 0x44c   : > { %v1253_v5 = vadd.f32 1e-12, %v1251_v4 }
 0x44e   : > { %4133 = vrsqrt.f32 %v1253_v5 }
 0x454   : > { %v4132_v6 = vpop.eup %4131 }
 0x455   : > { %v1256_v8 = vmul.f32 %v4132_v6, %v1242_v59 }
 0x457   : > { %v1264_v10 = vmul.f32 %v3603_v7, %v1256_v8 }
 0x458   : > { %v4134_v11 = vpop.eup %4133 }
 0x459   : > { %v1272_v12 = vadd.f32 %v3604_v9, %v1264_v10  ;;  %v1257_v13 = vmul.f32 %v4134_v11, %v1243_v60 }
 0x45b   : > { %1274 = vst [vmem:[#allocation2] sm:$0xff] %v1272_v12  ;;  %v1265_v14 = vmul.f32 %v3603_v7, %v1257_v13 }
 0x45d   : > { %v1273_v15 = vadd.f32 %v3604_v9, %v1265_v14 }
 0x45f   : > { %1275 = vst [vmem:[#allocation2 + $0x8] sm:$0xff] %v1273_v15 }
 0x460 PF: > { %v4155_v16 = vld [vmem:[%s5530_s24 + $0x4] ss:$12 sps:$4 sm:$0xff]   ;;  %v4157_v17 = vld [vmem:[%s5530_s24] ss:$12 sps:$4 sm:$0xff]   ;;  %v4929_v18 = vmov 0   ;;  %v1276_v36 = vlaneseq  ;;  %vm1627_vm7 = vcmask 523264  }
 0x461   : > { %1545 = vmatprep.mubr.bf16.mxu0 %v4929_v18  ;;  %1513 = vmatprep.subr.bf16.mxu0 %v4155_v16  ;;  %v4158_v19 = vld [vmem:[%s5530_s24 + $0x1c] ss:$12 sps:$4 sm:$0xff]   ;;  %v4160_v20 = vld [vmem:[%s5530_s24 + $0x18] ss:$12 sps:$4 sm:$0xff]   ;;  %v4161_v21 = vld [vmem:[%s5530_s24 + $0x34] ss:$12 sps:$4 sm:$0xff]  }
 0x462   : > { %1514 = vmatpush1.bf16.msra.mxu0 %v4157_v17  ;;  %v4163_v22 = vld [vmem:[%s5530_s24 + $0x30] ss:$12 sps:$4 sm:$0xff]   ;;  %v4164_v23 = vld [vmem:[%s5530_s24 + $0x4c] ss:$12 sps:$4 sm:$0xff]   ;;  %v4166_v24 = vld [vmem:[%s5530_s24 + $0x48] ss:$12 sps:$4 sm:$0xff]  }
 0x463   : > { %1515 = vmatprep.subr.bf16.mxu0 %v4158_v19  ;;  %v4167_v25 = vld [vmem:[%s5530_s24 + $0x64] ss:$12 sps:$4 sm:$0xff]   ;;  %v4169_v26 = vld [vmem:[%s5530_s24 + $0x60] ss:$12 sps:$4 sm:$0xff]   ;;  %v4170_v27 = vld [vmem:[%s5530_s24 + $0x7c] ss:$12 sps:$4 sm:$0xff]  }
 0x464   : > { %v4172_v28 = vld [vmem:[%s5530_s24 + $0x78] ss:$12 sps:$4 sm:$0xff]   ;;  %v4173_v29 = vld [vmem:[%s5530_s24 + $0x94] ss:$12 sps:$4 sm:$0xff]   ;;  %v4175_v30 = vld [vmem:[%s5530_s24 + $0x90] ss:$12 sps:$4 sm:$0xff]  }
 0x465   : > { %v4176_v31 = vld [vmem:[%s5530_s24 + $0xac] ss:$12 sps:$4 sm:$0xff]   ;;  %v4178_v32 = vld [vmem:[%s5530_s24 + $0xa8] ss:$12 sps:$4 sm:$0xff]   ;;  %v5643_v33 = vld [vmem:[#allocation2] sm:$0xff]  ;;  %v5650_v37 = vshrl.u32 %v1276_v36, 7 }
 0x466   : > { %1516 = vmatpush1.bf16.msra.mxu0 %v4160_v20  ;;  %v5645_v34 = vld [vmem:[#allocation2 + $0x8] sm:$0xff]  ;;  %v5656_v39 = vld [vmem:[%s5539_s27] sm:$0x7]  ;;  %s4930_s27 = smov 64   ;;  %v4931_v58 = vmov 0.0   ;;  %vm4932_vm8 = vmmov 0  }
 0x467   : > { %1517 = vmatprep.subr.bf16.mxu0 %v4161_v21  ;;  %v1335_v35 = vpack.c.bf16 %v5645_v34, %v5643_v33  ;;  %v5653_v38 = vsub.s32 0, %v5650_v37  ;;  %v1376_v40 = vsub.s32 1, %v5650_v37  ;;  %v4179_v55 = vld [vmem:[%s5530_s24 + $0x8] ss:$12 sps:$4 sm:$0xff]   ;;  %3887 = vmatprep.subr.bf16.mxu1 %v4931_v58  ;;  %v4180_v59 = vld [vmem:[%s5530_s24 + $0x20] ss:$12 sps:$4 sm:$0xff]  }
 0x468   : > { %3888 = vmatpush3.bf16.msra.mxu1 %v4179_v55  ;;  %3903 = vmatprep.mubr.msk.bf16.mxu1 %vm4932_vm8, %v4931_v58  ;;  %s4933_s2 = smov 16   ;;  %v4181_v60 = vld [vmem:[%s5530_s24 + $0x38] ss:$12 sps:$4 sm:$0xff]   ;;  %v4182_v61 = vld [vmem:[%s5530_s24 + $0x50] ss:$12 sps:$4 sm:$0xff]   ;;  %v1380_v12 = vsub.s32 2, %v5650_v37 }
 0x469   : > { %v1373_v41 = vrot.slane %v5656_v39, %v5653_v38  ;;  %v1377_v43 = vrot.slane %v5656_v39, %v1376_v40  ;;  %v1309_v56 = vrot.slane %v5577_v0, %v5653_v38  ;;  %3889 = vmatprep.subr.bf16.mxu1 %v4931_v58  ;;  %v4183_v62 = vld [vmem:[%s5530_s24 + $0x68] ss:$12 sps:$4 sm:$0xff]   ;;  %v4184_v63 = vld [vmem:[%s5530_s24 + $0x80] ss:$12 sps:$4 sm:$0xff]   ;;  %v4185_v1 = vld [vmem:[%s5530_s24 + $0x98] ss:$12 sps:$4 sm:$0xff]  }
 0x46a   : > { %1518 = vmatpush1.bf16.msra.mxu0 %v4163_v22  ;;  %v4186_v2 = vld [vmem:[%s5530_s24 + $0xb0] ss:$12 sps:$4 sm:$0xff]   ;;  %v1381_v13 = vrot.slane %v5656_v39, %v1380_v12  ;;  %vm6014_vm9 = vcmask 130048   ;;  %s6096_s21 = sld [smem:[#allocation45_spill]]  ;;  %s6102_s30 = scalar_lea.vmem [#allocation17], %s5527_s20 }
 0x46b   : > { %1519 = vmatprep.subr.bf16.mxu0 %v4164_v23  ;;  %1310 = vrot.lane.b32.xlu1 %v1309_v56, %s4933_s2  ;;  %s6103_s11 = sld [smem:[#allocation30_spill]] }
 0x46c   : > { %3890 = vmatpush3.bf16.msra.mxu1 %v4180_v59 }
 0x46d   : > { %3891 = vmatprep.subr.bf16.mxu1 %v4931_v58 }
 0x46e   : > { %1520 = vmatpush1.bf16.msra.mxu0 %v4166_v24  ;;  %v1279_v24 = vadd.s32 16, %v5650_v37 }
 0x46f   : > { %1521 = vmatprep.subr.bf16.mxu0 %v4167_v25  ;;  %v1282_v25 = vand.u32 127, %v1276_v36  ;;  %v1283_v36 = vshra.s32 %v5650_v37, 4 }
 0x470   : > { %3892 = vmatpush3.bf16.msra.mxu1 %v4181_v60  ;;  %s6097_s5 = scalar_lea.vmem %s6096_s21, %s5562_s15  ;;  %s6098_s15 = scalar_lea.vmem [#allocation11], %s5527_s20 }
 0x471   : > { %3893 = vmatprep.subr.bf16.mxu1 %v4931_v58  ;;  %v1287_v39 = vshra.s32 %v1282_v25, 4  ;;  %p3711_p3 = scmp.ne.s32.totalorder %s6103_s11, 1 }
 0x472   : > { %1522 = vmatpush1.bf16.msra.mxu0 %v4169_v26 }
 0x473   : > { %1523 = vmatprep.subr.bf16.mxu0 %v4170_v27  ;;  %v1294_v27 = vand.u32 15, %v1279_v24  ;;  %vm1288_vm13 = vcmp.eq.s32.totalorder %v1283_v36, %v1287_v39 }
 0x474   : > { %3894 = vmatpush3.bf16.msra.mxu1 %v4182_v61 }
 0x475   : > { %3895 = vmatprep.subr.bf16.mxu1 %v4931_v58 }
 0x476   : > { %1524 = vmatpush1.bf16.msra.mxu0 %v4172_v28  ;;  %v1300_v28 = vand.u32 15, %v1282_v25 }
 0x477   : > { %1525 = vmatprep.subr.bf16.mxu0 %v4173_v29  ;;  %v1292_v29 = vand.u32 15, %v5650_v37 }
 0x478   : > { %3896 = vmatpush3.bf16.msra.mxu1 %v4183_v62 }
 0x479   : > { %3897 = vmatprep.subr.bf16.mxu1 %v4931_v58 }
 0x47a   : > { %1526 = vmatpush1.bf16.msra.mxu0 %v4175_v30  ;;  %v1280_v30 = vadd.s32 24, %v5650_v37 }
 0x47b   : > { %1527 = vmatprep.subr.bf16.mxu0 %v4176_v31  ;;  %v1278_v31 = vadd.s32 8, %v5650_v37 }
 0x47c   : > { %3898 = vmatpush3.bf16.msra.mxu1 %v4184_v63 }
 0x47d   : > { %3899 = vmatprep.subr.bf16.mxu1 %v4931_v58 }
 0x47e   : > { %1528 = vmatpush1.bf16.msra.mxu0 %v4178_v32  ;;  %v1285_v32 = vshra.s32 %v1279_v24, 4 }
 0x480   : > { %3900 = vmatpush3.bf16.msra.mxu1 %v4185_v1  ;;  %vm1290_vm11 = vcmp.eq.s32.totalorder %v1285_v32, %v1287_v39 }
 0x481   : > { %1546 = vmatmul.mubr.bf16.vlgmr.msra.gmra.mrb[0].mxu0 %v1335_v35  ;;  %3901 = vmatprep.subr.bf16.mxu1 %v4931_v58 }
 0x484   : > { %3902 = vmatpush3.bf16.msra.mxu1 %v4186_v2 }
 0x485   : > { %3923 = vmatprep.subr.bf16.mxu1 %v4931_v58 }
 0x487   : > { %3904 = vmatmul.mubr.bf16.vlgmr.msra.gmra.mrb[0].mxu1 %v1335_v35 }
 0x488   : > { %3939 = vmatprep.mubr.msk.bf16.mxu1 %vm4932_vm8, %v4931_v58 }
 0x4dd   : > { %v1311_v23 = vpop.permute.xlu1 %1310 }
 0x4de   : > { %v1313_v26 = vsel %vm6014_vm9, %v5577_v0, %v1311_v23  ;;  %v1293_v0 = vand.u32 15, %v1278_v31 }
 0x4df   : > { %vm1314_vm10 = vcmp.ne.s32.totalorder %v1313_v26, 0 }
 0x4e0   : > { %v1319_v35 = vsel %vm1314_vm10, 1, %v4929_v18 }
 0x554   : > { %v1547_v42 = vpop.f32.mrb[0].mxu0 }
 0x555   : > { %v1549_v44 = vpop.f32.mrb[1].mxu0  ;;  %v1548_v46 = vadd.f32 %v1547_v42, %v1373_v41  ;;  %v1301_v42 = vshra.s32 %v1300_v28, 3 }
 0x556   : > { %v1551_v45 = vpop.f32.mrb[2].mxu0  ;;  %v1550_v49 = vadd.f32 %v1549_v44, %v1377_v43  ;;  %v1295_v44 = vand.u32 15, %v1280_v30 }
 0x557   : > { %v1552_v47 = vadd.f32 %v1551_v45, %v1373_v41  ;;  %v1553_v48 = vpop.f32.mrb[3].mxu0  ;;  %v1298_v41 = vshra.s32 %v1294_v27, 3  ;;  %v1323_v45 = vrot.slane %v1319_v35, %v5653_v38 }
 0x558   : > { %v1554_v50 = vadd.f32 %v1553_v48, %v1377_v43  ;;  %v1296_v43 = vshra.s32 %v1292_v29, 3  ;;  %v1284_v48 = vshra.s32 %v1278_v31, 4 }
 0x559   : > { %v4140_v51 = vpack.i.bf16 %v1552_v47, %v1548_v46  ;;  %v1605_v52 = vpack.c.bf16 %v1552_v47, %v1548_v46  ;;  %vm1304_vm12 = vcmp.eq.s32.totalorder %v1298_v41, %v1301_v42  ;;  %v1286_v46 = vshra.s32 %v1280_v30, 4 }
 0x55a   : > { %v1615_v53 = vpack.c.bf16 %v1554_v50, %v1550_v49  ;;  %v4135_v54 = vpack.i.bf16 %v1554_v50, %v1550_v49  ;;  %v1590_v14 = vpop.f32.mrb[0].mxu1  ;;  %vm1302_vm14 = vcmp.eq.s32.totalorder %v1296_v43, %v1301_v42  ;;  %v1299_v47 = vshra.s32 %v1295_v44, 3  ;;  %vm1317_vm0 = vmand %vm1290_vm11, %vm1304_vm12  ;;  %v4193_v50 = vld [vmem:[%s5541_s28 + $0x30] sm:$0xff]  }
 0x55b   : > { %3911 = vmatprep.mubr.msk.bf16.mxu0 %vm1627_vm7, %v1605_v52  ;;  %v5699_v15 = vadd.f32 %v1590_v14, %v1381_v13  ;;  %v3905_v16 = vpop.f32.mrb[1].mxu1  ;;  %v1297_v49 = vshra.s32 %v1293_v0, 3  ;;  %vm5717_vm15 = vcmp.eq.s32.totalorder %v1323_v45, 1  ;;  %vm1315_vm1 = vmand %vm1288_vm13, %vm1302_vm14  ;;  %vm1291_vm2 = vcmp.eq.s32.totalorder %v1286_v46, %v1287_v39  ;;  %v4187_v0 = vld [vmem:[%s5541_s28] sm:$0xff]   ;;  %v4188_v45 = vld [vmem:[%s5541_s28 + $0x8] sm:$0xff]  }
 0x55c   : > { %4136 = vrot.lane.b32.xlu0 %v4135_v54, %s4930_s27  ;;  %3971 = vmatprep.subr.msk.bf16.mxu0 %vm1627_vm7, %v1615_v53  ;;  %v1635_v57 = vsel %vm1627_vm7, %v1615_v53, 0  ;;  %v1593_v17 = vpop.f32.mrb[2].mxu1  ;;  %vm1305_vm3 = vcmp.eq.s32.totalorder %v1299_v47, %v1301_v42  ;;  %vm1327_vm4 = vmand %vm1317_vm0, %vm5717_vm15  ;;  %vm1289_vm5 = vcmp.eq.s32.totalorder %v1284_v48, %v1287_v39  ;;  %v4934_v53 = vmov -10000.0   ;;  %v4189_v46 = vld [vmem:[%s5541_s28 + $0x10] sm:$0xff]   ;;  %v4190_v47 = vld [vmem:[%s5541_s28 + $0x18] sm:$0xff]  }
 0x55d   : > { %3908 = vmatpush3.bf16.xpose.msra.mxu0 %v1635_v57  ;;  %v5701_v19 = vadd.f32 %v1593_v17, %v1381_v13  ;;  %v3906_v20 = vpop.f32.mrb[3].mxu1  ;;  %vm1303_vm6 = vcmp.eq.s32.totalorder %v1297_v49, %v1301_v42  ;;  %vm1325_vm8 = vmand %vm1315_vm1, %vm5717_vm15  ;;  %v1331_v54 = vsel %vm1327_vm4, 0.0, %v4934_v53  ;;  %vm1705_vm13 = vcmask 261120   ;;  %3924 = vmatpush3.bf16.msra.mxu1 %v4187_v0  ;;  %v4191_v48 = vld [vmem:[%s5541_s28 + $0x20] sm:$0xff]   ;;  %v4192_v49 = vld [vmem:[%s5541_s28 + $0x28] sm:$0xff]  }
 0x55e   : > { %vm5725_vm10 = vmand %vm1291_vm2, %vm1305_vm3  ;;  %v1329_v57 = vsel %vm1325_vm8, 0.0, %v4934_v53  ;;  %3925 = vmatprep.subr.bf16.mxu1 %v4931_v58  ;;  %v4233_v0 = vld [vmem:[%s5545_s25 + $0xc4] ss:$16 sps:$4 sm:$0xff]  }
 0x55f   : > { %v4145_v21 = vpack.i.bf16 %v5701_v19, %v5699_v15  ;;  %v1625_v22 = vpack.c.bf16 %v5701_v19, %v5699_v15  ;;  %vm5729_vm9 = vmand %vm1289_vm5, %vm1303_vm6 }
 0x560   : > { %4141 = vrot.lane.b32.xlu0 %v4140_v51, %s4930_s27  ;;  %vm1328_vm11 = vmand %vm5725_vm10, %vm5717_vm15  ;;  %v4194_v51 = vld [vmem:[%s5541_s28 + $0x38] sm:$0xff]  }
 0x561   : > { %vm1326_vm12 = vmand %vm5729_vm9, %vm5717_vm15  ;;  %3926 = vmatpush3.bf16.msra.mxu1 %v4188_v45  ;;  %v4236_v45 = vld [vmem:[%s5545_s25 + $0xcc] ss:$16 sps:$4 sm:$0xff]   ;;  %vm6104_vm9 = vcmask (!%p3711_p3), 130048  }
 0x562   : > { %3927 = vmatprep.subr.bf16.mxu1 %v4931_v58 }
 0x565   : > { %3928 = vmatpush3.bf16.msra.mxu1 %v4189_v46  ;;  %v4231_v46 = vld [vmem:[%s5545_s25 + $0xc0] ss:$16 sps:$4 sm:$0xff]  }
 0x566   : > { %3929 = vmatprep.subr.bf16.mxu1 %v4931_v58 }
 0x569   : > { %3930 = vmatpush3.bf16.msra.mxu1 %v4190_v47  ;;  %v4234_v47 = vld [vmem:[%s5545_s25 + $0xc8] ss:$16 sps:$4 sm:$0xff]  }
 0x56a   : > { %3931 = vmatprep.subr.bf16.mxu1 %v4931_v58 }
 0x56d   : > { %3932 = vmatpush3.bf16.msra.mxu1 %v4191_v48  ;;  %v4239_v48 = vld [vmem:[%s5545_s25 + $0xe4] ss:$16 sps:$4 sm:$0xff]  }
 0x56e   : > { %3933 = vmatprep.subr.bf16.mxu1 %v4931_v58 }
 0x571   : > { %3934 = vmatpush3.bf16.msra.mxu1 %v4192_v49  ;;  %v4237_v49 = vld [vmem:[%s5545_s25 + $0xe0] ss:$16 sps:$4 sm:$0xff]  }
 0x572   : > { %3935 = vmatprep.subr.bf16.mxu1 %v4931_v58 }
 0x575   : > { %3936 = vmatpush3.bf16.msra.mxu1 %v4193_v50  ;;  %v4240_v50 = vld [vmem:[%s5545_s25 + $0xe8] ss:$16 sps:$4 sm:$0xff]  }
 0x576   : > { %3937 = vmatprep.subr.bf16.mxu1 %v4931_v58 }
 0x579   : > { %3938 = vmatpush3.bf16.msra.mxu1 %v4194_v51  ;;  %v4242_v51 = vld [vmem:[%s5545_s25 + $0xec] ss:$16 sps:$4 sm:$0xff]  }
 0x5ce   : > { %v4137_v3 = vpop.permute.xlu0 %4136 }
 0x5cf   : > { %v4139_v4 = vunpack.i.h.bf16 %v4137_v3  ;;  %v4138_v5 = vunpack.i.l.bf16 %v4137_v3  ;;  %v1332_v3 = vsel %vm1328_vm11, 0.0, %v4934_v53 }
 0x5d1   : > { %v1616_v6 = vpack.c.bf16 %v4139_v4, %v4138_v5 }
 0x5d2   : > { %v4142_v7 = vpop.permute.xlu0 %4141 }
 0x5d3   : > { %3972 = vmatprep.subr.msk.bf16.mxu0 %vm1627_vm7, %v1616_v6  ;;  %v1638_v8 = vsel %vm1627_vm7, %v1616_v6, 0  ;;  %v4144_v9 = vunpack.i.h.bf16 %v4142_v7  ;;  %v4143_v10 = vunpack.i.l.bf16 %v4142_v7  ;;  %v1330_v7 = vsel %vm1326_vm12, 0.0, %v4934_v53 }
 0x5d4   : > { %3910 = vmatpush3.bf16.xpose.msra.mxu0 %v1638_v8 }
 0x5d5   : > { %v1606_v11 = vpack.c.bf16 %v4144_v9, %v4143_v10  ;;  %3915 = vmatprep.subr.bf16.mxu0 %v1625_v22 }
 0x5db   : > { %3912 = vmatmul.mubr.msk.bf16.vlgmr.msra.gmra.mrb[4].mxu0 %vm1627_vm7, %v1606_v11 }
 0x5dc   : > { %3916 = vmatpush3.bf16.msra.mxu0 %v1625_v22 }
 0x6ae   : > { %v3913_v55 = vpop.f32.mrb[4].mxu0 }
 0x6af   : > { %v1691_v56 = vmul.f32 0.125, %v3913_v55  ;;  %v1674_v59 = vpop.f32.mrb[5].mxu0 }
 0x6b0   : > { %v1689_v60 = vmul.f32 0.125, %v1674_v59  ;;  %v3914_v61 = vpop.f32.mrb[6].mxu0 }
 0x6b1   : > { %v1695_v62 = vadd.f32 %v1691_v56, %v1331_v54  ;;  %v1692_v63 = vmul.f32 0.125, %v3914_v61  ;;  %v1677_v1 = vpop.f32.mrb[7].mxu0 }
 0x6b2   : > { %v1693_v2 = vadd.f32 %v1689_v60, %v1329_v57  ;;  %v1690_v4 = vmul.f32 0.125, %v1677_v1 }
 0x6b3   : > { %v1701_v5 = vmul.f32 1.442695, %v1695_v62  ;;  %v1696_v6 = vadd.f32 %v1692_v63, %v1332_v3  ;;  %v3633_v63 = vld [vmem:[%s6097_s5] ss:$0 sm:$0xff] }
 0x6b4   : > { %v1697_v8 = vmul.f32 1.442695, %v1693_v2  ;;  %v1694_v9 = vadd.f32 %v1690_v4, %v1330_v7 }
 0x6b5   : > { %4275 = vpow2.f32 %v1701_v5  ;;  %v1703_v10 = vmul.f32 1.442695, %v1696_v6 }
 0x6b6   : > { %4277 = vpow2.f32 %v1697_v8  ;;  %v1699_v11 = vmul.f32 1.442695, %v1694_v9  ;;  %v4195_v8 = vld [vmem:[%s5545_s25] ss:$16 sps:$4 sm:$0xff]   ;;  %v4197_v9 = vld [vmem:[%s5545_s25 + $0x4] ss:$16 sps:$4 sm:$0xff]  }
 0x6b7   : > { %4279 = vpow2.f32 %v1703_v10  ;;  %v4198_v10 = vld [vmem:[%s5545_s25 + $0x8] ss:$16 sps:$4 sm:$0xff]  }
 0x6b8   : > { %4281 = vpow2.f32 %v1699_v11  ;;  %v4200_v11 = vld [vmem:[%s5545_s25 + $0xc] ss:$16 sps:$4 sm:$0xff]  }
 0x6b9   : > { %2207 = vmatprep.subr.bf16.mxu1 %v4200_v11  ;;  %v4249_v11 = vld [vmem:[%s5547_s3 + $0x8] sm:$0xff]  }
 0x6bf   : > { %v4276_v13 = vpop.eup %4275 }
 0x6c0   : > { %v4278_v14 = vpop.eup %4277  ;;  %v1712_v16 = vsel %vm1705_vm13, %v4276_v13, 0.0 }
 0x6c1   : > { %v4280_v17 = vpop.eup %4279  ;;  %1713 = vadd.xlane.f32.xlu0 %v1712_v16  ;;  %v1706_v20 = vsel %vm1705_vm13, %v4278_v14, 0.0  ;;  %v4201_v16 = vld [vmem:[%s5545_s25 + $0x20] ss:$16 sps:$4 sm:$0xff]  }
 0x6c2   : > { %v4282_v22 = vpop.eup %4281  ;;  %1707 = vadd.xlane.f32.xlu1 %v1706_v20  ;;  %v1715_v24 = vsel %vm1705_vm13, %v4280_v17, 0.0 }
 0x6c3   : > { %v1709_v23 = vsel %vm1705_vm13, %v4282_v22, 0.0 }
 0x6c5   : > { %1710 = vadd.xlane.f32.xlu0 %v1709_v23 }
 0x6c6   : > { %1716 = vadd.xlane.f32.xlu1 %v1715_v24 }
 0x6db   : > { %4146 = vrot.lane.b32.xlu0 %v4145_v21, %s4930_s27 }
 0x74e   : > { %v1714_v25 = vpop.xlane.xlu0 %1713 }
 0x74f   : > { %v1708_v26 = vpop.xlane.xlu1 %1707 }
 0x750   : > { %4283 = vrcp.f32 %v1708_v26 }
 0x751   : > { %4285 = vrcp.f32 %v1714_v25 }
 0x752   : > { %v1711_v27 = vpop.xlane.xlu0 %1710 }
 0x753   : > { %4287 = vrcp.f32 %v1711_v27  ;;  %v1717_v28 = vpop.xlane.xlu1 %1716  ;;  %v4209_v27 = vld [vmem:[%s5545_s25 + $0x44] ss:$16 sps:$4 sm:$0xff]  }
 0x754   : > { %4289 = vrcp.f32 %v1717_v28  ;;  %v4212_v28 = vld [vmem:[%s5545_s25 + $0x4c] ss:$16 sps:$4 sm:$0xff]  }
 0x756   : > { %v4147_v29 = vpop.permute.xlu0 %4146 }
 0x757   : > { %v4149_v30 = vunpack.i.h.bf16 %v4147_v29  ;;  %v4148_v31 = vunpack.i.l.bf16 %v4147_v29  ;;  %v4207_v29 = vld [vmem:[%s5545_s25 + $0x40] ss:$16 sps:$4 sm:$0xff]  }
 0x759   : > { %v1626_v32 = vpack.c.bf16 %v4149_v30, %v4148_v31  ;;  %v4210_v30 = vld [vmem:[%s5545_s25 + $0x48] ss:$16 sps:$4 sm:$0xff]   ;;  %v4215_v31 = vld [vmem:[%s5545_s25 + $0x64] ss:$16 sps:$4 sm:$0xff]  }
 0x75a   : > { %v4284_v35 = vpop.eup %4283 }
 0x75b   : > { %3917 = vmatprep.subr.bf16.mxu0 %v1626_v32  ;;  %v4286_v39 = vpop.eup %4285  ;;  %v1722_v21 = vmul.f32 %v4284_v35, %v4278_v14  ;;  %v4206_v14 = vld [vmem:[%s5545_s25 + $0x2c] ss:$16 sps:$4 sm:$0xff]   ;;  %v4213_v35 = vld [vmem:[%s5545_s25 + $0x60] ss:$16 sps:$4 sm:$0xff]  }
 0x75c   : > { %3918 = vmatpush3.bf16.msra.mxu0 %v1626_v32  ;;  %v1724_v42 = vmul.f32 %v4286_v39, %v4276_v13  ;;  %v4203_v13 = vld [vmem:[%s5545_s25 + $0x24] ss:$16 sps:$4 sm:$0xff]   ;;  %v4218_v32 = vld [vmem:[%s5545_s25 + $0x6c] ss:$16 sps:$4 sm:$0xff]   ;;  %v4216_v39 = vld [vmem:[%s5545_s25 + $0x68] ss:$16 sps:$4 sm:$0xff]  }
 0x75d   : > { %v4288_v15 = vpop.eup %4287  ;;  %2164 = vmatprep.subr.bf16.mxu0 %v4197_v9  ;;  %v4247_v9 = vld [vmem:[%s5547_s3 + $0x48] sm:$0xff]  }
 0x75e   : > { %v4290_v19 = vpop.eup %4289  ;;  %v1723_v41 = vmul.f32 %v4288_v15, %v4282_v22  ;;  %v4221_v15 = vld [vmem:[%s5545_s25 + $0x84] ss:$16 sps:$4 sm:$0xff]  }
 0x75f   : > { %v1725_v36 = vmul.f32 %v4290_v19, %v4280_v17  ;;  %v4224_v19 = vld [vmem:[%s5545_s25 + $0x8c] ss:$16 sps:$4 sm:$0xff]  }
 0x760   : > { %v1726_v43 = vpack.c.bf16 %v1723_v41, %v1722_v21  ;;  %v4219_v21 = vld [vmem:[%s5545_s25 + $0x80] ss:$16 sps:$4 sm:$0xff]   ;;  %v4222_v41 = vld [vmem:[%s5545_s25 + $0x88] ss:$16 sps:$4 sm:$0xff]  }
 0x761   : > { %v1727_v44 = vpack.c.bf16 %v1725_v36, %v1724_v42  ;;  %v4227_v42 = vld [vmem:[%s5545_s25 + $0xa4] ss:$16 sps:$4 sm:$0xff]   ;;  %v4230_v36 = vld [vmem:[%s5545_s25 + $0xac] ss:$16 sps:$4 sm:$0xff]  }
 0x762   : > { %3919 = vmatprep.mubr.msk.bf16.mxu0 %vm1705_vm13, %v1726_v43  ;;  %v4225_v43 = vld [vmem:[%s5545_s25 + $0xa0] ss:$16 sps:$4 sm:$0xff]  }
 0x763   : > { %3920 = vmatmul.mubr.msk.bf16.vlgmr.msra.gmra.mrb[8].mxu0 %vm1705_vm13, %v1727_v44  ;;  %v4228_v44 = vld [vmem:[%s5545_s25 + $0xa8] ss:$16 sps:$4 sm:$0xff]  }
 0x764   : > { %2196 = vmatprep.mubr.bf16.mxu0 %v4929_v18  ;;  %2165 = vmatpush1.bf16.msra.mxu0 %v4195_v8  ;;  %v4246_v8 = vld [vmem:[%s5547_s3 + $0x80] sm:$0xff]  }
 0x765   : > { %2166 = vmatprep.subr.bf16.mxu0 %v4203_v13  ;;  %v4250_v13 = vld [vmem:[%s5547_s3 + $0x88] sm:$0xff]  }
 0x768   : > { %2167 = vmatpush1.bf16.msra.mxu0 %v4201_v16  ;;  %v4252_v16 = vld [vmem:[%s5547_s3 + $0xd0] sm:$0xff]  }
 0x769   : > { %2168 = vmatprep.subr.bf16.mxu0 %v4209_v27  ;;  %v4262_v27 = vld [vmem:[%s5547_s3 + $0xa0] sm:$0xff]  }
 0x76c   : > { %2169 = vmatpush1.bf16.msra.mxu0 %v4207_v29  ;;  %v4264_v29 = vld [vmem:[%s5547_s3 + $0xe8] sm:$0xff]  }
 0x76d   : > { %2170 = vmatprep.subr.bf16.mxu0 %v4215_v31  ;;  %v4266_v31 = vld [vmem:[%s5547_s3 + $0xa8] sm:$0xff]  }
 0x770   : > { %2171 = vmatpush1.bf16.msra.mxu0 %v4213_v35  ;;  %v4268_v35 = vld [vmem:[%s5547_s3 + $0xf0] sm:$0xff]  }
 0x771   : > { %2172 = vmatprep.subr.bf16.mxu0 %v4221_v15  ;;  %v4270_v15 = vld [vmem:[%s5547_s3 + $0xb0] sm:$0xff]  }
 0x774   : > { %2173 = vmatpush1.bf16.msra.mxu0 %v4219_v21  ;;  %v4272_v21 = vld [vmem:[%s5547_s3 + $0xf8] sm:$0xff]  }
 0x775   : > { %2174 = vmatprep.subr.bf16.mxu0 %v4227_v42  ;;  %v4274_v42 = vld [vmem:[%s5547_s3 + $0xb8] sm:$0xff]  }
 0x778   : > { %2175 = vmatpush1.bf16.msra.mxu0 %v4225_v43  ;;  %v1998_v43 = vsub.s32 3, %v5650_v37 }
 0x779   : > { %2176 = vmatprep.subr.bf16.mxu0 %v4233_v0 }
 0x77c   : > { %2177 = vmatpush1.bf16.msra.mxu0 %v4231_v46 }
 0x77d   : > { %2178 = vmatprep.subr.bf16.mxu0 %v4239_v48 }
 0x780   : > { %2179 = vmatpush1.bf16.msra.mxu0 %v4237_v49 }
 0x836   : > { %v3921_v52 = vpop.f32.mrb[8].mxu0 }
 0x837   : > { %v1768_v53 = vpop.f32.mrb[9].mxu0 }
 0x838   : > { %v3922_v54 = vpop.f32.mrb[10].mxu0 }
 0x839   : > { %v4150_v55 = vpack.i.bf16 %v3922_v54, %v3921_v52  ;;  %v1771_v56 = vpop.f32.mrb[11].mxu0 }
 0x83b   : > { %4151 = vrot.lane.b32.xlu1 %v4150_v55, %s4930_s27 }
 0x8ad   : > { %v4152_v57 = vpop.permute.xlu1 %4151 }
 0x8ae   : > { %v4154_v59 = vunpack.i.h.bf16 %v4152_v57  ;;  %v4153_v60 = vunpack.i.l.bf16 %v4152_v57 }
 0x8b0   : > { %v1791_v61 = vsel %vm1627_vm7, %v1768_v53, %v4153_v60  ;;  %v1792_v62 = vsel %vm1627_vm7, %v1771_v56, %v4154_v59  ;;  %v3642_v60 = vld [vmem:[%s6098_s15] ss:$0 sm:$0xff]  ;;  %vm4936_vm7 = vmmov (!%p3711_p3), 0  }
 0x8b1   : > { %v1793_v58 = vpack.c.bf16 %v1792_v62, %v1791_v61 }
 0x8b3   : > { %3940 = vmatmul.mubr.bf16.vlgmr.msra.gmra.mrb[4].mxu1 %v1793_v58 }
 0x8b4   : > { %2239 = vmatprep.mubr.bf16.mxu1 %v4929_v18  ;;  %2208 = vmatpush1.bf16.msra.mxu1 %v4198_v10  ;;  %v4248_v10 = vld [vmem:[%s5547_s3 + $0xc8] sm:$0xff]  }
 0x8b5   : > { %2209 = vmatprep.subr.bf16.mxu1 %v4206_v14  ;;  %v4251_v14 = vld [vmem:[%s5547_s3 + $0x50] sm:$0xff]  }
 0x986   : > { %v1899_v1 = vpop.f32.mrb[4].mxu1 }
 0x987   : > { %v1900_v2 = vadd.f32 %v3633_v63, %v1899_v1  ;;  %v3941_v3 = vpop.f32.mrb[5].mxu1 }
 0x988   : > { %v1902_v4 = vpop.f32.mrb[6].mxu1 }
 0x989   : > { %v1903_v5 = vadd.f32 %v3633_v63, %v1902_v4  ;;  %v3942_v6 = vpop.f32.mrb[7].mxu1  ;;  %v1906_v7 = vadd.f32 %v1900_v2, %v5643_v33  ;;  %v4204_v33 = vld [vmem:[%s5545_s25 + $0x28] ss:$16 sps:$4 sm:$0xff]   ;;  %s6099_s25 = scalar_lea.vmem [#allocation12], %s5527_s20 }
 0x98a   : > { %2210 = vmatpush1.bf16.msra.mxu1 %v4204_v33  ;;  %v3643_v1 = vld [vmem:[%s6099_s25] ss:$0 sm:$0xff]  ;;  %v4243_v6 = vld [vmem:[%s5547_s3 + $0x40] sm:$0xff]  }
 0x98b   : > { %1910 = vadd.xlane.f32.xlu1 %v1906_v7  ;;  %v1907_v18 = vadd.f32 %v1903_v5, %v5645_v34  ;;  %2211 = vmatprep.subr.bf16.mxu1 %v4212_v28  ;;  %v4253_v33 = vld [vmem:[%s5547_s3 + $0x10] sm:$0xff]   ;;  %v4263_v28 = vld [vmem:[%s5547_s3 + $0x68] sm:$0xff]  }
 0x98c   : > { %3821 = vmatprep.subr.bf16.mxu0 %v4243_v6 }
 0x98d   : > { %1912 = vadd.xlane.f32.xlu0 %v1907_v18 }
 0x98e   : > { %2212 = vmatpush1.bf16.msra.mxu1 %v4210_v30  ;;  %v4265_v30 = vld [vmem:[%s5547_s3 + $0x28] sm:$0xff]  }
 0x98f   : > { %2213 = vmatprep.subr.bf16.mxu1 %v4218_v32  ;;  %v4267_v32 = vld [vmem:[%s5547_s3 + $0x70] sm:$0xff]  }
 0x992   : > { %2214 = vmatpush1.bf16.msra.mxu1 %v4216_v39  ;;  %v4269_v39 = vld [vmem:[%s5547_s3 + $0x30] sm:$0xff]  }
 0x993   : > { %2215 = vmatprep.subr.bf16.mxu1 %v4224_v19  ;;  %v4271_v19 = vld [vmem:[%s5547_s3 + $0x78] sm:$0xff]  }
 0x996   : > { %2216 = vmatpush1.bf16.msra.mxu1 %v4222_v41  ;;  %v4273_v41 = vld [vmem:[%s5547_s3 + $0x38] sm:$0xff]  }
 0x997   : > { %2217 = vmatprep.subr.bf16.mxu1 %v4230_v36  ;;  %v1982_v36 = vld [vmem:[%s5572_s26] sm:$0xf]  ;;  %s6101_s26 = scalar_lea.vmem [#allocation16], %s5527_s20 }
 0x998   : > { %v1995_v0 = vrot.slane %v1982_v36, %v1380_v12  ;;  %v1999_v46 = vrot.slane %v1982_v36, %v1998_v43 }
 0x99a   : > { %2218 = vmatpush1.bf16.msra.mxu1 %v4228_v44  ;;  %v1987_v44 = vrot.slane %v1982_v36, %v5653_v38 }
 0x99b   : > { %2219 = vmatprep.subr.bf16.mxu1 %v4236_v45  ;;  %v1991_v45 = vrot.slane %v1982_v36, %v1376_v40 }
 0x99e   : > { %2220 = vmatpush1.bf16.msra.mxu1 %v4234_v47 }
 0x99f   : > { %2221 = vmatprep.subr.bf16.mxu1 %v4242_v51 }
 0x9a2   : > { %2222 = vmatpush1.bf16.msra.mxu1 %v4240_v50 }
 0xa18   : > { %v1911_v34 = vpop.xlane.xlu1 %1910 }
 0xa19   : > { %v1915_v17 = vmul.f32 0.0078125, %v1911_v34  ;;  %v4254_v34 = vld [vmem:[%s5547_s3 + $0x90] sm:$0xff]  }
 0xa1a   : > { %v1913_v20 = vpop.xlane.xlu0 %1912 }
 0xa1b   : > { %v5786_v22 = vsub.f32 %v1906_v7, %v1915_v17  ;;  %v1916_v23 = vmul.f32 0.0078125, %v1913_v20  ;;  %v4244_v7 = vld [vmem:[%s5547_s3 + $0xc0] sm:$0xff]   ;;  %v4255_v17 = vld [vmem:[%s5547_s3 + $0x58] sm:$0xff]  }
 0xa1c   : > { %3843 = vmatprep.subr.bf16.mxu1 %v4244_v7  ;;  %v4256_v20 = vld [vmem:[%s5547_s3 + $0xd8] sm:$0xff]  }
 0xa1d   : > { %v5788_v24 = vsub.f32 %v1907_v18, %v1916_v23  ;;  %v1919_v25 = vmul.f32 %v5786_v22, %v5786_v22  ;;  %v4245_v18 = vld [vmem:[%s5547_s3] sm:$0xff]   ;;  %v4258_v23 = vld [vmem:[%s5547_s3 + $0x98] sm:$0xff]  }
 0xa1f   : > { %1921 = vadd.xlane.f32.xlu0 %v1919_v25  ;;  %v1920_v26 = vmul.f32 %v5788_v24, %v5788_v24  ;;  %v4260_v25 = vld [vmem:[%s5547_s3 + $0xe0] sm:$0xff]  }
 0xa21   : > { %1923 = vadd.xlane.f32.xlu1 %v1920_v26  ;;  %v4261_v26 = vld [vmem:[%s5547_s3 + $0x20] sm:$0xff]  }
 0xaac   : > { %v1922_v52 = vpop.xlane.xlu0 %1921 }
 0xaad   : > { %v1925_v53 = vmul.f32 0.0078125, %v1922_v52 }
 0xaae   : > { %v1924_v54 = vpop.xlane.xlu1 %1923 }
 0xaaf   : > { %v1927_v55 = vadd.f32 1e-12, %v1925_v53  ;;  %v1926_v56 = vmul.f32 0.0078125, %v1924_v54 }
 0xab1   : > { %4291 = vrsqrt.f32 %v1927_v55  ;;  %v1928_v57 = vadd.f32 1e-12, %v1926_v56 }
 0xab3   : > { %4293 = vrsqrt.f32 %v1928_v57 }
 0xabb   : > { %v4292_v59 = vpop.eup %4291 }
 0xabc   : > { %v1931_v61 = vmul.f32 %v4292_v59, %v5786_v22  ;;  %v4257_v22 = vld [vmem:[%s5547_s3 + $0x18] sm:$0xff]  }
 0xabd   : > { %v4294_v62 = vpop.eup %4293 }
 0xabe   : > { %v1932_v58 = vmul.f32 %v4294_v62, %v5788_v24  ;;  %v1939_v63 = vmul.f32 %v3642_v60, %v1931_v61  ;;  %v4259_v24 = vld [vmem:[%s5547_s3 + $0x60] sm:$0xff]   ;;  %s6100_s3 = scalar_lea.vmem [#allocation15], %s5527_s20 }
 0xac0   : > { %v1940_v2 = vmul.f32 %v3642_v60, %v1932_v58  ;;  %v5824_v3 = vadd.f32 %v3643_v1, %v1939_v63 }
 0xac2   : > { %v5826_v4 = vadd.f32 %v3643_v1, %v1940_v2 }
 0xac4   : > { %v1949_v5 = vpack.c.bf16 %v5826_v4, %v5824_v3 }
 0xac6   : > { %2197 = vmatmul.mubr.bf16.vlgmr.msra.gmra.mrb[12].mxu0 %v1949_v5  ;;  %2240 = vmatmul.mubr.bf16.vlgmr.msra.gmra.mrb[8].mxu1 %v1949_v5 }
 0xac7   : > { %3822 = vmatpush3.bf16.msra.mxu0 %v4245_v18  ;;  %3844 = vmatpush3.bf16.msra.mxu1 %v4246_v8 }
 0xac8   : > { %3823 = vmatprep.subr.bf16.mxu0 %v4247_v9  ;;  %3845 = vmatprep.subr.bf16.mxu1 %v4248_v10 }
 0xacb   : > { %3824 = vmatpush3.bf16.msra.mxu0 %v4249_v11  ;;  %3846 = vmatpush3.bf16.msra.mxu1 %v4250_v13 }
 0xacc   : > { %3825 = vmatprep.subr.bf16.mxu0 %v4251_v14  ;;  %3847 = vmatprep.subr.bf16.mxu1 %v4252_v16 }
 0xacf   : > { %3826 = vmatpush3.bf16.msra.mxu0 %v4253_v33  ;;  %3848 = vmatpush3.bf16.msra.mxu1 %v4254_v34 }
 0xad0   : > { %3827 = vmatprep.subr.bf16.mxu0 %v4255_v17  ;;  %3849 = vmatprep.subr.bf16.mxu1 %v4256_v20 }
 0xad3   : > { %3828 = vmatpush3.bf16.msra.mxu0 %v4257_v22  ;;  %3850 = vmatpush3.bf16.msra.mxu1 %v4258_v23 }
 0xad4   : > { %3829 = vmatprep.subr.bf16.mxu0 %v4259_v24  ;;  %3851 = vmatprep.subr.bf16.mxu1 %v4260_v25 }
 0xad7   : > { %3830 = vmatpush3.bf16.msra.mxu0 %v4261_v26  ;;  %3852 = vmatpush3.bf16.msra.mxu1 %v4262_v27 }
 0xad8   : > { %3831 = vmatprep.subr.bf16.mxu0 %v4263_v28  ;;  %3853 = vmatprep.subr.bf16.mxu1 %v4264_v29 }
 0xadb   : > { %3832 = vmatpush3.bf16.msra.mxu0 %v4265_v30  ;;  %3854 = vmatpush3.bf16.msra.mxu1 %v4266_v31 }
 0xadc   : > { %3833 = vmatprep.subr.bf16.mxu0 %v4267_v32  ;;  %3855 = vmatprep.subr.bf16.mxu1 %v4268_v35 }
 0xadf   : > { %3834 = vmatpush3.bf16.msra.mxu0 %v4269_v39  ;;  %3856 = vmatpush3.bf16.msra.mxu1 %v4270_v15 }
 0xae0   : > { %3835 = vmatprep.subr.bf16.mxu0 %v4271_v19  ;;  %3857 = vmatprep.subr.bf16.mxu1 %v4272_v21 }
 0xae3   : > { %3836 = vmatpush3.bf16.msra.mxu0 %v4273_v41  ;;  %3858 = vmatpush3.bf16.msra.mxu1 %v4274_v42 }
 0xb99   : > { %v2198_v47 = vpop.f32.mrb[12].mxu0  ;;  %v2241_v48 = vpop.f32.mrb[8].mxu1 }
 0xb9a   : > { %v5869_v49 = vadd.f32 %v2198_v47, %v1987_v44  ;;  %v5871_v50 = vadd.f32 %v2241_v48, %v1995_v0  ;;  %v2200_v51 = vpop.f32.mrb[13].mxu0  ;;  %v2243_v52 = vpop.f32.mrb[9].mxu1 }
 0xb9b   : > { %v5873_v53 = vadd.f32 %v2200_v51, %v1991_v45  ;;  %v5875_v54 = vadd.f32 %v2243_v52, %v1999_v46  ;;  %v2202_v38 = vpop.f32.mrb[14].mxu0  ;;  %v2245_v55 = vpop.f32.mrb[10].mxu1 }
 0xb9c   : > { %v2258_v12 = vmul.f32 0.044715, %v5869_v49  ;;  %v2260_v37 = vmul.f32 0.044715, %v5871_v50  ;;  %v2203_v40 = vadd.f32 %v2202_v38, %v1987_v44  ;;  %v2246_v56 = vadd.f32 %v2245_v55, %v1995_v0  ;;  %v2204_v57 = vpop.f32.mrb[15].mxu0  ;;  %v2247_v59 = vpop.f32.mrb[11].mxu1 }
 0xb9d   : > { %v2259_v60 = vmul.f32 0.044715, %v5873_v53  ;;  %v2261_v61 = vmul.f32 0.044715, %v5875_v54  ;;  %v5881_v62 = vadd.f32 %v2204_v57, %v1991_v45  ;;  %v5883_v58 = vadd.f32 %v2247_v59, %v1999_v46 }
 0xb9e   : > { %v2266_v63 = vmul.f32 %v2258_v12, %v5869_v49  ;;  %v2268_v1 = vmul.f32 %v2260_v37, %v5871_v50  ;;  %v2262_v2 = vmul.f32 0.044715, %v2203_v40  ;;  %v2264_v5 = vmul.f32 0.044715, %v2246_v56 }
 0xb9f   : > { %v2267_v6 = vmul.f32 %v2259_v60, %v5873_v53  ;;  %v2269_v7 = vmul.f32 %v2261_v61, %v5875_v54  ;;  %v2263_v18 = vmul.f32 0.044715, %v5881_v62  ;;  %v2265_v8 = vmul.f32 0.044715, %v5883_v58 }
 0xba0   : > { %v2274_v9 = vmul.f32 %v2266_v63, %v5869_v49  ;;  %v2276_v10 = vmul.f32 %v2268_v1, %v5871_v50  ;;  %v2270_v11 = vmul.f32 %v2262_v2, %v2203_v40  ;;  %v2272_v13 = vmul.f32 %v2264_v5, %v2246_v56 }
 0xba1   : > { %v2275_v14 = vmul.f32 %v2267_v6, %v5873_v53  ;;  %v2277_v16 = vmul.f32 %v2269_v7, %v5875_v54  ;;  %v2271_v33 = vmul.f32 %v2263_v18, %v5881_v62  ;;  %v2273_v34 = vmul.f32 %v2265_v8, %v5883_v58 }
 0xba2   : > { %v2282_v17 = vadd.f32 %v2274_v9, %v5869_v49  ;;  %v2284_v20 = vadd.f32 %v2276_v10, %v5871_v50  ;;  %v2278_v22 = vmul.f32 %v2270_v11, %v2203_v40  ;;  %v2280_v23 = vmul.f32 %v2272_v13, %v2246_v56 }
 0xba3   : > { %v2279_v24 = vmul.f32 %v2271_v33, %v5881_v62  ;;  %v2281_v25 = vmul.f32 %v2273_v34, %v5883_v58  ;;  %v2283_v30 = vadd.f32 %v2275_v14, %v5873_v53  ;;  %v2285_v39 = vadd.f32 %v2277_v16, %v5875_v54 }
 0xba4   : > { %v2290_v26 = vmul.f32 0.7978846, %v2282_v17  ;;  %v2292_v27 = vmul.f32 0.7978846, %v2284_v20  ;;  %v2286_v28 = vadd.f32 %v2278_v22, %v2203_v40  ;;  %v2288_v29 = vadd.f32 %v2280_v23, %v2246_v56 }
 0xba5   : > { %v2287_v31 = vadd.f32 %v2279_v24, %v5881_v62  ;;  %v2291_v15 = vmul.f32 0.7978846, %v2283_v30  ;;  %v2289_v21 = vadd.f32 %v2281_v25, %v5883_v58  ;;  %v2293_v41 = vmul.f32 0.7978846, %v2285_v39 }
 0xba6   : > { %4295 = vtanh.f32 %v2290_v26  ;;  %v2294_v32 = vmul.f32 0.7978846, %v2286_v28  ;;  %v2296_v35 = vmul.f32 0.7978846, %v2288_v29  ;;  %v2250_v47 = vmul.f32 0.5, %v5869_v49 }
 0xba7   : > { %4297 = vtanh.f32 %v2292_v27  ;;  %v2295_v19 = vmul.f32 0.7978846, %v2287_v31  ;;  %v2297_v42 = vmul.f32 0.7978846, %v2289_v21  ;;  %v2254_v48 = vmul.f32 0.5, %v2203_v40 }
 0xba8   : > { %4299 = vtanh.f32 %v2294_v32  ;;  %v2252_v38 = vmul.f32 0.5, %v5871_v50  ;;  %v2256_v55 = vmul.f32 0.5, %v2246_v56  ;;  %v2251_v57 = vmul.f32 0.5, %v5873_v53 }
 0xba9   : > { %4301 = vtanh.f32 %v2296_v35  ;;  %v2255_v1 = vmul.f32 0.5, %v5881_v62  ;;  %v2253_v40 = vmul.f32 0.5, %v5875_v54  ;;  %v2257_v7 = vmul.f32 0.5, %v5883_v58  ;;  %v3676_v54 = vld [vmem:[%s6100_s3] ss:$0 sm:$0xff] }
 0xbaa   : > { %4303 = vtanh.f32 %v2291_v15 }
 0xbab   : > { %4305 = vtanh.f32 %v2295_v19 }
 0xbac   : > { %4307 = vtanh.f32 %v2293_v41 }
 0xbad   : > { %4309 = vtanh.f32 %v2297_v42 }
 0xbb0   : > { %v4296_v36 = vpop.eup %4295 }
 0xbb1   : > { %v4298_v43 = vpop.eup %4297  ;;  %v2306_v44 = vadd.f32 1.0, %v4296_v36 }
 0xbb2   : > { %v4300_v0 = vpop.eup %4299  ;;  %v2308_v45 = vadd.f32 1.0, %v4298_v43 }
 0xbb3   : > { %v4302_v46 = vpop.eup %4301  ;;  %v2310_v51 = vadd.f32 1.0, %v4300_v0  ;;  %v2314_v60 = vmul.f32 %v2306_v44, %v2250_v47  ;;  %v3709_v47 = vld [vmem:[%s6101_s26] ss:$0 sm:$0xff] }
 0xbb4   : > { %v4304_v52 = vpop.eup %4303  ;;  %v2312_v12 = vadd.f32 1.0, %v4302_v46  ;;  %v2316_v5 = vmul.f32 %v2308_v45, %v2252_v38 }
 0xbb5   : > { %v4306_v37 = vpop.eup %4305  ;;  %v2307_v59 = vadd.f32 1.0, %v4304_v52  ;;  %v2318_v61 = vmul.f32 %v2310_v51, %v2254_v48  ;;  %v3710_v52 = vld [vmem:[%s6102_s30] ss:$0 sm:$0xff] }
 0xbb6   : > { %v4308_v63 = vpop.eup %4307  ;;  %v2311_v2 = vadd.f32 1.0, %v4306_v37  ;;  %v2320_v6 = vmul.f32 %v2312_v12, %v2256_v55 }
 0xbb7   : > { %v4310_v49 = vpop.eup %4309  ;;  %v2309_v50 = vadd.f32 1.0, %v4308_v63  ;;  %v2322_v56 = vpack.c.bf16 %v2318_v61, %v2314_v60  ;;  %v2315_v18 = vmul.f32 %v2307_v59, %v2251_v57  ;;  %v2719_v60 = vld [vmem:[#allocation18] sm:$0xff] (!%p3711_p3)  ;;  %v4935_v61 = vmov (!%p3711_p3), 0.0|0.0  }
 0xbb8   : > { %v2319_v8 = vmul.f32 %v2311_v2, %v2255_v1  ;;  %v2313_v53 = vadd.f32 1.0, %v4310_v49  ;;  %v2324_v9 = vpack.c.bf16 %v2320_v6, %v2316_v5  ;;  %3966 = vmatprep.subr.bf16.mxu0 (!%p3711_p3), %v4935_v61  ;;  %v4937_v63 = vmov (!%p3711_p3), 0.0   ;;  %v4315_v1 = vld [vmem:[#allocation19] ss:$8 sps:$4 sm:$0xff] (!%p3711_p3)   ;;  %v4317_v2 = vld [vmem:[#allocation19 + $0x4] ss:$8 sps:$4 sm:$0xff] (!%p3711_p3)  }
 0xbb9   : > { %v2317_v11 = vmul.f32 %v2309_v50, %v2253_v40  ;;  %v4318_v5 = vld [vmem:[#allocation19 + $0x104] ss:$8 sps:$4 sm:$0xff] (!%p3711_p3)   ;;  %v4320_v6 = vld [vmem:[#allocation19 + $0x100] ss:$8 sps:$4 sm:$0xff] (!%p3711_p3)   ;;  %v4323_v49 = vld [vmem:[#allocation19 + $0x14] ss:$8 sps:$4 sm:$0xff] (!%p3711_p3)  }
 0xbba   : > { %v2323_v10 = vpack.c.bf16 %v2319_v8, %v2315_v18  ;;  %v2321_v13 = vmul.f32 %v2313_v53, %v2257_v7  ;;  %3229 = vmatprep.subr.bf16.mxu1 (!%p3711_p3), %v4318_v5  ;;  %v4324_v40 = vld [vmem:[#allocation19 + $0x114] ss:$8 sps:$4 sm:$0xff] (!%p3711_p3)   ;;  %v4326_v7 = vld [vmem:[#allocation19 + $0x110] ss:$8 sps:$4 sm:$0xff] (!%p3711_p3)   ;;  %v4330_v18 = vld [vmem:[#allocation19 + $0x124] ss:$8 sps:$4 sm:$0xff] (!%p3711_p3)  }
 0xbbb   : > { %v4321_v50 = vld [vmem:[#allocation19 + $0x10] ss:$8 sps:$4 sm:$0xff] (!%p3711_p3)   ;;  %v4332_v8 = vld [vmem:[#allocation19 + $0x120] ss:$8 sps:$4 sm:$0xff] (!%p3711_p3)  }
 0xbbc   : > { %2621 = vmatprep.mubr.bf16.mxu0 %v2323_v10  ;;  %v2325_v62 = vpack.c.bf16 %v2321_v13, %v2317_v11  ;;  %v4327_v53 = vld [vmem:[#allocation19 + $0x20] ss:$8 sps:$4 sm:$0xff] (!%p3711_p3)   ;;  %v4335_v10 = vld [vmem:[#allocation19 + $0x34] ss:$8 sps:$4 sm:$0xff] (!%p3711_p3)   ;;  %v4338_v11 = vld [vmem:[#allocation19 + $0x130] ss:$8 sps:$4 sm:$0xff] (!%p3711_p3)  }
 0xbbd   : > { %2622 = vmatmul.mubr.bf16.vlgmr.msra.gmra.mrb[16].mxu0 %v2322_v56  ;;  %v4329_v56 = vld [vmem:[#allocation19 + $0x24] ss:$8 sps:$4 sm:$0xff] (!%p3711_p3)   ;;  %v4333_v13 = vld [vmem:[#allocation19 + $0x30] ss:$8 sps:$4 sm:$0xff] (!%p3711_p3)  }
 0xbbe   : > { %2662 = vmatprep.mubr.bf16.mxu1 %v2325_v62  ;;  %3947 = vmatprep.mubr.msk.f32.mxu0 (!%p3711_p3), %vm4936_vm7, %v4937_v63  ;;  %v4342_v62 = vld [vmem:[#allocation19 + $0x144] ss:$8 sps:$4 sm:$0xff] (!%p3711_p3)   ;;  %v4405_v61 = vld [vmem:[#allocation19 + $0xf0] ss:$8 sps:$4 sm:$0xff] (!%p3711_p3)  }
 0xbbf   : > { %2663 = vmatmul.mubr.bf16.vlgmr.msra.gmra.mrb[12].mxu1 %v2324_v9  ;;  %v4336_v9 = vld [vmem:[#allocation19 + $0x134] ss:$8 sps:$4 sm:$0xff] (!%p3711_p3)   ;;  %v4410_v63 = vld [vmem:[#allocation19 + $0x1f0] ss:$8 sps:$4 sm:$0xff] (!%p3711_p3)  }
 0xbc0   : > { %3230 = vmatpush1.bf16.msra.mxu1 (!%p3711_p3), %v4320_v6 }
 0xbc1   : > { %3231 = vmatprep.subr.bf16.mxu1 (!%p3711_p3), %v4324_v40 }
 0xbc4   : > { %3232 = vmatpush1.bf16.msra.mxu1 (!%p3711_p3), %v4326_v7 }
 0xbc5   : > { %3233 = vmatprep.subr.bf16.mxu1 (!%p3711_p3), %v4330_v18 }
 0xbc8   : > { %3234 = vmatpush1.bf16.msra.mxu1 (!%p3711_p3), %v4332_v8 }
 0xbc9   : > { %3235 = vmatprep.subr.bf16.mxu1 (!%p3711_p3), %v4336_v9 }
 0xbcc   : > { %3236 = vmatpush1.bf16.msra.mxu1 (!%p3711_p3), %v4338_v11 }
 0xbcd   : > { %3237 = vmatprep.subr.bf16.mxu1 (!%p3711_p3), %v4342_v62 }
 0xc90   : > { %v3837_v14 = vpop.f32.mrb[16].mxu0 }
 0xc91   : > { %v3838_v16 = vpop.f32.mrb[17].mxu0 }
 0xc92   : > { %v3859_v58 = vpop.f32.mrb[12].mxu1  ;;  %v3839_v33 = vadd.f32 %v3838_v16, %v3837_v14  ;;  %v3840_v34 = vpop.f32.mrb[18].mxu0  ;;  %v4341_v14 = vld [vmem:[#allocation19 + $0x44] ss:$8 sps:$4 sm:$0xff] (!%p3711_p3)   ;;  %v4339_v16 = vld [vmem:[#allocation19 + $0x40] ss:$8 sps:$4 sm:$0xff] (!%p3711_p3)  }
 0xc93   : > { %v3860_v17 = vpop.f32.mrb[13].mxu1  ;;  %v3841_v20 = vpop.f32.mrb[19].mxu0 }
 0xc94   : > { %v2624_v22 = vadd.f32 %v3839_v33, %v3676_v54  ;;  %v3861_v23 = vadd.f32 %v3860_v17, %v3859_v58  ;;  %v3862_v24 = vpop.f32.mrb[14].mxu1  ;;  %v3842_v25 = vadd.f32 %v3841_v20, %v3840_v34  ;;  %v4348_v58 = vld [vmem:[#allocation19 + $0x154] ss:$8 sps:$4 sm:$0xff] (!%p3711_p3)   ;;  %v4350_v34 = vld [vmem:[#allocation19 + $0x150] ss:$8 sps:$4 sm:$0xff] (!%p3711_p3)  }
 0xc95   : > { %v3863_v26 = vpop.f32.mrb[15].mxu1  ;;  %v4347_v33 = vld [vmem:[#allocation19 + $0x54] ss:$8 sps:$4 sm:$0xff] (!%p3711_p3)   ;;  %v4345_v17 = vld [vmem:[#allocation19 + $0x50] ss:$8 sps:$4 sm:$0xff] (!%p3711_p3)  }
 0xc96   : > { %v2665_v27 = vadd.f32 %v3861_v23, %v2624_v22  ;;  %v2627_v28 = vadd.f32 %v3842_v25, %v3676_v54  ;;  %v3864_v29 = vadd.f32 %v3863_v26, %v3862_v24  ;;  %v4344_v54 = vld [vmem:[#allocation19 + $0x140] ss:$8 sps:$4 sm:$0xff] (!%p3711_p3)   ;;  %v4354_v20 = vld [vmem:[#allocation19 + $0x164] ss:$8 sps:$4 sm:$0xff] (!%p3711_p3)   ;;  %v4360_v25 = vld [vmem:[#allocation19 + $0x174] ss:$8 sps:$4 sm:$0xff] (!%p3711_p3)  }
 0xc97   : > { %3238 = vmatpush1.bf16.msra.mxu1 (!%p3711_p3), %v4344_v54  ;;  %v4353_v22 = vld [vmem:[#allocation19 + $0x64] ss:$8 sps:$4 sm:$0xff] (!%p3711_p3)   ;;  %v4356_v23 = vld [vmem:[#allocation19 + $0x160] ss:$8 sps:$4 sm:$0xff] (!%p3711_p3)   ;;  %v4359_v26 = vld [vmem:[#allocation19 + $0x74] ss:$8 sps:$4 sm:$0xff] (!%p3711_p3)  }
 0xc98   : > { %v2668_v30 = vadd.f32 %v3864_v29, %v2627_v28  ;;  %v2671_v31 = vadd.f32 %v2665_v27, %v5824_v3  ;;  %3239 = vmatprep.subr.bf16.mxu1 (!%p3711_p3), %v4348_v58  ;;  %v4351_v24 = vld [vmem:[#allocation19 + $0x60] ss:$8 sps:$4 sm:$0xff] (!%p3711_p3)   ;;  %v4362_v27 = vld [vmem:[#allocation19 + $0x170] ss:$8 sps:$4 sm:$0xff] (!%p3711_p3)   ;;  %v4366_v29 = vld [vmem:[#allocation19 + $0x184] ss:$8 sps:$4 sm:$0xff] (!%p3711_p3)  }
 0xc99   : > { %v4357_v28 = vld [vmem:[#allocation19 + $0x70] ss:$8 sps:$4 sm:$0xff] (!%p3711_p3)  }
 0xc9a   : > { %2675 = vadd.xlane.f32.xlu0 %v2671_v31  ;;  %v2672_v32 = vadd.f32 %v2668_v30, %v5826_v4  ;;  %v4365_v30 = vld [vmem:[#allocation19 + $0x84] ss:$8 sps:$4 sm:$0xff] (!%p3711_p3)  }
 0xc9b   : > { %3240 = vmatpush1.bf16.msra.mxu1 (!%p3711_p3), %v4350_v34 }
 0xc9c   : > { %2677 = vadd.xlane.f32.xlu1 %v2672_v32  ;;  %3241 = vmatprep.subr.bf16.mxu1 (!%p3711_p3), %v4354_v20 }
 0xc9f   : > { %3242 = vmatpush1.bf16.msra.mxu1 (!%p3711_p3), %v4356_v23 }
 0xca0   : > { %3243 = vmatprep.subr.bf16.mxu1 (!%p3711_p3), %v4360_v25 }
 0xca3   : > { %3244 = vmatpush1.bf16.msra.mxu1 (!%p3711_p3), %v4362_v27 }
 0xca4   : > { %3245 = vmatprep.subr.bf16.mxu1 (!%p3711_p3), %v4366_v29 }
 0xd27   : > { %v2676_v35 = vpop.xlane.xlu0 %2675 }
 0xd28   : > { %v2679_v39 = vmul.f32 0.0078125, %v2676_v35  ;;  %v4372_v35 = vld [vmem:[#allocation19 + $0x194] ss:$8 sps:$4 sm:$0xff] (!%p3711_p3)  }
 0xd29   : > { %v2678_v15 = vpop.xlane.xlu1 %2677 }
 0xd2a   : > { %v2681_v19 = vsub.f32 %v2671_v31, %v2679_v39  ;;  %v2680_v21 = vmul.f32 0.0078125, %v2678_v15  ;;  %v4368_v31 = vld [vmem:[#allocation19 + $0x180] ss:$8 sps:$4 sm:$0xff] (!%p3711_p3)   ;;  %v4371_v39 = vld [vmem:[#allocation19 + $0x94] ss:$8 sps:$4 sm:$0xff] (!%p3711_p3)  }
 0xd2b   : > { %3246 = vmatpush1.bf16.msra.mxu1 (!%p3711_p3), %v4368_v31  ;;  %v4374_v15 = vld [vmem:[#allocation19 + $0x190] ss:$8 sps:$4 sm:$0xff] (!%p3711_p3)  }
 0xd2c   : > { %v2682_v41 = vsub.f32 %v2672_v32, %v2680_v21  ;;  %v2683_v42 = vmul.f32 %v2681_v19, %v2681_v19  ;;  %v4363_v32 = vld [vmem:[#allocation19 + $0x80] ss:$8 sps:$4 sm:$0xff] (!%p3711_p3)   ;;  %3247 = vmatprep.subr.bf16.mxu1 (!%p3711_p3), %v4372_v35  ;;  %v4378_v21 = vld [vmem:[#allocation19 + $0x1a4] ss:$8 sps:$4 sm:$0xff] (!%p3711_p3)  }
 0xd2e   : > { %2685 = vadd.xlane.f32.xlu0 %v2683_v42  ;;  %v2684_v36 = vmul.f32 %v2682_v41, %v2682_v41  ;;  %v4380_v42 = vld [vmem:[#allocation19 + $0x1a0] ss:$8 sps:$4 sm:$0xff] (!%p3711_p3)  }
 0xd2f   : > { %3248 = vmatpush1.bf16.msra.mxu1 (!%p3711_p3), %v4374_v15 }
 0xd30   : > { %2687 = vadd.xlane.f32.xlu1 %v2684_v36  ;;  %v4375_v36 = vld [vmem:[#allocation19 + $0xa0] ss:$8 sps:$4 sm:$0xff] (!%p3711_p3)   ;;  %3249 = vmatprep.subr.bf16.mxu1 (!%p3711_p3), %v4378_v21 }
 0xd33   : > { %3250 = vmatpush1.bf16.msra.mxu1 (!%p3711_p3), %v4380_v42 }
 0xdbb   : > { %v2686_v43 = vpop.xlane.xlu0 %2685 }
 0xdbc   : > { %v2689_v44 = vmul.f32 0.0078125, %v2686_v43  ;;  %v4384_v43 = vld [vmem:[#allocation19 + $0x1b4] ss:$8 sps:$4 sm:$0xff] (!%p3711_p3)  }
 0xdbd   : > { %v2688_v0 = vpop.xlane.xlu1 %2687  ;;  %3251 = vmatprep.subr.bf16.mxu1 (!%p3711_p3), %v4384_v43 }
 0xdbe   : > { %v2691_v3 = vadd.f32 1e-12, %v2689_v44  ;;  %v2690_v45 = vmul.f32 0.0078125, %v2688_v0  ;;  %v4383_v44 = vld [vmem:[#allocation19 + $0xb4] ss:$8 sps:$4 sm:$0xff] (!%p3711_p3)  }
 0xdbf   : > { %v4386_v0 = vld [vmem:[#allocation19 + $0x1b0] ss:$8 sps:$4 sm:$0xff] (!%p3711_p3)  }
 0xdc0   : > { %4311 = vrsqrt.f32 %v2691_v3  ;;  %v2692_v4 = vadd.f32 1e-12, %v2690_v45  ;;  %v4381_v3 = vld [vmem:[#allocation19 + $0xb0] ss:$8 sps:$4 sm:$0xff] (!%p3711_p3)   ;;  %v4390_v45 = vld [vmem:[#allocation19 + $0x1c4] ss:$8 sps:$4 sm:$0xff] (!%p3711_p3)   ;;  %3252 = vmatpush1.bf16.msra.mxu1 (!%p3711_p3), %v4386_v0 }
 0xdc1   : > { %3253 = vmatprep.subr.bf16.mxu1 (!%p3711_p3), %v4390_v45 }
 0xdc2   : > { %4313 = vrsqrt.f32 %v2692_v4  ;;  %v4389_v4 = vld [vmem:[#allocation19 + $0xc4] ss:$8 sps:$4 sm:$0xff] (!%p3711_p3)  }
 0xdca   : > { %v4312_v46 = vpop.eup %4311 }
 0xdcb   : > { %v2695_v48 = vmul.f32 %v4312_v46, %v2681_v19  ;;  %v4369_v19 = vld [vmem:[#allocation19 + $0x90] ss:$8 sps:$4 sm:$0xff] (!%p3711_p3)   ;;  %v4392_v46 = vld [vmem:[#allocation19 + $0x1c0] ss:$8 sps:$4 sm:$0xff] (!%p3711_p3)  }
 0xdcc   : > { %v4314_v51 = vpop.eup %4313  ;;  %3254 = vmatpush1.bf16.msra.mxu1 (!%p3711_p3), %v4392_v46 }
 0xdcd   : > { %v2703_v38 = vmul.f32 %v3709_v47, %v2695_v48  ;;  %v2696_v55 = vmul.f32 %v4314_v51, %v2682_v41  ;;  %2718 = sbr.rel (%p3711_p3) target bundleno = 3979 (0xf8b), region = 172  ;;  %v4377_v41 = vld [vmem:[#allocation19 + $0xa4] ss:$8 sps:$4 sm:$0xff] (!%p3711_p3)   ;;  %v4396_v48 = vld [vmem:[#allocation19 + $0x1d4] ss:$8 sps:$4 sm:$0xff] (!%p3711_p3)  }
 0xdce   : > { %v4395_v51 = vld [vmem:[#allocation19 + $0xd4] ss:$8 sps:$4 sm:$0xff] (!%p3711_p3)   ;;  %3255 = vmatprep.subr.bf16.mxu1 (!%p3711_p3), %v4396_v48 }
 0xdcf   : > { %v2711_v12 = vadd.f32 %v3710_v52, %v2703_v38  ;;  %v2704_v37 = vmul.f32 %v3709_v47, %v2696_v55  ;;  %v4387_v47 = vld [vmem:[#allocation19 + $0xc0] ss:$8 sps:$4 sm:$0xff] (!%p3711_p3)   ;;  %v4393_v38 = vld [vmem:[#allocation19 + $0xd0] ss:$8 sps:$4 sm:$0xff] (!%p3711_p3)   ;;  %v4402_v55 = vld [vmem:[#allocation19 + $0x1e4] ss:$8 sps:$4 sm:$0xff] (!%p3711_p3)  }
 0xdd1   : > { %2713 = vst [vmem:[#allocation2] sm:$0xff] %v2711_v12  ;;  %v2712_v57 = vadd.f32 %v3710_v52, %v2704_v37  ;;  %v4398_v52 = vld [vmem:[#allocation19 + $0x1d0] ss:$8 sps:$4 sm:$0xff] (!%p3711_p3)   ;;  %v4404_v37 = vld [vmem:[#allocation19 + $0x1e0] ss:$8 sps:$4 sm:$0xff] (!%p3711_p3)  }
 0xdd2   : > { %3256 = vmatpush1.bf16.msra.mxu1 (!%p3711_p3), %v4398_v52 }
 0xdd3   : > { %2714 = vst [vmem:[#allocation2 + $0x8] sm:$0xff] %v2712_v57  ;;  %v3967_v59 = vpack.c.bf16 (!%p3711_p3), %v2712_v57, %v2711_v12  ;;  %v4401_v12 = vld [vmem:[#allocation19 + $0xe4] ss:$8 sps:$4 sm:$0xff] (!%p3711_p3)   ;;  %v4399_v57 = vld [vmem:[#allocation19 + $0xe0] ss:$8 sps:$4 sm:$0xff] (!%p3711_p3)   ;;  %3257 = vmatprep.subr.bf16.mxu1 (!%p3711_p3), %v4402_v55 }
 0xdd5   : > { %3968 = vmatpush3.bf16.msra.mxu0 %v3967_v59  ;;  %v4407_v59 = vld [vmem:[#allocation19 + $0xf4] ss:$8 sps:$4 sm:$0xff]  }
 0xdd6   : > { %3188 = vmatprep.subr.bf16.mxu0 %v4317_v2  ;;  %3258 = vmatpush1.bf16.msra.mxu1 %v4404_v37 }
 0xdd8   : > { %3948 = vmatmul.mubr.msk.f32.vlgmr.msra.gmra.mrb[0].mxu0 %vm6104_vm9, %v2719_v60  ;;  %v4408_v60 = vld [vmem:[#allocation19 + $0x1f4] ss:$8 sps:$4 sm:$0xff]  }
 0xdd9   : > { %3189 = vmatpush1.bf16.msra.mxu0 %v4315_v1  ;;  %3259 = vmatprep.subr.bf16.mxu1 %v4408_v60 }
 0xdda   : > { %3190 = vmatprep.subr.bf16.mxu0 %v4323_v49  ;;  %3260 = vmatpush1.bf16.msra.mxu1 %v4410_v63 }
 0xddd   : > { %3191 = vmatpush1.bf16.msra.mxu0 %v4321_v50 }
 0xdde   : > { %3192 = vmatprep.subr.bf16.mxu0 %v4329_v56 }
 0xde1   : > { %3193 = vmatpush1.bf16.msra.mxu0 %v4327_v53 }
 0xde2   : > { %3194 = vmatprep.subr.bf16.mxu0 %v4335_v10 }
 0xde5   : > { %3195 = vmatpush1.bf16.msra.mxu0 %v4333_v13 }
 0xde6   : > { %3196 = vmatprep.subr.bf16.mxu0 %v4341_v14 }
 0xde9   : > { %3197 = vmatpush1.bf16.msra.mxu0 %v4339_v16 }
 0xdea   : > { %3198 = vmatprep.subr.bf16.mxu0 %v4347_v33 }
 0xded   : > { %3199 = vmatpush1.bf16.msra.mxu0 %v4345_v17 }
 0xdee   : > { %3200 = vmatprep.subr.bf16.mxu0 %v4353_v22 }
 0xdf1   : > { %3201 = vmatpush1.bf16.msra.mxu0 %v4351_v24 }
 0xdf2   : > { %3202 = vmatprep.subr.bf16.mxu0 %v4359_v26 }
 0xdf5   : > { %3203 = vmatpush1.bf16.msra.mxu0 %v4357_v28 }
 0xdf6   : > { %3204 = vmatprep.subr.bf16.mxu0 %v4365_v30 }
 0xdf9   : > { %3205 = vmatpush1.bf16.msra.mxu0 %v4363_v32 }
 0xdfa   : > { %3206 = vmatprep.subr.bf16.mxu0 %v4371_v39 }
 0xdfd   : > { %3207 = vmatpush1.bf16.msra.mxu0 %v4369_v19 }
 0xdfe   : > { %3208 = vmatprep.subr.bf16.mxu0 %v4377_v41 }
 0xe01   : > { %3209 = vmatpush1.bf16.msra.mxu0 %v4375_v36 }
 0xe02   : > { %3210 = vmatprep.subr.bf16.mxu0 %v4383_v44 }
 0xe05   : > { %3211 = vmatpush1.bf16.msra.mxu0 %v4381_v3 }
 0xe06   : > { %3212 = vmatprep.subr.bf16.mxu0 %v4389_v4 }
 0xe09   : > { %3213 = vmatpush1.bf16.msra.mxu0 %v4387_v47 }
 0xe0a   : > { %3214 = vmatprep.subr.bf16.mxu0 %v4395_v51 }
 0xe0d   : > { %3215 = vmatpush1.bf16.msra.mxu0 %v4393_v38 }
 0xe0e   : > { %3216 = vmatprep.subr.bf16.mxu0 %v4401_v12 }
 0xe11   : > { %3217 = vmatpush1.bf16.msra.mxu0 %v4399_v57 }
 0xe12   : > { %3218 = vmatprep.subr.bf16.mxu0 %v4407_v59 }
 0xe15   : > { %3219 = vmatpush1.bf16.msra.mxu0 %v4405_v61 }
 0xeab   : > { %v2789_v1 = vpop.f32.mrb[0].mxu0 }
 0xeac   : > { %v3949_v2 = vpop.f32.mrb[1].mxu0  ;;  %v2794_v5 = vrot.slane %v2789_v1, 2  ;;  %v2798_v6 = vrot.slane %v2789_v1, 6  ;;  %v2796_v49 = vrot.slane %v2789_v1, 4  ;;  %v2800_v56 = vpack.c.bf16 %v2789_v1, %v2789_v1 }
 0xeae   : > { %v2801_v40 = vpack.c.bf16 %v2794_v5, %v2794_v5  ;;  %v2803_v7 = vpack.c.bf16 %v2798_v6, %v2798_v6  ;;  %v2802_v50 = vpack.c.bf16 %v2796_v49, %v2796_v49 }
 0xeb0   : > { %3220 = vmatprep.mubr.bf16.mxu0 %v2801_v40  ;;  %3261 = vmatprep.mubr.bf16.mxu1 %v2803_v7 }
 0xeb1   : > { %3221 = vmatmul.mubr.bf16.vlgmr.msra.gmra.mrb[4].mxu0 %v2800_v56  ;;  %3262 = vmatmul.mubr.bf16.vlgmr.msra.gmra.mrb[0].mxu1 %v2802_v50 }
 0xf84   : > { %v3222_v18 = vpop.f32.mrb[4].mxu0  ;;  %v3263_v8 = vpop.f32.mrb[0].mxu1 }
 0xf85   : > { %v3264_v53 = vadd.f32 %v3263_v8, %v3222_v18  ;;  %v3224_v9 = vpop.f32.mrb[5].mxu0  ;;  %v3265_v10 = vpop.f32.mrb[1].mxu1 }
 0xf86   : > { %v3266_v11 = vadd.f32 %v3265_v10, %v3224_v9  ;;  %v3226_v13 = vpop.f32.mrb[6].mxu0  ;;  %v3267_v62 = vpop.f32.mrb[2].mxu1 }
 0xf87   : > { %v3227_v14 = vpop.f32.mrb[7].mxu0  ;;  %v3268_v54 = vpop.f32.mrb[3].mxu1 }
 0xf88   : > { %v3272_v16 = vcombine.low %v3264_v53, %v3266_v11 }
 0xf8a   : > { %3777 = vst.sshfl [vmem:[#allocation21] sm:$0x33 pattern:$0x76325410] %v3272_v16 }
 0xf8b PF: > { %s6105_s20 = sld [smem:[#allocation30_spill]]  ;;  %s4938_s29 = smov [#allocation21]  }
 0xf8c   : > { %s3289_s9 = sshll.u32 %s4938_s29, 4  ;;  %s3290_s9 = int_to_ptr.vmem [resolvable:$true] %s3289_s9 }
 0xf8d   : > { %s4823_s4 = scalar_lea.vmem %s3290_s9, 64  ;;  %p4830_p8 = scmp.lt.s32.totalorder %s3290_s9, %s3290_s9 }
 0xf8e   : > { %p4824_p6 = scmp.ne.s32.totalorder %s3290_s9, %s4823_s4  ;;  %p4831_p5 = scmp.lt.s32.totalorder %s4823_s4, %s4823_s4 }
 0xf90   : > { %p4832_p4 = por %p4831_p5, %p4830_p8 }
 0xf91   : > { %p4072_p10 = scmp.eq.s32.totalorder %s6105_s20, 1 }
 0xf93   : > { %p4825_p1 = pnand %p4824_p6, %p4072_p10 }
 0xf95   : > { %p4826_p11 = pneg %p4825_p1 }
 0xf97   : > { %p4833_p12 = pnand %p4832_p4, %p4826_p11 }
 0xf99   : > { %4836 = shalt.err (!%p4833_p12)
}
 0xf9a   : > { %s6106_s22 = sld [smem:[#allocation50_spill]] }
 0xfa0   : > { %s4837_s27 = scalar_lea.hbm %s6106_s22, 64 }
 0xfa1   : > { %p4838_p2 = scmp.ne.s32.totalorder %s6106_s22, %s4837_s27  ;;  %p4843_p9 = scmp.lt.u32.totalorder %s4837_s27, %s6106_s22 }
 0xfa3   : > { %p4839_p13 = pnand %p4838_p2, %p4072_p10 }
 0xfa5   : > { %p4840_p0 = pneg %p4839_p13 }
 0xfa7   : > { %p4845_p7 = pnand %p4843_p9, %p4840_p0 }
 0xfa9   : > { %4848 = shalt.err (!%p4845_p7)
}
 0xfaa   : > { %4016 = dma.vmem_to_hbm [thread:$0]  (%p4072_p10), %s3290_s9, 64, %s6106_s22, [#allocation5]  }
 0xfab   : > { %4886 = dma.done.wait (%p4072_p10), [#allocation5], 64  }
 0xfac   : > { %4888 = vsyncadd (%p4072_p10), [#allocation5], 4294967232 }
 0xfad PF: > { %s6107_s30 = sld [smem:[#allocation31_spill]]  ;;  %s6108_s3 = sld [smem:[#allocation28_spill]] }
 0xfae   : > { %s6109_s28 = sld [smem:[#allocation29_spill]]  ;;  %s6110_s29 = sld [smem:[#allocation32_spill]] }
 0xfb3   : > { %p33_p3 = scmp.ge.s32.totalorder %s6107_s30, 4  }
 0xfb5   :  { %35 = sbr.rel (!%p33_p3) target bundleno = 22 (0x16), region = 273 }
 0xfbc   :  { %3302 = vsyncpa [#allocation4], 1 }
 0xfbd   :  { %3304 = vsyncpa [#allocation4 + $0x1], 1 }
 0xfbe   :  { %3305 = vsyncpa [#allocation7], 1 }
 0xfbf   :  { %3306 = vsyncpa [#allocation20], 1 }
 0xfc0   :  { %3307 = vsyncpa [#allocation5], 1 }
 0xfc1   :  { %3309 = vsyncpa [#allocation5 + $0x1], 1 }

</bundles_post_ra>
